<compile_context>
chip_gen: v7x
topology: tpu7x:2x2x1
jax: 0.10.0
libtpu: 0.0.40
codegen_flags: <defaults>
</compile_context>

<pallas_src>
import functools

import jax
import jax.numpy as jnp
from jax import lax
from jax.experimental import pallas as pl
from jax.experimental.pallas import tpu as pltpu

BN_EPS = 1e-5
_SQRT_HALF = 0.7071067811865476


def _gelu(x, approximate=False):
    if approximate:
        # tanh/exp run on the EUP slot (frees VALU bundles); ~1e-3 numerics delta.
        return jax.nn.gelu(x, approximate=True)
    # exact (erf) GELU, matching torch.nn.GELU() default
    return 0.5 * x * (1.0 + lax.erf(x * _SQRT_HALF))


def _round_up(v, m):
    return ((v + m - 1) // m) * m


def _resident_spec(arr):
    # Whole-array block with a constant index_map: DMA'd once, stays in VMEM.
    nd = arr.ndim
    return pl.BlockSpec(arr.shape, lambda i, _nd=nd: (0,) * _nd)


def _bn_scale_shift(s, sq, n, gamma, beta):
    # Finalize fused BN statistics: var = E[x^2] - mean^2 (biased, training mode).
    inv_n = 1.0 / n
    mean = s * inv_n
    var = jnp.maximum(sq * inv_n - mean * mean, 0.0)
    scale = gamma * lax.rsqrt(var + BN_EPS)
    shift = beta - mean * scale
    return scale, shift


# ----------------------------- kernels --------------------------------------


def _stats1_kernel(x_ref, w1_ref, b1_ref, sum_ref, sq_ref, *,
                   tb, n_valid, n_span):
    """Per-tile (8, H1) partial sums of h1 = x @ W1 + b1 and h1^2."""
    i = pl.program_id(0)
    h1 = jnp.dot(x_ref[...], w1_ref[...],
                 preferred_element_type=jnp.float32) + b1_ref[...]
    if n_valid != n_span:  # static check: mask overrun / padded rows
        rows = i * tb + lax.broadcasted_iota(jnp.int32, (tb, 1), 0)
        h1 = jnp.where(rows < n_valid, h1, 0.0)
    # Sublane-preserving split: (tb, H1) -> (tb//8, 8, H1); axis-0 sum is pure
    # VALU vreg adds.  Cross-sublane / cross-tile reduction happens in JAX.
    h1g = h1.reshape(tb // 8, 8, h1.shape[-1])
    sum_ref[0] = jnp.sum(h1g, axis=0)
    sq_ref[0] = jnp.sum(h1g * h1g, axis=0)


def _stats2_kernel(x_ref, w1_ref, b1_ref, w2_ref, b2_ref, w3_ref, b3_ref,
                   sum_ref, sq_ref, *rest,
                   tb, n_valid, n_span, mxu_dtype, approx_gelu, emit_a2):
    """Per-tile partial sums of h3 (BN1 pre-folded into w1/b1); optional a2 cache."""
    i = pl.program_id(0)
    h1 = jnp.dot(x_ref[...], w1_ref[...],
                 preferred_element_type=jnp.float32) + b1_ref[...]
    a1 = _gelu(h1, approx_gelu)
    h2 = jnp.dot(a1.astype(mxu_dtype), w2_ref[...],
                 preferred_element_type=jnp.float32) + b2_ref[...]
    a2 = _gelu(h2, approx_gelu).astype(mxu_dtype)
    if emit_a2:
        rest[0][...] = a2          # bf16 activation cache for pass 3 (wide-F path)
    h3 = jnp.dot(a2, w3_ref[...],
                 preferred_element_type=jnp.float32) + b3_ref[...]
    if n_valid != n_span:
        rows = i * tb + lax.broadcasted_iota(jnp.int32, (tb, 1), 0)
        h3 = jnp.where(rows < n_valid, h3, 0.0)
    h3g = h3.reshape(tb // 8, 8, h3.shape[-1])
    sum_ref[0] = jnp.sum(h3g, axis=0)
    sq_ref[0] = jnp.sum(h3g * h3g, axis=0)


def _forward_kernel(x_ref, w1_ref, b1_ref, w2_ref, b2_ref, w3_ref, b3_ref,
                    w4_ref, b4_ref, out_ref, *, mxu_dtype, approx_gelu):
    """Fused forward for one batch tile; both BNs pre-folded into w1/b1, w3/b3."""
    h1 = jnp.dot(x_ref[...], w1_ref[...],
                 preferred_element_type=jnp.float32) + b1_ref[...]
    a1 = _gelu(h1, approx_gelu)
    h2 = jnp.dot(a1.astype(mxu_dtype), w2_ref[...],
                 preferred_element_type=jnp.float32) + b2_ref[...]
    a2 = _gelu(h2, approx_gelu)
    h3 = jnp.dot(a2.astype(mxu_dtype), w3_ref[...],
                 preferred_element_type=jnp.float32) + b3_ref[...]
    a3 = _gelu(h3, approx_gelu)
    h4 = jnp.dot(a3.astype(mxu_dtype), w4_ref[...],
                 preferred_element_type=jnp.float32) + b4_ref[...]
    out_ref[...] = _gelu(h4, approx_gelu).astype(out_ref.dtype)


def _forward_from_a2_kernel(a2_ref, w3_ref, b3_ref, w4_ref, b4_ref, out_ref, *,
                            mxu_dtype, approx_gelu):
    """Fused forward tail starting from the cached a2 activations (wide-F path)."""
    h3 = jnp.dot(a2_ref[...], w3_ref[...],
                 preferred_element_type=jnp.float32) + b3_ref[...]
    a3 = _gelu(h3, approx_gelu)
    h4 = jnp.dot(a3.astype(mxu_dtype), w4_ref[...],
                 preferred_element_type=jnp.float32) + b4_ref[...]
    out_ref[...] = _gelu(h4, approx_gelu).astype(out_ref.dtype)


# ----------------------------- wrapper ---------------------------------------


@functools.partial(jax.jit, static_argnames=("tb", "use_bf16_matmul",
                                              "approximate_gelu", "cache_a2",
                                              "vmem_limit_bytes"))
def autoencoder_forward(x, params, *, tb=4096, use_bf16_matmul=True,
                        approximate_gelu=False, cache_a2=None,
                        vmem_limit_bytes=None):
    (w1, b1, g1, be1, w2, b2, w3, b3, g2, be2, w4, b4) = params
    n, f = x.shape
    h1n = w1.shape[1]
    h2n = w2.shape[1]

    if cache_a2 is None:
        # Re-reading x (F bytes/row) beats caching a2 (H2 bytes/row, write+read)
        # for narrow inputs; flip to the cached handoff for wide F.
        cache_a2 = f >= 64

    mxu_dtype = jnp.bfloat16 if use_bf16_matmul else jnp.float32

    # Minimal row pad to a multiple of 8 sublanes (NOT to a full tile; usually a
    # no-op), fused with the bf16 cast so all three passes read x in the narrow
    # dtype directly from HBM.
    n8 = _round_up(n, 8)
    x_in = x if n8 == n else jnp.pad(x, ((0, n8 - n), (0, 0)))
    x_in = x_in.astype(mxu_dtype)

    # Batch tile.  tb=4096 keeps the pass-3 f32 working set (~tb*336*4 B at
    # F=16 before compiler reuse) well under the v5e 16 MiB scoped-VMEM default;
    # pass vmem_limit_bytes (and a bigger tb) on v6e/v7x if desired.
    tb_eff = _round_up(max(8, min(tb, n8)), 8)
    grid = (pl.cdiv(n8, tb_eff),)
    n_span = grid[0] * tb_eff

    x_spec = pl.BlockSpec((tb_eff, f), lambda i: (i, 0))
    part_spec = pl.BlockSpec((1, 8, h1n), lambda i: (i, 0, 0))
    part_shape = jax.ShapeDtypeStruct((grid[0], 8, h1n), jnp.float32)

    cp = pltpu.CompilerParams(dimension_semantics=("parallel",),
                              vmem_limit_bytes=vmem_limit_bytes)

    # --- pass 1: per-tile partial stats of h1 (tree-reduced in JAX) ----------
    w1c = w1.astype(mxu_dtype)
    p1s, p1q = pl.pallas_call(
        functools.partial(_stats1_kernel, tb=tb_eff, n_valid=n, n_span=n_span),
        out_shape=(part_shape, part_shape),
        grid=grid,
        in_specs=[x_spec, _resident_spec(w1c), _resident_spec(b1)],
        out_specs=(part_spec, part_spec),
        compiler_params=cp,
    )(x_in, w1c, b1)
    sum1 = p1s.reshape(-1, h1n).sum(axis=0, keepdims=True)
    sq1 = p1q.reshape(-1, h1n).sum(axis=0, keepdims=True)
    s1, t1 = _bn_scale_shift(sum1, sq1, n, g1, be1)

    # Fold BN1 into layer 1 (f32 fold, then MXU-dtype cast).
    w1f = (w1 * s1).astype(mxu_dtype)
    b1f = b1 * s1 + t1

    w2c = w2.astype(mxu_dtype)
    w3c = w3.astype(mxu_dtype)

    # --- pass 2: per-tile partial stats of h3 (+ optional a2 cache) ----------
    out_shapes2 = [part_shape, part_shape]
    out_specs2 = [part_spec, part_spec]
    if cache_a2:
        out_shapes2.append(jax.ShapeDtypeStruct((n8, h2n), mxu_dtype))
        out_specs2.append(pl.BlockSpec((tb_eff, h2n), lambda i: (i, 0)))
    outs2 = pl.pallas_call(
        functools.partial(_stats2_kernel, tb=tb_eff, n_valid=n, n_span=n_span,
                          mxu_dtype=mxu_dtype, approx_gelu=approximate_gelu,
                          emit_a2=cache_a2),
        out_shape=tuple(out_shapes2),
        grid=grid,
        in_specs=[x_spec, _resident_spec(w1f), _resident_spec(b1f),
                  _resident_spec(w2c), _resident_spec(b2),
                  _resident_spec(w3c), _resident_spec(b3)],
        out_specs=tuple(out_specs2),
        compiler_params=cp,
    )(x_in, w1f, b1f, w2c, b2, w3c, b3)
    p2s, p2q = outs2[0], outs2[1]
    sum2 = p2s.reshape(-1, h1n).sum(axis=0, keepdims=True)
    sq2 = p2q.reshape(-1, h1n).sum(axis=0, keepdims=True)
    s2, t2 = _bn_scale_shift(sum2, sq2, n, g2, be2)

    # Fold BN2 into layer 3.
    w3f = (w3 * s2).astype(mxu_dtype)
    b3f = b3 * s2 + t2
    w4c = w4.astype(mxu_dtype)

    out_shape = jax.ShapeDtypeStruct((n8, f), jnp.float32)
    out_spec = pl.BlockSpec((tb_eff, f), lambda i: (i, 0))

    # --- pass 3: fused forward ------------------------------------------------
    if cache_a2:
        a2c = outs2[2]
        a2_spec = pl.BlockSpec((tb_eff, h2n), lambda i: (i, 0))
        out = pl.pallas_call(
            functools.partial(_forward_from_a2_kernel, mxu_dtype=mxu_dtype,
                              approx_gelu=approximate_gelu),
            out_shape=out_shape,
            grid=grid,
            in_specs=[a2_spec, _resident_spec(w3f), _resident_spec(b3f),
                      _resident_spec(w4c), _resident_spec(b4)],
            out_specs=out_spec,
            compiler_params=cp,
        )(a2c, w3f, b3f, w4c, b4)
    else:
        out = pl.pallas_call(
            functools.partial(_forward_kernel, mxu_dtype=mxu_dtype,
                              approx_gelu=approximate_gelu),
            out_shape=out_shape,
            grid=grid,
            in_specs=[x_spec, _resident_spec(w1f), _resident_spec(b1f),
                      _resident_spec(w2c), _resident_spec(b2),
                      _resident_spec(w3f), _resident_spec(b3f),
                      _resident_spec(w4c), _resident_spec(b4)],
            out_specs=out_spec,
            compiler_params=cp,
        )(x_in, w1f, b1f, w2c, b2, w3f, b3f, w4c, b4)

    return out if n8 == n else out[:n]


# --------------------------- init / reference --------------------------------


def init_params(key, n_features, n_hidden_1=64, n_hidden_2=32):
    """Deterministic init mimicking PyTorch Linear defaults (uniform +-1/sqrt(fan_in))."""
    keys = jax.random.split(key, 8)

    def lin(kw, kb, fan_in, fan_out):
        bound = 1.0 / jnp.sqrt(fan_in)
        w = jax.random.uniform(kw, (fan_in, fan_out), jnp.float32, -bound, bound)
        b = jax.random.uniform(kb, (1, fan_out), jnp.float32, -bound, bound)
        return w, b

    w1, b1 = lin(keys[0], keys[1], n_features, n_hidden_1)
    w2, b2 = lin(keys[2], keys[3], n_hidden_1, n_hidden_2)
    w3, b3 = lin(keys[4], keys[5], n_hidden_2, n_hidden_1)
    w4, b4 = lin(keys[6], keys[7], n_hidden_1, n_features)

    # BatchNorm1d affine params at init: gamma=1, beta=0
    g1 = jnp.ones((1, n_hidden_1), jnp.float32)
    be1 = jnp.zeros((1, n_hidden_1), jnp.float32)
    g2 = jnp.ones((1, n_hidden_1), jnp.float32)
    be2 = jnp.zeros((1, n_hidden_1), jnp.float32)

    return (w1, b1, g1, be1, w2, b2, w3, b3, g2, be2, w4, b4)


def reference_forward(x, params, *, use_bf16_matmul=True, approximate_gelu=False):
    """Pure-JAX reference (BN applied post-matmul, like the PyTorch module)."""
    (w1, b1, g1, be1, w2, b2, w3, b3, g2, be2, w4, b4) = params
    cast = (lambda a: a.astype(jnp.bfloat16)) if use_bf16_matmul else (lambda a: a)

    def dot(a, w):
        return jnp.dot(cast(a), cast(w), preferred_element_type=jnp.float32,
                       precision=jax.lax.Precision.HIGHEST)

    def bn(h, g, be):
        mean = jnp.mean(h, axis=0, keepdims=True)
        var = jnp.maximum(jnp.mean(h * h, axis=0, keepdims=True) - mean * mean, 0.0)
        return (h - mean) * lax.rsqrt(var + BN_EPS) * g + be

    h = _gelu(bn(dot(x, w1) + b1, g1, be1), approximate_gelu)
    h = _gelu(dot(h, w2) + b2, approximate_gelu)
    h = _gelu(bn(dot(h, w3) + b3, g2, be2), approximate_gelu)
    return _gelu(dot(h, w4) + b4, approximate_gelu)


if __name__ == "__main__":
    # small shapes; tb=64 run below deliberately does NOT divide B to exercise
    # the partial-block / masking path.
    B, F, H1, H2 = 200, 16, 64, 32

    key = jax.random.PRNGKey(0)
    kx, kp = jax.random.split(key)
    x = jax.random.normal(kx, (B, F), jnp.float32)
    params = init_params(kp, F, H1, H2)

    ref = reference_forward(x, params, use_bf16_matmul=True)

    # default fast path: bf16 MXU inputs, exact erf GELU, recompute handoff
    out = jax.block_until_ready(autoencoder_forward(x, params))
    assert out.shape == (B, F)
    assert jnp.allclose(out, ref, atol=1e-2, rtol=1e-2), \
        float(jnp.max(jnp.abs(out - ref)))

    # small tile -> multi-step grid with a partial last block (masking path)
    out_t = jax.block_until_ready(autoencoder_forward(x, params, tb=64))
    assert jnp.allclose(out_t, ref, atol=1e-2, rtol=1e-2), \
        float(jnp.max(jnp.abs(out_t - ref)))

    # cached-a2 handoff (auto-enabled for wide F; forced here to test the path)
    out_c = jax.block_until_ready(autoencoder_forward(x, params, cache_a2=True))
    assert jnp.allclose(out_c, ref, atol=1e-2, rtol=1e-2), \
        float(jnp.max(jnp.abs(out_c - ref)))

    # strict path: f32 matmuls, closest to the PyTorch module's f32 math
    out32 = jax.block_until_ready(
        autoencoder_forward(x, params, use_bf16_matmul=False))
    ref32 = reference_forward(x, params, use_bf16_matmul=False)
    assert jnp.allclose(out32, ref32, atol=1e-3, rtol=1e-3), \
        float(jnp.max(jnp.abs(out32 - ref32)))

    print("KERNEL_OK")
</pallas_src>

<mosaic_0001>
module attributes {stable_mosaic.version = 11 : i64} {
  func.func @_stats1_kernel(%arg0: i32, %arg1: memref<200x16xbf16, #tpu.memory_space<vmem>>, %arg2: memref<16x64xbf16, #tpu.memory_space<vmem>>, %arg3: memref<1x64xf32, #tpu.memory_space<vmem>>, %arg4: memref<1x8x64xf32, #tpu.memory_space<vmem>>, %arg5: memref<1x8x64xf32, #tpu.memory_space<vmem>>) attributes {dimension_semantics = [#tpu.dimension_semantics<parallel>], iteration_bounds = array<i64: 1>, scalar_prefetch = 0 : i64, scratch_operands = 0 : i64, tpu.core_type = #tpu.core_type<tc>, window_params = [{transform_indices = @transform_0, window_bounds = array<i64: 200, 16>}, {pipeline_mode = #tpu.pipeline_mode<synchronous>, transform_indices = @transform_1, window_bounds = array<i64: 16, 64>}, {pipeline_mode = #tpu.pipeline_mode<synchronous>, transform_indices = @transform_2, window_bounds = array<i64: 1, 64>}, {transform_indices = @transform_3, window_bounds = array<i64: 1, 8, 64>}, {transform_indices = @transform_4, window_bounds = array<i64: 1, 8, 64>}]} {
    %c0 = arith.constant 0 : index
    %c0_0 = arith.constant 0 : index
    %0 = vector.load %arg1[%c0, %c0_0] : memref<200x16xbf16, #tpu.memory_space<vmem>>, vector<200x16xbf16>
    %c0_1 = arith.constant 0 : index
    %c0_2 = arith.constant 0 : index
    %1 = vector.load %arg2[%c0_1, %c0_2] : memref<16x64xbf16, #tpu.memory_space<vmem>>, vector<16x64xbf16>
    %cst = arith.constant dense<0.000000e+00> : vector<200x64xf32>
    %2 = tpu.matmul %0, %1, %cst {dimension_numbers = #tpu.dot_dimension_numbers<[1], [0], [0], [1], [0, 0, 1, 1], [], []>} : vector<200x16xbf16>, vector<16x64xbf16>, vector<200x64xf32> -> vector<200x64xf32>
    %c0_3 = arith.constant 0 : index
    %c0_4 = arith.constant 0 : index
    %3 = vector.load %arg3[%c0_3, %c0_4] : memref<1x64xf32, #tpu.memory_space<vmem>>, vector<1x64xf32>
    %4 = vector.broadcast %3 : vector<1x64xf32> to vector<200x64xf32>
    %5 = arith.addf %2, %4 : vector<200x64xf32>
    %6 = vector.shape_cast %5 : vector<200x64xf32> to vector<25x8x64xf32>
    %cst_5 = arith.constant dense<0.000000e+00> : vector<8x64xf32>
    %7 = vector.multi_reduction <add>, %6, %cst_5 [0] : vector<25x8x64xf32> to vector<8x64xf32>
    %c0_6 = arith.constant 0 : index
    %c0_7 = arith.constant 0 : index
    %c0_8 = arith.constant 0 : index
    %8 = vector.load %arg4[%c0_6, %c0_7, %c0_8] : memref<1x8x64xf32, #tpu.memory_space<vmem>>, vector<1x8x64xf32>
    %9 = vector.shape_cast %8 : vector<1x8x64xf32> to vector<8x64xf32>
    %10 = vector.shape_cast %7 : vector<8x64xf32> to vector<1x8x64xf32>
    tpu.vector_store %arg4[%c0_6, %c0_7, %c0_8], %10 {strides = array<i32>} : memref<1x8x64xf32, #tpu.memory_space<vmem>>, vector<1x8x64xf32>,
    %11 = arith.mulf %6, %6 : vector<25x8x64xf32>
    %cst_9 = arith.constant dense<0.000000e+00> : vector<8x64xf32>
    %12 = vector.multi_reduction <add>, %11, %cst_9 [0] : vector<25x8x64xf32> to vector<8x64xf32>
    %c0_10 = arith.constant 0 : index
    %c0_11 = arith.constant 0 : index
    %c0_12 = arith.constant 0 : index
    %13 = vector.load %arg5[%c0_10, %c0_11, %c0_12] : memref<1x8x64xf32, #tpu.memory_space<vmem>>, vector<1x8x64xf32>
    %14 = vector.shape_cast %13 : vector<1x8x64xf32> to vector<8x64xf32>
    %15 = vector.shape_cast %12 : vector<8x64xf32> to vector<1x8x64xf32>
    tpu.vector_store %arg5[%c0_10, %c0_11, %c0_12], %15 {strides = array<i32>} : memref<1x8x64xf32, #tpu.memory_space<vmem>>, vector<1x8x64xf32>,
    return
  }
  func.func @transform_0(%arg0: i32) -> (i32, i32) {
    %c0_i32 = arith.constant 0 : i32
    %c0_i32_0 = arith.constant 0 : i32
    return %arg0, %c0_i32 : i32, i32
  }
  func.func @transform_1(%arg0: i32) -> (i32, i32) {
    %c0_i32 = arith.constant 0 : i32
    %c0_i32_0 = arith.constant 0 : i32
    %c0_i32_1 = arith.constant 0 : i32
    return %c0_i32, %c0_i32_0 : i32, i32
  }
  func.func @transform_2(%arg0: i32) -> (i32, i32) {
    %c0_i32 = arith.constant 0 : i32
    %c0_i32_0 = arith.constant 0 : i32
    %c0_i32_1 = arith.constant 0 : i32
    return %c0_i32, %c0_i32_0 : i32, i32
  }
  func.func @transform_3(%arg0: i32) -> (i32, i32, i32) {
    %c0_i32 = arith.constant 0 : i32
    %c0_i32_0 = arith.constant 0 : i32
    %c0_i32_1 = arith.constant 0 : i32
    return %arg0, %c0_i32, %c0_i32_0 : i32, i32, i32
  }
  func.func @transform_4(%arg0: i32) -> (i32, i32, i32) {
    %c0_i32 = arith.constant 0 : i32
    %c0_i32_0 = arith.constant 0 : i32
    %c0_i32_1 = arith.constant 0 : i32
    return %arg0, %c0_i32, %c0_i32_0 : i32, i32, i32
  }
}

module attributes {stable_mosaic.version = 11 : i64} {
  func.func @_stats2_kernel(%arg0: i32, %arg1: memref<200x16xbf16, #tpu.memory_space<vmem>>, %arg2: memref<16x64xbf16, #tpu.memory_space<vmem>>, %arg3: memref<1x64xf32, #tpu.memory_space<vmem>>, %arg4: memref<64x32xbf16, #tpu.memory_space<vmem>>, %arg5: memref<1x32xf32, #tpu.memory_space<vmem>>, %arg6: memref<32x64xbf16, #tpu.memory_space<vmem>>, %arg7: memref<1x64xf32, #tpu.memory_space<vmem>>, %arg8: memref<1x8x64xf32, #tpu.memory_space<vmem>>, %arg9: memref<1x8x64xf32, #tpu.memory_space<vmem>>) attributes {dimension_semantics = [#tpu.dimension_semantics<parallel>], iteration_bounds = array<i64: 1>, scalar_prefetch = 0 : i64, scratch_operands = 0 : i64, tpu.core_type = #tpu.core_type<tc>, window_params = [{transform_indices = @transform_0, window_bounds = array<i64: 200, 16>}, {pipeline_mode = #tpu.pipeline_mode<synchronous>, transform_indices = @transform_1, window_bounds = array<i64: 16, 64>}, {pipeline_mode = #tpu.pipeline_mode<synchronous>, transform_indices = @transform_2, window_bounds = array<i64: 1, 64>}, {pipeline_mode = #tpu.pipeline_mode<synchronous>, transform_indices = @transform_3, window_bounds = array<i64: 64, 32>}, {pipeline_mode = #tpu.pipeline_mode<synchronous>, transform_indices = @transform_4, window_bounds = array<i64: 1, 32>}, {pipeline_mode = #tpu.pipeline_mode<synchronous>, transform_indices = @transform_5, window_bounds = array<i64: 32, 64>}, {pipeline_mode = #tpu.pipeline_mode<synchronous>, transform_indices = @transform_6, window_bounds = array<i64: 1, 64>}, {transform_indices = @transform_7, window_bounds = array<i64: 1, 8, 64>}, {transform_indices = @transform_8, window_bounds = array<i64: 1, 8, 64>}]} {
    %c0 = arith.constant 0 : index
    %c0_0 = arith.constant 0 : index
    %0 = vector.load %arg1[%c0, %c0_0] : memref<200x16xbf16, #tpu.memory_space<vmem>>, vector<200x16xbf16>
    %c0_1 = arith.constant 0 : index
    %c0_2 = arith.constant 0 : index
    %1 = vector.load %arg2[%c0_1, %c0_2] : memref<16x64xbf16, #tpu.memory_space<vmem>>, vector<16x64xbf16>
    %cst = arith.constant dense<0.000000e+00> : vector<200x64xf32>
    %2 = tpu.matmul %0, %1, %cst {dimension_numbers = #tpu.dot_dimension_numbers<[1], [0], [0], [1], [0, 0, 1, 1], [], []>} : vector<200x16xbf16>, vector<16x64xbf16>, vector<200x64xf32> -> vector<200x64xf32>
    %c0_3 = arith.constant 0 : index
    %c0_4 = arith.constant 0 : index
    %3 = vector.load %arg3[%c0_3, %c0_4] : memref<1x64xf32, #tpu.memory_space<vmem>>, vector<1x64xf32>
    %4 = vector.broadcast %3 : vector<1x64xf32> to vector<200x64xf32>
    %5 = arith.addf %2, %4 : vector<200x64xf32>
    %cst_5 = arith.constant 5.000000e-01 : f32
    %6 = vector.broadcast %cst_5 : f32 to vector<200x64xf32>
    %7 = arith.mulf %6, %5 : vector<200x64xf32>
    %cst_6 = arith.constant 0.707106769 : f32
    %8 = vector.broadcast %cst_6 : f32 to vector<200x64xf32>
    %9 = arith.mulf %5, %8 : vector<200x64xf32>
    %10 = math.erf %9 : vector<200x64xf32>
    %cst_7 = arith.constant 1.000000e+00 : f32
    %11 = vector.broadcast %cst_7 : f32 to vector<200x64xf32>
    %12 = arith.addf %11, %10 : vector<200x64xf32>
    %13 = arith.mulf %7, %12 : vector<200x64xf32>
    %14 = arith.truncf %13 : vector<200x64xf32> to vector<200x64xbf16>
    %c0_8 = arith.constant 0 : index
    %c0_9 = arith.constant 0 : index
    %15 = vector.load %arg4[%c0_8, %c0_9] : memref<64x32xbf16, #tpu.memory_space<vmem>>, vector<64x32xbf16>
    %cst_10 = arith.constant dense<0.000000e+00> : vector<200x32xf32>
    %16 = tpu.matmul %14, %15, %cst_10 {dimension_numbers = #tpu.dot_dimension_numbers<[1], [0], [0], [1], [0, 0, 1, 1], [], []>} : vector<200x64xbf16>, vector<64x32xbf16>, vector<200x32xf32> -> vector<200x32xf32>
    %c0_11 = arith.constant 0 : index
    %c0_12 = arith.constant 0 : index
    %17 = vector.load %arg5[%c0_11, %c0_12] : memref<1x32xf32, #tpu.memory_space<vmem>>, vector<1x32xf32>
    %18 = vector.broadcast %17 : vector<1x32xf32> to vector<200x32xf32>
    %19 = arith.addf %16, %18 : vector<200x32xf32>
    %cst_13 = arith.constant 5.000000e-01 : f32
    %20 = vector.broadcast %cst_13 : f32 to vector<200x32xf32>
    %21 = arith.mulf %20, %19 : vector<200x32xf32>
    %cst_14 = arith.constant 0.707106769 : f32
    %22 = vector.broadcast %cst_14 : f32 to vector<200x32xf32>
    %23 = arith.mulf %19, %22 : vector<200x32xf32>
    %24 = math.erf %23 : vector<200x32xf32>
    %cst_15 = arith.constant 1.000000e+00 : f32
    %25 = vector.broadcast %cst_15 : f32 to vector<200x32xf32>
    %26 = arith.addf %25, %24 : vector<200x32xf32>
    %27 = arith.mulf %21, %26 : vector<200x32xf32>
    %28 = arith.truncf %27 : vector<200x32xf32> to vector<200x32xbf16>
    %c0_16 = arith.constant 0 : index
    %c0_17 = arith.constant 0 : index
    %29 = vector.load %arg6[%c0_16, %c0_17] : memref<32x64xbf16, #tpu.memory_space<vmem>>, vector<32x64xbf16>
    %cst_18 = arith.constant dense<0.000000e+00> : vector<200x64xf32>
    %30 = tpu.matmul %28, %29, %cst_18 {dimension_numbers = #tpu.dot_dimension_numbers<[1], [0], [0], [1], [0, 0, 1, 1], [], []>} : vector<200x32xbf16>, vector<32x64xbf16>, vector<200x64xf32> -> vector<200x64xf32>
    %c0_19 = arith.constant 0 : index
    %c0_20 = arith.constant 0 : index
    %31 = vector.load %arg7[%c0_19, %c0_20] : memref<1x64xf32, #tpu.memory_space<vmem>>, vector<1x64xf32>
    %32 = vector.broadcast %31 : vector<1x64xf32> to vector<200x64xf32>
    %33 = arith.addf %30, %32 : vector<200x64xf32>
    %34 = vector.shape_cast %33 : vector<200x64xf32> to vector<25x8x64xf32>
    %cst_21 = arith.constant dense<0.000000e+00> : vector<8x64xf32>
    %35 = vector.multi_reduction <add>, %34, %cst_21 [0] : vector<25x8x64xf32> to vector<8x64xf32>
    %c0_22 = arith.constant 0 : index
    %c0_23 = arith.constant 0 : index
    %c0_24 = arith.constant 0 : index
    %36 = vector.load %arg8[%c0_22, %c0_23, %c0_24] : memref<1x8x64xf32, #tpu.memory_space<vmem>>, vector<1x8x64xf32>
    %37 = vector.shape_cast %36 : vector<1x8x64xf32> to vector<8x64xf32>
    %38 = vector.shape_cast %35 : vector<8x64xf32> to vector<1x8x64xf32>
    tpu.vector_store %arg8[%c0_22, %c0_23, %c0_24], %38 {strides = array<i32>} : memref<1x8x64xf32, #tpu.memory_space<vmem>>, vector<1x8x64xf32>,
    %39 = arith.mulf %34, %34 : vector<25x8x64xf32>
    %cst_25 = arith.constant dense<0.000000e+00> : vector<8x64xf32>
    %40 = vector.multi_reduction <add>, %39, %cst_25 [0] : vector<25x8x64xf32> to vector<8x64xf32>
    %c0_26 = arith.constant 0 : index
    %c0_27 = arith.constant 0 : index
    %c0_28 = arith.constant 0 : index
    %41 = vector.load %arg9[%c0_26, %c0_27, %c0_28] : memref<1x8x64xf32, #tpu.memory_space<vmem>>, vector<1x8x64xf32>
    %42 = vector.shape_cast %41 : vector<1x8x64xf32> to vector<8x64xf32>
    %43 = vector.shape_cast %40 : vector<8x64xf32> to vector<1x8x64xf32>
    tpu.vector_store %arg9[%c0_26, %c0_27, %c0_28], %43 {strides = array<i32>} : memref<1x8x64xf32, #tpu.memory_space<vmem>>, vector<1x8x64xf32>,
    return
  }
  func.func @transform_0(%arg0: i32) -> (i32, i32) {
    %c0_i32 = arith.constant 0 : i32
    %c0_i32_0 = arith.constant 0 : i32
    return %arg0, %c0_i32 : i32, i32
  }
  func.func @transform_1(%arg0: i32) -> (i32, i32) {
    %c0_i32 = arith.constant 0 : i32
    %c0_i32_0 = arith.constant 0 : i32
    %c0_i32_1 = arith.constant 0 : i32
    return %c0_i32, %c0_i32_0 : i32, i32
  }
  func.func @transform_2(%arg0: i32) -> (i32, i32) {
    %c0_i32 = arith.constant 0 : i32
    %c0_i32_0 = arith.constant 0 : i32
    %c0_i32_1 = arith.constant 0 : i32
    return %c0_i32, %c0_i32_0 : i32, i32
  }
  func.func @transform_3(%arg0: i32) -> (i32, i32) {
    %c0_i32 = arith.constant 0 : i32
    %c0_i32_0 = arith.constant 0 : i32
    %c0_i32_1 = arith.constant 0 : i32
    return %c0_i32, %c0_i32_0 : i32, i32
  }
  func.func @transform_4(%arg0: i32) -> (i32, i32) {
    %c0_i32 = arith.constant 0 : i32
    %c0_i32_0 = arith.constant 0 : i32
    %c0_i32_1 = arith.constant 0 : i32
    return %c0_i32, %c0_i32_0 : i32, i32
  }
  func.func @transform_5(%arg0: i32) -> (i32, i32) {
    %c0_i32 = arith.constant 0 : i32
    %c0_i32_0 = arith.constant 0 : i32
    %c0_i32_1 = arith.constant 0 : i32
    return %c0_i32, %c0_i32_0 : i32, i32
  }
  func.func @transform_6(%arg0: i32) -> (i32, i32) {
    %c0_i32 = arith.constant 0 : i32
    %c0_i32_0 = arith.constant 0 : i32
    %c0_i32_1 = arith.constant 0 : i32
    return %c0_i32, %c0_i32_0 : i32, i32
  }
  func.func @transform_7(%arg0: i32) -> (i32, i32, i32) {
    %c0_i32 = arith.constant 0 : i32
    %c0_i32_0 = arith.constant 0 : i32
    %c0_i32_1 = arith.constant 0 : i32
    return %arg0, %c0_i32, %c0_i32_0 : i32, i32, i32
  }
  func.func @transform_8(%arg0: i32) -> (i32, i32, i32) {
    %c0_i32 = arith.constant 0 : i32
    %c0_i32_0 = arith.constant 0 : i32
    %c0_i32_1 = arith.constant 0 : i32
    return %arg0, %c0_i32, %c0_i32_0 : i32, i32, i32
  }
}

module attributes {stable_mosaic.version = 11 : i64} {
  func.func @_forward_kernel(%arg0: i32, %arg1: memref<200x16xbf16, #tpu.memory_space<vmem>>, %arg2: memref<16x64xbf16, #tpu.memory_space<vmem>>, %arg3: memref<1x64xf32, #tpu.memory_space<vmem>>, %arg4: memref<64x32xbf16, #tpu.memory_space<vmem>>, %arg5: memref<1x32xf32, #tpu.memory_space<vmem>>, %arg6: memref<32x64xbf16, #tpu.memory_space<vmem>>, %arg7: memref<1x64xf32, #tpu.memory_space<vmem>>, %arg8: memref<64x16xbf16, #tpu.memory_space<vmem>>, %arg9: memref<1x16xf32, #tpu.memory_space<vmem>>, %arg10: memref<200x16xf32, #tpu.memory_space<vmem>>) attributes {dimension_semantics = [#tpu.dimension_semantics<parallel>], iteration_bounds = array<i64: 1>, scalar_prefetch = 0 : i64, scratch_operands = 0 : i64, tpu.core_type = #tpu.core_type<tc>, window_params = [{transform_indices = @transform_0, window_bounds = array<i64: 200, 16>}, {pipeline_mode = #tpu.pipeline_mode<synchronous>, transform_indices = @transform_1, window_bounds = array<i64: 16, 64>}, {pipeline_mode = #tpu.pipeline_mode<synchronous>, transform_indices = @transform_2, window_bounds = array<i64: 1, 64>}, {pipeline_mode = #tpu.pipeline_mode<synchronous>, transform_indices = @transform_3, window_bounds = array<i64: 64, 32>}, {pipeline_mode = #tpu.pipeline_mode<synchronous>, transform_indices = @transform_4, window_bounds = array<i64: 1, 32>}, {pipeline_mode = #tpu.pipeline_mode<synchronous>, transform_indices = @transform_5, window_bounds = array<i64: 32, 64>}, {pipeline_mode = #tpu.pipeline_mode<synchronous>, transform_indices = @transform_6, window_bounds = array<i64: 1, 64>}, {pipeline_mode = #tpu.pipeline_mode<synchronous>, transform_indices = @transform_7, window_bounds = array<i64: 64, 16>}, {pipeline_mode = #tpu.pipeline_mode<synchronous>, transform_indices = @transform_8, window_bounds = array<i64: 1, 16>}, {transform_indices = @transform_9, window_bounds = array<i64: 200, 16>}]} {
    %c0 = arith.constant 0 : index
    %c0_0 = arith.constant 0 : index
    %0 = vector.load %arg1[%c0, %c0_0] : memref<200x16xbf16, #tpu.memory_space<vmem>>, vector<200x16xbf16>
    %c0_1 = arith.constant 0 : index
    %c0_2 = arith.constant 0 : index
    %1 = vector.load %arg2[%c0_1, %c0_2] : memref<16x64xbf16, #tpu.memory_space<vmem>>, vector<16x64xbf16>
    %cst = arith.constant dense<0.000000e+00> : vector<200x64xf32>
    %2 = tpu.matmul %0, %1, %cst {dimension_numbers = #tpu.dot_dimension_numbers<[1], [0], [0], [1], [0, 0, 1, 1], [], []>} : vector<200x16xbf16>, vector<16x64xbf16>, vector<200x64xf32> -> vector<200x64xf32>
    %c0_3 = arith.constant 0 : index
    %c0_4 = arith.constant 0 : index
    %3 = vector.load %arg3[%c0_3, %c0_4] : memref<1x64xf32, #tpu.memory_space<vmem>>, vector<1x64xf32>
    %4 = vector.broadcast %3 : vector<1x64xf32> to vector<200x64xf32>
    %5 = arith.addf %2, %4 : vector<200x64xf32>
    %cst_5 = arith.constant 5.000000e-01 : f32
    %6 = vector.broadcast %cst_5 : f32 to vector<200x64xf32>
    %7 = arith.mulf %6, %5 : vector<200x64xf32>
    %cst_6 = arith.constant 0.707106769 : f32
    %8 = vector.broadcast %cst_6 : f32 to vector<200x64xf32>
    %9 = arith.mulf %5, %8 : vector<200x64xf32>
    %10 = math.erf %9 : vector<200x64xf32>
    %cst_7 = arith.constant 1.000000e+00 : f32
    %11 = vector.broadcast %cst_7 : f32 to vector<200x64xf32>
    %12 = arith.addf %11, %10 : vector<200x64xf32>
    %13 = arith.mulf %7, %12 : vector<200x64xf32>
    %14 = arith.truncf %13 : vector<200x64xf32> to vector<200x64xbf16>
    %c0_8 = arith.constant 0 : index
    %c0_9 = arith.constant 0 : index
    %15 = vector.load %arg4[%c0_8, %c0_9] : memref<64x32xbf16, #tpu.memory_space<vmem>>, vector<64x32xbf16>
    %cst_10 = arith.constant dense<0.000000e+00> : vector<200x32xf32>
    %16 = tpu.matmul %14, %15, %cst_10 {dimension_numbers = #tpu.dot_dimension_numbers<[1], [0], [0], [1], [0, 0, 1, 1], [], []>} : vector<200x64xbf16>, vector<64x32xbf16>, vector<200x32xf32> -> vector<200x32xf32>
    %c0_11 = arith.constant 0 : index
    %c0_12 = arith.constant 0 : index
    %17 = vector.load %arg5[%c0_11, %c0_12] : memref<1x32xf32, #tpu.memory_space<vmem>>, vector<1x32xf32>
    %18 = vector.broadcast %17 : vector<1x32xf32> to vector<200x32xf32>
    %19 = arith.addf %16, %18 : vector<200x32xf32>
    %cst_13 = arith.constant 5.000000e-01 : f32
    %20 = vector.broadcast %cst_13 : f32 to vector<200x32xf32>
    %21 = arith.mulf %20, %19 : vector<200x32xf32>
    %cst_14 = arith.constant 0.707106769 : f32
    %22 = vector.broadcast %cst_14 : f32 to vector<200x32xf32>
    %23 = arith.mulf %19, %22 : vector<200x32xf32>
    %24 = math.erf %23 : vector<200x32xf32>
    %cst_15 = arith.constant 1.000000e+00 : f32
    %25 = vector.broadcast %cst_15 : f32 to vector<200x32xf32>
    %26 = arith.addf %25, %24 : vector<200x32xf32>
    %27 = arith.mulf %21, %26 : vector<200x32xf32>
    %28 = arith.truncf %27 : vector<200x32xf32> to vector<200x32xbf16>
    %c0_16 = arith.constant 0 : index
    %c0_17 = arith.constant 0 : index
    %29 = vector.load %arg6[%c0_16, %c0_17] : memref<32x64xbf16, #tpu.memory_space<vmem>>, vector<32x64xbf16>
    %cst_18 = arith.constant dense<0.000000e+00> : vector<200x64xf32>
    %30 = tpu.matmul %28, %29, %cst_18 {dimension_numbers = #tpu.dot_dimension_numbers<[1], [0], [0], [1], [0, 0, 1, 1], [], []>} : vector<200x32xbf16>, vector<32x64xbf16>, vector<200x64xf32> -> vector<200x64xf32>
    %c0_19 = arith.constant 0 : index
    %c0_20 = arith.constant 0 : index
    %31 = vector.load %arg7[%c0_19, %c0_20] : memref<1x64xf32, #tpu.memory_space<vmem>>, vector<1x64xf32>
    %32 = vector.broadcast %31 : vector<1x64xf32> to vector<200x64xf32>
    %33 = arith.addf %30, %32 : vector<200x64xf32>
    %cst_21 = arith.constant 5.000000e-01 : f32
    %34 = vector.broadcast %cst_21 : f32 to vector<200x64xf32>
    %35 = arith.mulf %34, %33 : vector<200x64xf32>
    %cst_22 = arith.constant 0.707106769 : f32
    %36 = vector.broadcast %cst_22 : f32 to vector<200x64xf32>
    %37 = arith.mulf %33, %36 : vector<200x64xf32>
    %38 = math.erf %37 : vector<200x64xf32>
    %cst_23 = arith.constant 1.000000e+00 : f32
    %39 = vector.broadcast %cst_23 : f32 to vector<200x64xf32>
    %40 = arith.addf %39, %38 : vector<200x64xf32>
    %41 = arith.mulf %35, %40 : vector<200x64xf32>
    %42 = arith.truncf %41 : vector<200x64xf32> to vector<200x64xbf16>
    %c0_24 = arith.constant 0 : index
    %c0_25 = arith.constant 0 : index
    %43 = vector.load %arg8[%c0_24, %c0_25] : memref<64x16xbf16, #tpu.memory_space<vmem>>, vector<64x16xbf16>
    %cst_26 = arith.constant dense<0.000000e+00> : vector<200x16xf32>
    %44 = tpu.matmul %42, %43, %cst_26 {dimension_numbers = #tpu.dot_dimension_numbers<[1], [0], [0], [1], [0, 0, 1, 1], [], []>} : vector<200x64xbf16>, vector<64x16xbf16>, vector<200x16xf32> -> vector<200x16xf32>
    %c0_27 = arith.constant 0 : index
    %c0_28 = arith.constant 0 : index
    %45 = vector.load %arg9[%c0_27, %c0_28] : memref<1x16xf32, #tpu.memory_space<vmem>>, vector<1x16xf32>
    %46 = vector.broadcast %45 : vector<1x16xf32> to vector<200x16xf32>
    %47 = arith.addf %44, %46 : vector<200x16xf32>
    %cst_29 = arith.constant 5.000000e-01 : f32
    %48 = vector.broadcast %cst_29 : f32 to vector<200x16xf32>
    %49 = arith.mulf %48, %47 : vector<200x16xf32>
    %cst_30 = arith.constant 0.707106769 : f32
    %50 = vector.broadcast %cst_30 : f32 to vector<200x16xf32>
    %51 = arith.mulf %47, %50 : vector<200x16xf32>
    %52 = math.erf %51 : vector<200x16xf32>
    %cst_31 = arith.constant 1.000000e+00 : f32
    %53 = vector.broadcast %cst_31 : f32 to vector<200x16xf32>
    %54 = arith.addf %53, %52 : vector<200x16xf32>
    %55 = arith.mulf %49, %54 : vector<200x16xf32>
    %c0_32 = arith.constant 0 : index
    %c0_33 = arith.constant 0 : index
    %56 = vector.load %arg10[%c0_32, %c0_33] : memref<200x16xf32, #tpu.memory_space<vmem>>, vector<200x16xf32>
    tpu.vector_store %arg10[%c0_32, %c0_33], %55 {strides = array<i32>} : memref<200x16xf32, #tpu.memory_space<vmem>>, vector<200x16xf32>,
    return
  }
  func.func @transform_0(%arg0: i32) -> (i32, i32) {
    %c0_i32 = arith.constant 0 : i32
    %c0_i32_0 = arith.constant 0 : i32
    return %arg0, %c0_i32 : i32, i32
  }
  func.func @transform_1(%arg0: i32) -> (i32, i32) {
    %c0_i32 = arith.constant 0 : i32
    %c0_i32_0 = arith.constant 0 : i32
    %c0_i32_1 = arith.constant 0 : i32
    return %c0_i32, %c0_i32_0 : i32, i32
  }
  func.func @transform_2(%arg0: i32) -> (i32, i32) {
    %c0_i32 = arith.constant 0 : i32
    %c0_i32_0 = arith.constant 0 : i32
    %c0_i32_1 = arith.constant 0 : i32
    return %c0_i32, %c0_i32_0 : i32, i32
  }
  func.func @transform_3(%arg0: i32) -> (i32, i32) {
    %c0_i32 = arith.constant 0 : i32
    %c0_i32_0 = arith.constant 0 : i32
    %c0_i32_1 = arith.constant 0 : i32
    return %c0_i32, %c0_i32_0 : i32, i32
  }
  func.func @transform_4(%arg0: i32) -> (i32, i32) {
    %c0_i32 = arith.constant 0 : i32
    %c0_i32_0 = arith.constant 0 : i32
    %c0_i32_1 = arith.constant 0 : i32
    return %c0_i32, %c0_i32_0 : i32, i32
  }
  func.func @transform_5(%arg0: i32) -> (i32, i32) {
    %c0_i32 = arith.constant 0 : i32
    %c0_i32_0 = arith.constant 0 : i32
    %c0_i32_1 = arith.constant 0 : i32
    return %c0_i32, %c0_i32_0 : i32, i32
  }
  func.func @transform_6(%arg0: i32) -> (i32, i32) {
    %c0_i32 = arith.constant 0 : i32
    %c0_i32_0 = arith.constant 0 : i32
    %c0_i32_1 = arith.constant 0 : i32
    return %c0_i32, %c0_i32_0 : i32, i32
  }
  func.func @transform_7(%arg0: i32) -> (i32, i32) {
    %c0_i32 = arith.constant 0 : i32
    %c0_i32_0 = arith.constant 0 : i32
    %c0_i32_1 = arith.constant 0 : i32
    return %c0_i32, %c0_i32_0 : i32, i32
  }
  func.func @transform_8(%arg0: i32) -> (i32, i32) {
    %c0_i32 = arith.constant 0 : i32
    %c0_i32_0 = arith.constant 0 : i32
    %c0_i32_1 = arith.constant 0 : i32
    return %c0_i32, %c0_i32_0 : i32, i32
  }
  func.func @transform_9(%arg0: i32) -> (i32, i32) {
    %c0_i32 = arith.constant 0 : i32
    %c0_i32_0 = arith.constant 0 : i32
    return %arg0, %c0_i32 : i32, i32
  }
}

</mosaic_0001>

<bundles_post_ra>
// kernel: autoencoder_forward.3
= control target key start
LH: loop header
LB: loop body
LE: loop exit
PB: predicated region body
PF: predicated region fallthrough
CT: control target
= control target key end

     0   :  { %v544_v0 = vmov 0.0   ;;  %vm545_vm0 = vmmov 0   ;;  %vm120_vm1 = vcmask 130048   ;;  %vm296_vm2 = vcmask 523264   ;;  %s760_s1 = inlined_call_operand.vmem [shape: bf16[16,64], index: 1, kind: input, shape index: {}]   ;;  %s761_s0 = inlined_call_operand.vmem [shape: bf16[200,16], index: 0, kind: input, shape index: {}]   ;;  %s762_s2 = inlined_call_operand.vmem [shape: f32[1,64], index: 2, kind: input, shape index: {}]   ;;  %s763_s3 = inlined_call_operand.vmem [shape: f32[1,8,64], index: 3, kind: output, shape index: {0}]   ;;  %s764_s4 = inlined_call_operand.vmem [shape: f32[1,8,64], index: 4, kind: output, shape index: {1}]  }
   0x1   :  { %472 = vmatprep.subr.bf16.mxu0 %v544_v0  ;;  %v530_v1 = vld [vmem:[%s760_s1] sm:$0xff]   ;;  %474 = vmatprep.mubr.msk.bf16.mxu0 %vm545_vm0, %v544_v0  ;;  %v535_v3 = vld [vmem:[%s761_s0 + $0x38] sm:$0xff]   ;;  %v532_v4 = vld [vmem:[%s761_s0 + $0x8] sm:$0xff]  }
   0x2   :  { %v531_v2 = vld [vmem:[%s761_s0] sm:$0xff]   ;;  %526 = vmatprep.subr.bf16.mxu1 %v544_v0  ;;  %502 = vmatprep.mubr.msk.bf16.mxu1 %vm545_vm0, %v544_v0  ;;  %v533_v6 = vld [vmem:[%s761_s0 + $0x10] sm:$0xff]   ;;  %v539_v7 = vld [vmem:[%s761_s0 + $0x48] sm:$0xff]  }
   0x3   :  { %473 = vmatpush3.bf16.msra.mxu0 %v530_v1  ;;  %527 = vmatpush3.bf16.msra.mxu1 %v530_v1  ;;  %v537_v5 = vld [vmem:[%s761_s0 + $0x40] sm:$0xff]   ;;  %v534_v8 = vld [vmem:[%s761_s0 + $0x18] sm:$0xff]   ;;  %v541_v9 = vld [vmem:[%s761_s0 + $0x50] sm:$0xff]  }
   0x4   :  { %v536_v10 = vld [vmem:[%s761_s0 + $0x20] sm:$0xff]   ;;  %v542_v11 = vld [vmem:[%s761_s0 + $0x58] sm:$0xff]   ;;  %v538_v12 = vld [vmem:[%s761_s0 + $0x28] sm:$0xff]  }
   0x5   :  { %v543_v13 = vld [vmem:[%s761_s0 + $0x60] ss:$0 sps:$4 sm:$0xff]   ;;  %v540_v14 = vld [vmem:[%s761_s0 + $0x30] sm:$0xff]  }
   0x6   :  { %475 = vmatmul.mubr.msk.bf16.vlgmr.msra.gmra.mrb[0].mxu0 %vm120_vm1, %v531_v2  ;;  %503 = vmatmul.mubr.msk.bf16.vlgmr.msra.gmra.mrb[0].mxu1 %vm120_vm1, %v535_v3  ;;  %v642_v15 = vld [vmem:[%s762_s2] ss:$0 sm:$0xff] }
   0x7   :  { %478 = vmatprep.mubr.msk.bf16.mxu0 %vm545_vm0, %v544_v0  ;;  %506 = vmatprep.mubr.msk.bf16.mxu1 %vm545_vm0, %v544_v0 }
   0xe   :  { %479 = vmatmul.mubr.msk.bf16.gmra.mrb[4].mxu0 %vm120_vm1, %v532_v4  ;;  %507 = vmatmul.mubr.msk.bf16.gmra.mrb[4].mxu1 %vm120_vm1, %v537_v5 }
   0xf   :  { %482 = vmatprep.mubr.msk.bf16.mxu0 %vm545_vm0, %v544_v0  ;;  %510 = vmatprep.mubr.msk.bf16.mxu1 %vm545_vm0, %v544_v0 }
  0x16   :  { %483 = vmatmul.mubr.msk.bf16.gmra.mrb[8].mxu0 %vm120_vm1, %v533_v6  ;;  %511 = vmatmul.mubr.msk.bf16.gmra.mrb[8].mxu1 %vm120_vm1, %v539_v7 }
  0x17   :  { %486 = vmatprep.mubr.msk.bf16.mxu0 %vm545_vm0, %v544_v0  ;;  %514 = vmatprep.mubr.msk.bf16.mxu1 %vm545_vm0, %v544_v0 }
  0x1e   :  { %487 = vmatmul.mubr.msk.bf16.gmra.mrb[12].mxu0 %vm120_vm1, %v534_v8  ;;  %515 = vmatmul.mubr.msk.bf16.gmra.mrb[12].mxu1 %vm120_vm1, %v541_v9 }
  0x1f   :  { %490 = vmatprep.mubr.msk.bf16.mxu0 %vm545_vm0, %v544_v0  ;;  %518 = vmatprep.mubr.msk.bf16.mxu1 %vm545_vm0, %v544_v0 }
  0x26   :  { %491 = vmatmul.mubr.msk.bf16.gmra.mrb[16].mxu0 %vm120_vm1, %v536_v10  ;;  %519 = vmatmul.mubr.msk.bf16.gmra.mrb[16].mxu1 %vm120_vm1, %v542_v11 }
  0x27   :  { %494 = vmatprep.mubr.msk.bf16.mxu0 %vm545_vm0, %v544_v0  ;;  %522 = vmatprep.mubr.msk.bf16.mxu1 %vm545_vm0, %v544_v0 }
  0x2e   :  { %495 = vmatmul.mubr.msk.bf16.gmra.mrb[20].mxu0 %vm120_vm1, %v538_v12  ;;  %523 = vmatmul.mubr.msk.bf16.gmra.mrb[20].mxu1 %vm120_vm1, %v543_v13 }
  0x2f   :  { %498 = vmatprep.mubr.msk.bf16.mxu0 %vm545_vm0, %v544_v0 }
  0x36   :  { %499 = vmatmul.mubr.msk.bf16.gmra.mrb[24].mxu0 %vm120_vm1, %v540_v14 }
  0xd9   :  { %v194_v16 = vpop.f32.mrb[0].mxu0  ;;  %v645_v20 = vpop.f32.mrb[0].mxu1 }
  0xda   :  { %v195_v17 = vadd.f32 %v642_v15, %v194_v16  ;;  %v476_v18 = vpop.f32.mrb[1].mxu0  ;;  %v504_v24 = vpop.f32.mrb[1].mxu1 }
  0xdb   :  { %v197_v19 = vpop.f32.mrb[2].mxu0  ;;  %v648_v25 = vpop.f32.mrb[2].mxu1 }
  0xdc   :  { %v347_v21 = vmul.f32 %v195_v17, %v195_v17  ;;  %v198_v22 = vadd.f32 %v642_v15, %v197_v19  ;;  %v477_v23 = vpop.f32.mrb[3].mxu0  ;;  %v297_v26 = vsel %vm296_vm2, %v195_v17, 0.0  ;;  %v505_v29 = vpop.f32.mrb[3].mxu1 }
  0xde   :  { %v298_v27 = vsel %vm296_vm2, %v198_v22, 0.0  ;;  %v348_v28 = vmul.f32 %v198_v22, %v198_v22  ;;  %v372_v31 = vsel %vm296_vm2, %v347_v21, 0.0 }
  0xdf   :  { %v299_v30 = vadd.f32 %v298_v27, %v297_v26 }
  0xe0   :  { %v373_v32 = vsel %vm296_vm2, %v348_v28, 0.0 }
  0xe1   :  { %v374_v33 = vadd.f32 %v373_v32, %v372_v31  ;;  %v202_v34 = vpop.f32.mrb[4].mxu0  ;;  %v655_v38 = vpop.f32.mrb[4].mxu1 }
  0xe2   :  { %v203_v35 = vadd.f32 %v642_v15, %v202_v34  ;;  %v480_v36 = vpop.f32.mrb[5].mxu0  ;;  %v508_v43 = vpop.f32.mrb[5].mxu1 }
  0xe3   :  { %v205_v37 = vpop.f32.mrb[6].mxu0  ;;  %v659_v45 = vpop.f32.mrb[6].mxu1 }
  0xe4   :  { %v300_v39 = vsel %vm296_vm2, %v203_v35, 0.0  ;;  %v349_v40 = vmul.f32 %v203_v35, %v203_v35  ;;  %v206_v41 = vadd.f32 %v642_v15, %v205_v37  ;;  %v481_v42 = vpop.f32.mrb[7].mxu0  ;;  %v509_v49 = vpop.f32.mrb[7].mxu1 }
  0xe5   :  { %v301_v44 = vadd.f32 %v300_v39, %v299_v30 }
  0xe6   :  { %v375_v46 = vsel %vm296_vm2, %v349_v40, 0.0  ;;  %v302_v47 = vsel %vm296_vm2, %v206_v41, 0.0  ;;  %v350_v48 = vmul.f32 %v206_v41, %v206_v41 }
  0xe7   :  { %v376_v50 = vadd.f32 %v375_v46, %v374_v33  ;;  %v303_v51 = vadd.f32 %v302_v47, %v301_v44 }
  0xe8   :  { %v377_v52 = vsel %vm296_vm2, %v350_v48, 0.0 }
  0xe9   :  { %v378_v53 = vadd.f32 %v377_v52, %v376_v50  ;;  %v210_v54 = vpop.f32.mrb[8].mxu0  ;;  %v665_v58 = vpop.f32.mrb[8].mxu1 }
  0xea   :  { %v211_v55 = vadd.f32 %v642_v15, %v210_v54  ;;  %v484_v56 = vpop.f32.mrb[9].mxu0  ;;  %v512_v63 = vpop.f32.mrb[9].mxu1 }
  0xeb   :  { %v213_v57 = vpop.f32.mrb[10].mxu0  ;;  %v669_v1 = vpop.f32.mrb[10].mxu1 }
  0xec   :  { %v304_v59 = vsel %vm296_vm2, %v211_v55, 0.0  ;;  %v351_v60 = vmul.f32 %v211_v55, %v211_v55  ;;  %v214_v61 = vadd.f32 %v642_v15, %v213_v57  ;;  %v485_v62 = vpop.f32.mrb[11].mxu0  ;;  %v513_v5 = vpop.f32.mrb[11].mxu1 }
  0xed   :  { %v305_v0 = vadd.f32 %v304_v59, %v303_v51 }
  0xee   :  { %v379_v2 = vsel %vm296_vm2, %v351_v60, 0.0  ;;  %v306_v3 = vsel %vm296_vm2, %v214_v61, 0.0  ;;  %v352_v4 = vmul.f32 %v214_v61, %v214_v61 }
  0xef   :  { %v380_v6 = vadd.f32 %v379_v2, %v378_v53  ;;  %v307_v7 = vadd.f32 %v306_v3, %v305_v0 }
  0xf0   :  { %v381_v8 = vsel %vm296_vm2, %v352_v4, 0.0 }
  0xf1   :  { %v382_v9 = vadd.f32 %v381_v8, %v380_v6  ;;  %v218_v10 = vpop.f32.mrb[12].mxu0  ;;  %v675_v14 = vpop.f32.mrb[12].mxu1 }
  0xf2   :  { %v219_v11 = vadd.f32 %v642_v15, %v218_v10  ;;  %v488_v12 = vpop.f32.mrb[13].mxu0  ;;  %v516_v21 = vpop.f32.mrb[13].mxu1 }
  0xf3   :  { %v221_v13 = vpop.f32.mrb[14].mxu0  ;;  %v679_v23 = vpop.f32.mrb[14].mxu1  ;;  %v251_v12 = vadd.f32 %v642_v15, %v645_v20  ;;  %v254_v21 = vadd.f32 %v642_v15, %v648_v25  ;;  %v259_v20 = vadd.f32 %v642_v15, %v655_v38 }
  0xf4   :  { %v308_v16 = vsel %vm296_vm2, %v219_v11, 0.0  ;;  %v353_v17 = vmul.f32 %v219_v11, %v219_v11  ;;  %v222_v18 = vadd.f32 %v642_v15, %v221_v13  ;;  %v489_v19 = vpop.f32.mrb[15].mxu0  ;;  %v517_v28 = vpop.f32.mrb[15].mxu1 }
  0xf5   :  { %v309_v22 = vadd.f32 %v308_v16, %v307_v7  ;;  %v361_v28 = vmul.f32 %v251_v12, %v251_v12  ;;  %v324_v25 = vsel %vm296_vm2, %v251_v12, 0.0  ;;  %v326_v38 = vsel %vm296_vm2, %v254_v21, 0.0 }
  0xf6   :  { %v383_v24 = vsel %vm296_vm2, %v353_v17, 0.0  ;;  %v310_v26 = vsel %vm296_vm2, %v222_v18, 0.0  ;;  %v354_v27 = vmul.f32 %v222_v18, %v222_v18 }
  0xf7   :  { %v384_v29 = vadd.f32 %v383_v24, %v382_v9  ;;  %v311_v30 = vadd.f32 %v310_v26, %v309_v22 }
  0xf8   :  { %v385_v31 = vsel %vm296_vm2, %v354_v27, 0.0 }
  0xf9   :  { %v386_v32 = vadd.f32 %v385_v31, %v384_v29  ;;  %v226_v33 = vpop.f32.mrb[16].mxu0  ;;  %v685_v37 = vpop.f32.mrb[16].mxu1 }
  0xfa   :  { %v227_v34 = vadd.f32 %v642_v15, %v226_v33  ;;  %v492_v35 = vpop.f32.mrb[17].mxu0  ;;  %v520_v43 = vpop.f32.mrb[17].mxu1 }
  0xfb   :  { %v229_v36 = vpop.f32.mrb[18].mxu0  ;;  %v689_v46 = vpop.f32.mrb[18].mxu1  ;;  %v362_v35 = vmul.f32 %v254_v21, %v254_v21  ;;  %v363_v43 = vmul.f32 %v259_v20, %v259_v20 }
  0xfc   :  { %v312_v39 = vsel %vm296_vm2, %v227_v34, 0.0  ;;  %v355_v40 = vmul.f32 %v227_v34, %v227_v34  ;;  %v230_v41 = vadd.f32 %v642_v15, %v229_v36  ;;  %v493_v42 = vpop.f32.mrb[19].mxu0  ;;  %v521_v50 = vpop.f32.mrb[19].mxu1  ;;  %v262_v36 = vadd.f32 %v642_v15, %v659_v45 }
  0xfd   :  { %v313_v44 = vadd.f32 %v312_v39, %v311_v30  ;;  %v399_v42 = vsel %vm296_vm2, %v361_v28, 0.0  ;;  %v401_v50 = vsel %vm296_vm2, %v362_v35, 0.0  ;;  %v328_v45 = vsel %vm296_vm2, %v259_v20, 0.0 }
  0xfe   :  { %v387_v47 = vsel %vm296_vm2, %v355_v40, 0.0  ;;  %v314_v48 = vsel %vm296_vm2, %v230_v41, 0.0  ;;  %v356_v49 = vmul.f32 %v230_v41, %v230_v41 }
  0xff   :  { %v388_v51 = vadd.f32 %v387_v47, %v386_v32  ;;  %v315_v52 = vadd.f32 %v314_v48, %v313_v44  ;;  %v267_v44 = vadd.f32 %v642_v15, %v665_v58  ;;  %v270_v47 = vadd.f32 %v642_v15, %v669_v1 }
 0x100   :  { %v389_v53 = vsel %vm296_vm2, %v356_v49, 0.0  ;;  %v275_v58 = vadd.f32 %v642_v15, %v675_v14  ;;  %v283_v14 = vadd.f32 %v642_v15, %v685_v37 }
 0x101   :  { %v390_v54 = vadd.f32 %v389_v53, %v388_v51  ;;  %v234_v55 = vpop.f32.mrb[20].mxu0  ;;  %v695_v60 = vpop.f32.mrb[20].mxu1  ;;  %v364_v51 = vmul.f32 %v262_v36, %v262_v36 }
 0x102   :  { %v235_v56 = vadd.f32 %v642_v15, %v234_v55  ;;  %v496_v57 = vpop.f32.mrb[21].mxu0  ;;  %v524_v2 = vpop.f32.mrb[21].mxu1  ;;  %v330_v55 = vsel %vm296_vm2, %v262_v36, 0.0  ;;  %v369_v37 = vmul.f32 %v283_v14, %v283_v14 }
 0x103   :  { %v237_v59 = vpop.f32.mrb[22].mxu0  ;;  %v293_v4 = vpop.f32.mrb[22].mxu1  ;;  %v366_v57 = vmul.f32 %v270_v47, %v270_v47 }
 0x104   :  { %v316_v61 = vsel %vm296_vm2, %v235_v56, 0.0  ;;  %v357_v62 = vmul.f32 %v235_v56, %v235_v56  ;;  %v238_v63 = vadd.f32 %v642_v15, %v237_v59  ;;  %v497_v0 = vpop.f32.mrb[23].mxu0  ;;  %v525_v8 = vpop.f32.mrb[23].mxu1  ;;  %v365_v56 = vmul.f32 %v267_v44, %v267_v44 }
 0x105   :  { %v317_v3 = vadd.f32 %v316_v61, %v315_v52  ;;  %v405_v61 = vsel %vm296_vm2, %v364_v51, 0.0  ;;  %v334_v4 = vsel %vm296_vm2, %v270_v47, 0.0  ;;  %v415_v28 = vsel %vm296_vm2, %v369_v37, 0.0 }
 0x106   :  { %v391_v5 = vsel %vm296_vm2, %v357_v62, 0.0  ;;  %v318_v6 = vsel %vm296_vm2, %v238_v63, 0.0  ;;  %v358_v7 = vmul.f32 %v238_v63, %v238_v63  ;;  %v332_v62 = vsel %vm296_vm2, %v267_v44, 0.0 }
 0x107   :  { %v392_v9 = vadd.f32 %v391_v5, %v390_v54  ;;  %v319_v10 = vadd.f32 %v318_v6, %v317_v3  ;;  %v403_v54 = vsel %vm296_vm2, %v363_v43, 0.0  ;;  %v278_v63 = vadd.f32 %v642_v15, %v679_v23 }
 0x108   :  { %v393_v11 = vsel %vm296_vm2, %v358_v7, 0.0  ;;  %v407_v3 = vsel %vm296_vm2, %v365_v56, 0.0  ;;  %v367_v5 = vmul.f32 %v275_v58, %v275_v58  ;;  %v409_v6 = vsel %vm296_vm2, %v366_v57, 0.0 }
 0x109   :  { %v394_v13 = vadd.f32 %v393_v11, %v392_v9  ;;  %v242_v16 = vpop.f32.mrb[24].mxu0  ;;  %v336_v9 = vsel %vm296_vm2, %v275_v58, 0.0  ;;  %v286_v23 = vadd.f32 %v642_v15, %v689_v46  ;;  %v291_v11 = vadd.f32 %v642_v15, %v695_v60 }
 0x10a   :  { %v243_v17 = vadd.f32 %v642_v15, %v242_v16  ;;  %v500_v18 = vpop.f32.mrb[25].mxu0  ;;  %v411_v16 = vsel %vm296_vm2, %v367_v5, 0.0 }
 0x10b   :  { %v245_v19 = vpop.f32.mrb[26].mxu0  ;;  %v344_v60 = vsel %vm296_vm2, %v291_v11, 0.0 }
 0x10c   :  { %v320_v22 = vsel %vm296_vm2, %v243_v17, 0.0  ;;  %v359_v24 = vmul.f32 %v243_v17, %v243_v17  ;;  %v246_v26 = vadd.f32 %v642_v15, %v245_v19  ;;  %v501_v27 = vpop.f32.mrb[27].mxu0  ;;  %v338_v17 = vsel %vm296_vm2, %v278_v63, 0.0 }
 0x10d   :  { %v321_v29 = vadd.f32 %v320_v22, %v319_v10  ;;  %v368_v10 = vmul.f32 %v278_v63, %v278_v63  ;;  %v340_v22 = vsel %vm296_vm2, %v283_v14, 0.0  ;;  %v342_v15 = vsel %vm296_vm2, %v286_v23, 0.0 }
 0x10e   :  { %v395_v30 = vsel %vm296_vm2, %v359_v24, 0.0  ;;  %v322_v31 = vsel %vm296_vm2, %v246_v26, 0.0  ;;  %v360_v32 = vmul.f32 %v246_v26, %v246_v26  ;;  %v370_v24 = vmul.f32 %v286_v23, %v286_v23 }
 0x10f   :  { %v396_v33 = vadd.f32 %v395_v30, %v394_v13  ;;  %v323_v34 = vadd.f32 %v322_v31, %v321_v29  ;;  %v413_v21 = vsel %vm296_vm2, %v368_v10, 0.0  ;;  %v371_v26 = vmul.f32 %v291_v11, %v291_v11 }
 0x110   :  { %v397_v39 = vsel %vm296_vm2, %v360_v32, 0.0  ;;  %v417_v30 = vsel %vm296_vm2, %v370_v24, 0.0 }
 0x111   :  { %v325_v40 = vadd.f32 %v324_v25, %v323_v34  ;;  %v398_v41 = vadd.f32 %v397_v39, %v396_v33  ;;  %v419_v31 = vsel %vm296_vm2, %v371_v26, 0.0 }
 0x113   :  { %v327_v48 = vadd.f32 %v326_v38, %v325_v40  ;;  %v400_v49 = vadd.f32 %v399_v42, %v398_v41 }
 0x115   :  { %v329_v52 = vadd.f32 %v328_v45, %v327_v48  ;;  %v402_v53 = vadd.f32 %v401_v50, %v400_v49 }
 0x117   :  { %v404_v59 = vadd.f32 %v403_v54, %v402_v53  ;;  %v331_v1 = vadd.f32 %v330_v55, %v329_v52 }
 0x119   :  { %v333_v0 = vadd.f32 %v332_v62, %v331_v1  ;;  %v406_v2 = vadd.f32 %v405_v61, %v404_v59 }
 0x11b   :  { %v335_v7 = vadd.f32 %v334_v4, %v333_v0  ;;  %v408_v8 = vadd.f32 %v407_v3, %v406_v2 }
 0x11d   :  { %v337_v12 = vadd.f32 %v336_v9, %v335_v7  ;;  %v410_v13 = vadd.f32 %v409_v6, %v408_v8 }
 0x11f   :  { %v412_v18 = vadd.f32 %v411_v16, %v410_v13  ;;  %v339_v19 = vadd.f32 %v338_v17, %v337_v12 }
 0x121   :  { %v414_v27 = vadd.f32 %v413_v21, %v412_v18  ;;  %v341_v46 = vadd.f32 %v340_v22, %v339_v19 }
 0x123   :  { %v416_v29 = vadd.f32 %v415_v28, %v414_v27  ;;  %v343_v20 = vadd.f32 %v342_v15, %v341_v46 }
 0x125   :  { %v418_v32 = vadd.f32 %v417_v30, %v416_v29  ;;  %v345_v33 = vadd.f32 %v344_v60, %v343_v20 }
 0x127   :  { %346 = vst.msk [vmem:[%s763_s3] sm:$0xff] %vm296_vm2, %v345_v33  ;;  %v420_v34 = vadd.f32 %v419_v31, %v418_v32 }
 0x129   :  { %421 = vst.msk [vmem:[%s764_s4] sm:$0xff] %vm296_vm2, %v420_v34 }

// kernel: autoencoder_forward.4
= control target key start
LH: loop header
LB: loop body
LE: loop exit
PB: predicated region body
PF: predicated region fallthrough
CT: control target
= control target key end

     0   :  { %v1533_v0 = vmov 0.0   ;;  %vm1534_vm0 = vmmov 0   ;;  %vm132_vm1 = vcmask 130048   ;;  %vm485_vm2 = vcmask 523264   ;;  %s1991_s1 = inlined_call_operand.vmem [shape: bf16[16,64], index: 1, kind: input, shape index: {}]   ;;  %s1992_s0 = inlined_call_operand.vmem [shape: bf16[200,16], index: 0, kind: input, shape index: {}]   ;;  %s1993_s3 = inlined_call_operand.vmem [shape: bf16[64,32], index: 3, kind: input, shape index: {}]   ;;  %s1994_s5 = inlined_call_operand.vmem [shape: bf16[32,64], index: 5, kind: input, shape index: {}]   ;;  %s1995_s2 = inlined_call_operand.vmem [shape: f32[1,64], index: 2, kind: input, shape index: {}]   ;;  %s1996_s4 = inlined_call_operand.vmem [shape: f32[1,32], index: 4, kind: input, shape index: {}]   ;;  %s1997_s6 = inlined_call_operand.vmem [shape: f32[1,64], index: 6, kind: input, shape index: {}]   ;;  %s1998_s7 = inlined_call_operand.vmem [shape: f32[1,8,64], index: 7, kind: output, shape index: {0}]   ;;  %s1999_s8 = inlined_call_operand.vmem [shape: f32[1,8,64], index: 8, kind: output, shape index: {1}]  }
   0x1   :  { %1239 = vmatprep.subr.bf16.mxu0 %v1533_v0  ;;  %v1413_v1 = vld [vmem:[%s1991_s1] sm:$0xff]   ;;  %1241 = vmatprep.mubr.msk.bf16.mxu0 %vm1534_vm0, %v1533_v0  ;;  %v1420_v3 = vld [vmem:[%s1992_s0 + $0x38] sm:$0xff]   ;;  %v1415_v4 = vld [vmem:[%s1992_s0 + $0x8] sm:$0xff]   ;;  %vm822_vm3 = vcmask 261120  }
   0x2   :  { %v1414_v2 = vld [vmem:[%s1992_s0] sm:$0xff]   ;;  %1409 = vmatprep.subr.bf16.mxu1 %v1533_v0  ;;  %1269 = vmatprep.mubr.msk.bf16.mxu1 %vm1534_vm0, %v1533_v0  ;;  %v1428_v7 = vld [vmem:[%s1993_s3 + $0x8] sm:$0xff]   ;;  %v1416_v8 = vld [vmem:[%s1992_s0 + $0x10] sm:$0xff]  }
   0x3   :  { %1240 = vmatpush3.bf16.msra.mxu0 %v1413_v1  ;;  %1410 = vmatpush3.bf16.msra.mxu1 %v1413_v1  ;;  %v1422_v5 = vld [vmem:[%s1992_s0 + $0x40] sm:$0xff]   ;;  %v1423_v9 = vld [vmem:[%s1992_s0 + $0x48] sm:$0xff]   ;;  %v1417_v10 = vld [vmem:[%s1992_s0 + $0x18] sm:$0xff]  }
   0x4   :  { %1293 = vmatprep.subr.bf16.mxu1 %v1533_v0  ;;  %1353 = vmatprep.subr.bf16.mxu0 %v1533_v0  ;;  %v1427_v6 = vld [vmem:[%s1993_s3] sm:$0xff]   ;;  %v1424_v11 = vld [vmem:[%s1992_s0 + $0x50] sm:$0xff]   ;;  %v1425_v13 = vld [vmem:[%s1992_s0 + $0x58] sm:$0xff]  }
   0x5   :  { %v1418_v12 = vld [vmem:[%s1992_s0 + $0x20] sm:$0xff]   ;;  %v1419_v14 = vld [vmem:[%s1992_s0 + $0x28] sm:$0xff]   ;;  %v1421_v16 = vld [vmem:[%s1992_s0 + $0x30] sm:$0xff]  }
   0x6   :  { %1242 = vmatmul.mubr.msk.bf16.vlgmr.msra.gmra.mrb[0].mxu0 %vm132_vm1, %v1414_v2  ;;  %1270 = vmatmul.mubr.msk.bf16.vlgmr.msra.gmra.mrb[0].mxu1 %vm132_vm1, %v1420_v3  ;;  %v1426_v15 = vld [vmem:[%s1992_s0 + $0x60] ss:$0 sps:$4 sm:$0xff]   ;;  %v1429_v17 = vld [vmem:[%s1993_s3 + $0x10] sm:$0xff]   ;;  %v1430_v18 = vld [vmem:[%s1993_s3 + $0x18] sm:$0xff]  }
   0x7   :  { %1245 = vmatprep.mubr.msk.bf16.mxu0 %vm1534_vm0, %v1533_v0  ;;  %1273 = vmatprep.mubr.msk.bf16.mxu1 %vm1534_vm0, %v1533_v0  ;;  %v1431_v19 = vld [vmem:[%s1994_s5] sm:$0xff]   ;;  %v1432_v20 = vld [vmem:[%s1994_s5 + $0x8] sm:$0xff]  }
   0x8   :  { %1294 = vmatpush3.bf16.msra.mxu1 %v1427_v6  ;;  %1354 = vmatpush3.bf16.msra.mxu0 %v1431_v19  ;;  %v1694_v21 = vld [vmem:[%s1995_s2] ss:$0 sm:$0xff] }
   0x9   :  { %1295 = vmatprep.subr.bf16.mxu1 %v1533_v0  ;;  %1355 = vmatprep.subr.bf16.mxu0 %v1533_v0 }
   0xc   :  { %1296 = vmatpush3.bf16.msra.mxu1 %v1428_v7  ;;  %1356 = vmatpush3.bf16.msra.mxu0 %v1432_v20 }
   0xd   :  { %1297 = vmatprep.subr.bf16.mxu1 %v1533_v0 }
   0xe   :  { %1246 = vmatmul.mubr.msk.bf16.gmra.mrb[4].mxu0 %vm132_vm1, %v1415_v4  ;;  %1274 = vmatmul.mubr.msk.bf16.gmra.mrb[4].mxu1 %vm132_vm1, %v1422_v5 }
   0xf   :  { %1249 = vmatprep.mubr.msk.bf16.mxu0 %vm1534_vm0, %v1533_v0  ;;  %1277 = vmatprep.mubr.msk.bf16.mxu1 %vm1534_vm0, %v1533_v0 }
  0x10   :  { %1298 = vmatpush3.bf16.msra.mxu1 %v1429_v17 }
  0x11   :  { %1299 = vmatprep.subr.bf16.mxu1 %v1533_v0 }
  0x14   :  { %1300 = vmatpush3.bf16.msra.mxu1 %v1430_v18 }
  0x16   :  { %1250 = vmatmul.mubr.msk.bf16.gmra.mrb[8].mxu0 %vm132_vm1, %v1416_v8  ;;  %1278 = vmatmul.mubr.msk.bf16.gmra.mrb[8].mxu1 %vm132_vm1, %v1423_v9 }
  0x17   :  { %1253 = vmatprep.mubr.msk.bf16.mxu0 %vm1534_vm0, %v1533_v0  ;;  %1281 = vmatprep.mubr.msk.bf16.mxu1 %vm1534_vm0, %v1533_v0 }
  0x1e   :  { %1254 = vmatmul.mubr.msk.bf16.gmra.mrb[12].mxu0 %vm132_vm1, %v1417_v10  ;;  %1282 = vmatmul.mubr.msk.bf16.gmra.mrb[12].mxu1 %vm132_vm1, %v1424_v11 }
  0x1f   :  { %1257 = vmatprep.mubr.msk.bf16.mxu0 %vm1534_vm0, %v1533_v0  ;;  %1285 = vmatprep.mubr.msk.bf16.mxu1 %vm1534_vm0, %v1533_v0 }
  0x26   :  { %1258 = vmatmul.mubr.msk.bf16.gmra.mrb[16].mxu0 %vm132_vm1, %v1418_v12  ;;  %1286 = vmatmul.mubr.msk.bf16.gmra.mrb[16].mxu1 %vm132_vm1, %v1425_v13 }
  0x27   :  { %1261 = vmatprep.mubr.msk.bf16.mxu0 %vm1534_vm0, %v1533_v0  ;;  %1289 = vmatprep.mubr.msk.bf16.mxu1 %vm1534_vm0, %v1533_v0 }
  0x2e   :  { %1262 = vmatmul.mubr.msk.bf16.gmra.mrb[20].mxu0 %vm132_vm1, %v1419_v14  ;;  %1290 = vmatmul.mubr.msk.bf16.gmra.mrb[20].mxu1 %vm132_vm1, %v1426_v15 }
  0x2f   :  { %1265 = vmatprep.mubr.msk.bf16.mxu0 %vm1534_vm0, %v1533_v0  ;;  %1301 = vmatprep.mubr.msk.bf16.mxu1 %vm1534_vm0, %v1533_v0 }
  0x36   :  { %1266 = vmatmul.mubr.msk.bf16.gmra.mrb[24].mxu0 %vm132_vm1, %v1421_v16 }
  0x37   :  { %1357 = vmatprep.mubr.msk.bf16.mxu0 %vm1534_vm0, %v1533_v0 }
  0xd9   :  { %v206_v22 = vpop.f32.mrb[0].mxu0  ;;  %v262_v29 = vpop.f32.mrb[0].mxu1 }
  0xda   :  { %v207_v23 = vadd.f32 %v1694_v21, %v206_v22  ;;  %v1243_v24 = vpop.f32.mrb[1].mxu0  ;;  %v263_v31 = vadd.f32 %v1694_v21, %v262_v29  ;;  %v1271_v32 = vpop.f32.mrb[1].mxu1 }
  0xdb   :  { %v209_v25 = vpop.f32.mrb[2].mxu0  ;;  %v265_v33 = vpop.f32.mrb[2].mxu1 }
  0xdc   :  { %v333_v26 = vmul.f32 0.70710677, %v207_v23  ;;  %v210_v27 = vadd.f32 %v1694_v21, %v209_v25  ;;  %v1244_v28 = vpop.f32.mrb[3].mxu0  ;;  %v347_v34 = vmul.f32 0.70710677, %v263_v31  ;;  %v266_v35 = vadd.f32 %v1694_v21, %v265_v33  ;;  %v1272_v36 = vpop.f32.mrb[3].mxu1 }
  0xdd   :  { %v308_v60 = vmul.f32 0.5, %v207_v23  ;;  %v322_v1 = vmul.f32 0.5, %v263_v31 }
  0xde   :  { %1433 = verf.f32 %v333_v26  ;;  %v334_v30 = vmul.f32 0.70710677, %v210_v27  ;;  %v348_v40 = vmul.f32 0.70710677, %v266_v35  ;;  %v309_v61 = vmul.f32 0.5, %v210_v27 }
  0xdf   :  { %v323_v9 = vmul.f32 0.5, %v266_v35 }
  0xe0   :  { %1435 = verf.f32 %v334_v30 }
  0xe1   :  { %v214_v37 = vpop.f32.mrb[4].mxu0  ;;  %1437 = verf.f32 %v347_v34  ;;  %v270_v45 = vpop.f32.mrb[4].mxu1 }
  0xe2   :  { %v215_v38 = vadd.f32 %v1694_v21, %v214_v37  ;;  %v1247_v39 = vpop.f32.mrb[5].mxu0  ;;  %1439 = verf.f32 %v348_v40  ;;  %v271_v47 = vadd.f32 %v1694_v21, %v270_v45  ;;  %v1275_v48 = vpop.f32.mrb[5].mxu1 }
  0xe3   :  { %v217_v41 = vpop.f32.mrb[6].mxu0  ;;  %v273_v49 = vpop.f32.mrb[6].mxu1 }
  0xe4   :  { %v335_v42 = vmul.f32 0.70710677, %v215_v38  ;;  %v218_v43 = vadd.f32 %v1694_v21, %v217_v41  ;;  %v1248_v44 = vpop.f32.mrb[7].mxu0  ;;  %v349_v51 = vmul.f32 0.70710677, %v271_v47  ;;  %v274_v52 = vadd.f32 %v1694_v21, %v273_v49  ;;  %v1276_v53 = vpop.f32.mrb[7].mxu1 }
  0xe5   :  { %v310_v28 = vmul.f32 0.5, %v215_v38  ;;  %v324_v36 = vmul.f32 0.5, %v271_v47 }
  0xe6   :  { %1441 = verf.f32 %v335_v42  ;;  %v336_v46 = vmul.f32 0.70710677, %v218_v43  ;;  %v350_v59 = vmul.f32 0.70710677, %v274_v52  ;;  %v311_v32 = vmul.f32 0.5, %v218_v43 }
  0xe7   :  { %v325_v45 = vmul.f32 0.5, %v274_v52 }
  0xe8   :  { %v1434_v50 = vpop.eup %1433  ;;  %1443 = verf.f32 %v336_v46 }
  0xe9   :  { %v383_v54 = vadd.f32 1.0, %v1434_v50  ;;  %v222_v55 = vpop.f32.mrb[8].mxu0  ;;  %1445 = verf.f32 %v349_v51  ;;  %v278_v10 = vpop.f32.mrb[8].mxu1 }
  0xea   :  { %v1436_v56 = vpop.eup %1435  ;;  %v1705_v57 = vadd.f32 %v1694_v21, %v222_v55  ;;  %v1251_v58 = vpop.f32.mrb[9].mxu0  ;;  %1447 = verf.f32 %v350_v59  ;;  %v1713_v13 = vadd.f32 %v1694_v21, %v278_v10 }
  0xeb   :  { %v384_v62 = vadd.f32 1.0, %v1436_v56  ;;  %v225_v63 = vpop.f32.mrb[10].mxu0  ;;  %v1438_v2 = vpop.eup %1437  ;;  %v408_v6 = vmul.f32 %v383_v54, %v308_v60 }
  0xec   :  { %v337_v3 = vmul.f32 0.70710677, %v1705_v57  ;;  %v1709_v4 = vadd.f32 %v1694_v21, %v225_v63  ;;  %v1252_v5 = vpop.f32.mrb[11].mxu0  ;;  %v397_v8 = vadd.f32 1.0, %v1438_v2  ;;  %v1440_v11 = vpop.eup %1439  ;;  %v351_v20 = vmul.f32 0.70710677, %v1713_v13 }
  0xed   :  { %v409_v7 = vmul.f32 %v384_v62, %v309_v61  ;;  %v1279_v14 = vpop.f32.mrb[9].mxu1  ;;  %v398_v17 = vadd.f32 1.0, %v1440_v11  ;;  %v312_v63 = vmul.f32 0.5, %v1705_v57 }
  0xee   :  { %1449 = verf.f32 %v337_v3  ;;  %v338_v12 = vmul.f32 0.70710677, %v1709_v4  ;;  %v1715_v16 = vmul.f32 %v397_v8, %v322_v1  ;;  %v281_v18 = vpop.f32.mrb[10].mxu1  ;;  %v313_v5 = vmul.f32 0.5, %v1709_v4 }
  0xef   :  { %v433_v15 = vpack.c.bf16 %v409_v7, %v408_v6  ;;  %v1719_v22 = vadd.f32 %v1694_v21, %v281_v18  ;;  %v1280_v23 = vpop.f32.mrb[11].mxu1  ;;  %v1722_v26 = vmul.f32 %v398_v17, %v323_v9  ;;  %v326_v9 = vmul.f32 0.5, %v1713_v13 }
  0xf0   :  { %v1442_v19 = vpop.eup %1441  ;;  %1451 = verf.f32 %v338_v12 }
  0xf1   :  { %v385_v24 = vadd.f32 1.0, %v1442_v19  ;;  %v230_v25 = vpop.f32.mrb[12].mxu0  ;;  %1302 = vmatmul.mubr.msk.bf16.vlgmr.msra.gmra.mrb[24].mxu1 %vm485_vm2, %v433_v15  ;;  %1453 = verf.f32 %v351_v20  ;;  %v352_v31 = vmul.f32 0.70710677, %v1719_v22  ;;  %v440_v35 = vpack.c.bf16 %v1722_v26, %v1715_v16  ;;  %v286_v46 = vpop.f32.mrb[12].mxu1 }
  0xf2   :  { %v1444_v27 = vpop.eup %1443  ;;  %v1725_v29 = vadd.f32 %v1694_v21, %v230_v25  ;;  %v1255_v30 = vpop.f32.mrb[13].mxu0  ;;  %1305 = vmatprep.mubr.msk.bf16.mxu1 %vm1534_vm0, %v1533_v0  ;;  %v1738_v49 = vadd.f32 %v1694_v21, %v286_v46  ;;  %v327_v4 = vmul.f32 0.5, %v1719_v22 }
  0xf3   :  { %v386_v33 = vadd.f32 1.0, %v1444_v27  ;;  %v233_v34 = vpop.f32.mrb[14].mxu0  ;;  %v1446_v37 = vpop.eup %1445  ;;  %1455 = verf.f32 %v352_v31  ;;  %v410_v41 = vmul.f32 %v385_v24, %v310_v28 }
  0xf4   :  { %v339_v38 = vmul.f32 0.70710677, %v1725_v29  ;;  %v1734_v39 = vadd.f32 %v1694_v21, %v233_v34  ;;  %v1256_v40 = vpop.f32.mrb[15].mxu0  ;;  %v399_v44 = vadd.f32 1.0, %v1446_v37  ;;  %v1448_v43 = vpop.eup %1447  ;;  %v353_v56 = vmul.f32 0.70710677, %v1738_v49 }
  0xf5   :  { %v411_v42 = vmul.f32 %v386_v33, %v311_v32  ;;  %v1283_v47 = vpop.f32.mrb[13].mxu1  ;;  %v400_v53 = vadd.f32 1.0, %v1448_v43 }
  0xf6   :  { %1457 = verf.f32 %v339_v38  ;;  %v340_v48 = vmul.f32 0.70710677, %v1734_v39  ;;  %v1740_v51 = vmul.f32 %v399_v44, %v324_v36  ;;  %v289_v54 = vpop.f32.mrb[14].mxu1  ;;  %v314_v38 = vmul.f32 0.5, %v1725_v29 }
  0xf7   :  { %v434_v50 = vpack.c.bf16 %v411_v42, %v410_v41  ;;  %v1744_v52 = vadd.f32 %v1694_v21, %v289_v54  ;;  %v1284_v58 = vpop.f32.mrb[15].mxu1  ;;  %v1747_v61 = vmul.f32 %v400_v53, %v325_v45  ;;  %v315_v44 = vmul.f32 0.5, %v1734_v39 }
  0xf8   :  { %v1450_v55 = vpop.eup %1449  ;;  %1459 = verf.f32 %v340_v48  ;;  %v328_v48 = vmul.f32 0.5, %v1738_v49 }
  0xf9   :  { %v387_v59 = vadd.f32 1.0, %v1450_v55  ;;  %v238_v60 = vpop.f32.mrb[16].mxu0  ;;  %1306 = vmatmul.mubr.msk.bf16.gmra.mrb[28].mxu1 %vm485_vm2, %v434_v50  ;;  %1461 = verf.f32 %v353_v56  ;;  %v354_v3 = vmul.f32 0.70710677, %v1744_v52  ;;  %v441_v8 = vpack.c.bf16 %v1747_v61, %v1740_v51  ;;  %v294_v18 = vpop.f32.mrb[16].mxu1 }
  0xfa   :  { %v1452_v62 = vpop.eup %1451  ;;  %v1751_v1 = vadd.f32 %v1694_v21, %v238_v60  ;;  %v1259_v2 = vpop.f32.mrb[17].mxu0  ;;  %1309 = vmatprep.mubr.msk.bf16.mxu1 %vm1534_vm0, %v1533_v0  ;;  %v295_v13 = vadd.f32 %v1694_v21, %v294_v18  ;;  %v329_v58 = vmul.f32 0.5, %v1744_v52 }
  0xfb   :  { %v388_v6 = vadd.f32 1.0, %v1452_v62  ;;  %v241_v7 = vpop.f32.mrb[18].mxu0  ;;  %v1454_v57 = vpop.eup %1453  ;;  %1463 = verf.f32 %v354_v3  ;;  %v412_v14 = vmul.f32 %v387_v59, %v312_v63 }
  0xfc   :  { %v341_v10 = vmul.f32 0.70710677, %v1751_v1  ;;  %v1762_v11 = vadd.f32 %v1694_v21, %v241_v7  ;;  %v1260_v12 = vpop.f32.mrb[19].mxu0  ;;  %v401_v17 = vadd.f32 1.0, %v1454_v57  ;;  %v1287_v23 = vpop.f32.mrb[17].mxu1 }
  0xfd   :  { %v413_v15 = vmul.f32 %v388_v6, %v313_v5  ;;  %v1456_v19 = vpop.eup %1455  ;;  %v297_v28 = vpop.f32.mrb[18].mxu1  ;;  %v355_v31 = vmul.f32 0.70710677, %v295_v13  ;;  %v316_v12 = vmul.f32 0.5, %v1751_v1 }
  0xfe   :  { %1465 = verf.f32 %v341_v10  ;;  %v342_v20 = vmul.f32 0.70710677, %v1762_v11  ;;  %v1767_v25 = vmul.f32 %v401_v17, %v326_v9  ;;  %v402_v27 = vadd.f32 1.0, %v1456_v19  ;;  %v1288_v33 = vpop.f32.mrb[19].mxu1 }
  0xff   :  { %v435_v24 = vpack.c.bf16 %v413_v15, %v412_v14  ;;  %v298_v32 = vadd.f32 %v1694_v21, %v297_v28  ;;  %v317_v17 = vmul.f32 0.5, %v1762_v11 }
 0x100   :  { %v1458_v30 = vpop.eup %1457  ;;  %1467 = verf.f32 %v342_v20  ;;  %v1771_v36 = vmul.f32 %v402_v27, %v327_v4  ;;  %v330_v20 = vmul.f32 0.5, %v295_v13 }
 0x101   :  { %v389_v22 = vadd.f32 1.0, %v1458_v30  ;;  %v246_v34 = vpop.f32.mrb[20].mxu0  ;;  %1310 = vmatmul.mubr.msk.bf16.gmra.mrb[32].mxu1 %vm485_vm2, %v435_v24  ;;  %1469 = verf.f32 %v355_v31  ;;  %v356_v42 = vmul.f32 0.70710677, %v298_v32  ;;  %v302_v39 = vpop.f32.mrb[20].mxu1  ;;  %v331_v33 = vmul.f32 0.5, %v298_v32 }
 0x102   :  { %v1460_v37 = vpop.eup %1459  ;;  %v1775_v40 = vadd.f32 %v1694_v21, %v246_v34  ;;  %v1263_v41 = vpop.f32.mrb[21].mxu0  ;;  %1313 = vmatprep.mubr.msk.bf16.mxu1 %vm1534_vm0, %v1533_v0  ;;  %v442_v43 = vpack.c.bf16 %v1771_v36, %v1767_v25  ;;  %v1787_v62 = vadd.f32 %v1694_v21, %v302_v39 }
 0x103   :  { %v390_v45 = vadd.f32 1.0, %v1460_v37  ;;  %v249_v46 = vpop.f32.mrb[22].mxu0  ;;  %v1462_v47 = vpop.eup %1461  ;;  %1471 = verf.f32 %v356_v42  ;;  %v414_v54 = vmul.f32 %v389_v22, %v314_v38 }
 0x104   :  { %v343_v29 = vmul.f32 0.70710677, %v1775_v40  ;;  %v250_v50 = vadd.f32 %v1694_v21, %v249_v46  ;;  %v1264_v53 = vpop.f32.mrb[23].mxu0  ;;  %v403_v56 = vadd.f32 1.0, %v1462_v47  ;;  %v1291_v49 = vpop.f32.mrb[21].mxu1  ;;  %v332_v26 = vmul.f32 0.5, %v1787_v62 }
 0x105   :  { %v415_v55 = vmul.f32 %v390_v45, %v315_v44  ;;  %v1464_v59 = vpop.eup %1463  ;;  %v305_v5 = vpop.f32.mrb[22].mxu1 }
 0x106   :  { %1473 = verf.f32 %v343_v29  ;;  %v344_v60 = vmul.f32 0.70710677, %v250_v50  ;;  %v1789_v2 = vmul.f32 %v403_v56, %v328_v48  ;;  %v404_v3 = vadd.f32 1.0, %v1464_v59  ;;  %v1292_v7 = vpop.f32.mrb[23].mxu1 }
 0x107   :  { %v436_v63 = vpack.c.bf16 %v415_v55, %v414_v54  ;;  %v319_v45 = vmul.f32 0.5, %v250_v50  ;;  %v357_v50 = vmul.f32 0.70710677, %v1787_v62 }
 0x108   :  { %v1466_v6 = vpop.eup %1465  ;;  %1475 = verf.f32 %v344_v60  ;;  %v429_v52 = vmul.f32 %v404_v3, %v329_v58 }
 0x109   :  { %v391_v9 = vadd.f32 1.0, %v1466_v6  ;;  %v254_v57 = vpop.f32.mrb[24].mxu0  ;;  %1314 = vmatmul.mubr.msk.bf16.gmra.mrb[36].mxu1 %vm485_vm2, %v436_v63 }
 0x10a   :  { %v1468_v10 = vpop.eup %1467  ;;  %v255_v14 = vadd.f32 %v1694_v21, %v254_v57  ;;  %v1267_v15 = vpop.f32.mrb[25].mxu0  ;;  %1317 = vmatprep.mubr.msk.bf16.mxu1 %vm1534_vm0, %v1533_v0  ;;  %v443_v19 = vpack.c.bf16 %v429_v52, %v1789_v2 }
 0x10b   :  { %v392_v4 = vadd.f32 1.0, %v1468_v10  ;;  %v257_v18 = vpop.f32.mrb[26].mxu0  ;;  %v1470_v23 = vpop.eup %1469  ;;  %v416_v30 = vmul.f32 %v391_v9, %v316_v12 }
 0x10c   :  { %v345_v24 = vmul.f32 0.70710677, %v255_v14  ;;  %v258_v27 = vadd.f32 %v1694_v21, %v257_v18  ;;  %v1268_v28 = vpop.f32.mrb[27].mxu0  ;;  %v405_v31 = vadd.f32 1.0, %v1470_v23  ;;  %v318_v21 = vmul.f32 0.5, %v1775_v40 }
 0x10d   :  { %v417_v1 = vmul.f32 %v392_v4, %v317_v17  ;;  %v1472_v22 = vpop.eup %1471  ;;  %v320_v56 = vmul.f32 0.5, %v255_v14 }
 0x10e   :  { %1477 = verf.f32 %v345_v24  ;;  %v346_v34 = vmul.f32 0.70710677, %v258_v27  ;;  %v430_v38 = vmul.f32 %v405_v31, %v330_v20  ;;  %v406_v11 = vadd.f32 1.0, %v1472_v22 }
 0x10f   :  { %v437_v37 = vpack.c.bf16 %v417_v1, %v416_v30  ;;  %v321_v58 = vmul.f32 0.5, %v258_v27 }
 0x110   :  { %v1474_v41 = vpop.eup %1473  ;;  %1479 = verf.f32 %v346_v34  ;;  %v431_v13 = vmul.f32 %v406_v11, %v331_v33 }
 0x111   :  { %v393_v42 = vadd.f32 1.0, %v1474_v41  ;;  %1318 = vmatmul.mubr.msk.bf16.gmra.mrb[40].mxu1 %vm485_vm2, %v437_v37  ;;  %1481 = verf.f32 %v357_v50 }
 0x112   :  { %v1476_v44 = vpop.eup %1475  ;;  %1321 = vmatprep.mubr.msk.bf16.mxu1 %vm1534_vm0, %v1533_v0  ;;  %v444_v46 = vpack.c.bf16 %v431_v13, %v430_v38 }
 0x113   :  { %v394_v32 = vadd.f32 1.0, %v1476_v44  ;;  %v418_v48 = vmul.f32 %v393_v42, %v318_v21 }
 0x115   :  { %v419_v47 = vmul.f32 %v394_v32, %v319_v45 }
 0x117   :  { %v438_v29 = vpack.c.bf16 %v419_v47, %v418_v48 }
 0x118   :  { %v1478_v53 = vpop.eup %1477 }
 0x119   :  { %v395_v54 = vadd.f32 1.0, %v1478_v53  ;;  %1322 = vmatmul.mubr.msk.bf16.gmra.mrb[44].mxu1 %vm485_vm2, %v438_v29 }
 0x11a   :  { %v1480_v55 = vpop.eup %1479  ;;  %1325 = vmatprep.mubr.msk.bf16.mxu1 %vm1534_vm0, %v1533_v0 }
 0x11b   :  { %v396_v39 = vadd.f32 1.0, %v1480_v55  ;;  %v420_v59 = vmul.f32 %v395_v54, %v320_v56  ;;  %v1482_v16 = vpop.eup %1481 }
 0x11d   :  { %v421_v60 = vmul.f32 %v396_v39, %v321_v58 }
 0x11f   :  { %v439_v40 = vpack.c.bf16 %v421_v60, %v420_v59 }
 0x121   :  { %1326 = vmatmul.mubr.msk.bf16.gmra.mrb[48].mxu1 %vm485_vm2, %v439_v40 }
 0x122   :  { %1329 = vmatprep.mubr.msk.bf16.mxu1 %vm1534_vm0, %v1533_v0 }
 0x129   :  { %1330 = vmatmul.mubr.msk.bf16.gmra.mrb[52].mxu1 %vm485_vm2, %v440_v35  ;;  %v407_v35 = vadd.f32 1.0, %v1482_v16 }
 0x12a   :  { %1333 = vmatprep.mubr.msk.bf16.mxu1 %vm1534_vm0, %v1533_v0 }
 0x12b   :  { %v432_v51 = vmul.f32 %v407_v35, %v332_v26 }
 0x12d   :  { %v445_v61 = vpack.c.bf16 %v432_v51, %v432_v51 }
 0x131   :  { %1334 = vmatmul.mubr.msk.bf16.gmra.mrb[56].mxu1 %vm485_vm2, %v441_v8  ;;  %v1839_v8 = vld [vmem:[%s1996_s4] ss:$0 sm:$0xff] }
 0x132   :  { %1337 = vmatprep.mubr.msk.bf16.mxu1 %vm1534_vm0, %v1533_v0 }
 0x139   :  { %1338 = vmatmul.mubr.msk.bf16.gmra.mrb[60].mxu1 %vm485_vm2, %v442_v43 }
 0x13a   :  { %1341 = vmatprep.mubr.msk.bf16.mxu1 %vm1534_vm0, %v1533_v0 }
 0x141   :  { %1342 = vmatmul.mubr.msk.bf16.gmra.mrb[64].mxu1 %vm485_vm2, %v443_v19 }
 0x142   :  { %1345 = vmatprep.mubr.msk.bf16.mxu1 %vm1534_vm0, %v1533_v0 }
 0x149   :  { %1346 = vmatmul.mubr.msk.bf16.gmra.mrb[68].mxu1 %vm485_vm2, %v444_v46 }
 0x14a   :  { %1349 = vmatprep.mubr.msk.bf16.mxu1 %vm1534_vm0, %v1533_v0 }
 0x151   :  { %1350 = vmatmul.mubr.msk.bf16.gmra.mrb[72].mxu1 %vm485_vm2, %v445_v61 }
 0x1c4   :  { %v559_v25 = vpop.f32.mrb[24].mxu1 }
 0x1c5   :  { %v560_v36 = vadd.f32 %v1839_v8, %v559_v25  ;;  %v1303_v43 = vpop.f32.mrb[25].mxu1 }
 0x1c6   :  { %v562_v62 = vpop.f32.mrb[26].mxu1 }
 0x1c7   :  { %v686_v49 = vmul.f32 0.70710677, %v560_v36  ;;  %v563_v63 = vadd.f32 %v1839_v8, %v562_v62  ;;  %v1304_v2 = vpop.f32.mrb[27].mxu1  ;;  %v661_v20 = vmul.f32 0.5, %v560_v36 }
 0x1c9   :  { %1483 = verf.f32 %v686_v49  ;;  %v687_v3 = vmul.f32 0.70710677, %v563_v63  ;;  %v662_v23 = vmul.f32 0.5, %v563_v63 }
 0x1cb   :  { %1485 = verf.f32 %v687_v3 }
 0x1cc   :  { %v567_v5 = vpop.f32.mrb[28].mxu1 }
 0x1cd   :  { %v568_v6 = vadd.f32 %v1839_v8, %v567_v5  ;;  %v1307_v7 = vpop.f32.mrb[29].mxu1 }
 0x1ce   :  { %v570_v9 = vpop.f32.mrb[30].mxu1 }
 0x1cf   :  { %v688_v57 = vmul.f32 0.70710677, %v568_v6  ;;  %v571_v52 = vadd.f32 %v1839_v8, %v570_v9  ;;  %v1308_v10 = vpop.f32.mrb[31].mxu1  ;;  %v663_v44 = vmul.f32 0.5, %v568_v6 }
 0x1d1   :  { %1487 = verf.f32 %v688_v57  ;;  %v689_v12 = vmul.f32 0.70710677, %v571_v52  ;;  %v664_v21 = vmul.f32 0.5, %v571_v52 }
 0x1d3   :  { %v1484_v14 = vpop.eup %1483  ;;  %1489 = verf.f32 %v689_v12 }
 0x1d4   :  { %v736_v15 = vadd.f32 1.0, %v1484_v14  ;;  %v575_v17 = vpop.f32.mrb[32].mxu1 }
 0x1d5   :  { %v1486_v4 = vpop.eup %1485  ;;  %v576_v18 = vadd.f32 %v1839_v8, %v575_v17  ;;  %v1311_v19 = vpop.f32.mrb[33].mxu1 }
 0x1d6   :  { %v737_v24 = vadd.f32 1.0, %v1486_v4  ;;  %v578_v27 = vpop.f32.mrb[34].mxu1  ;;  %v761_v31 = vmul.f32 %v736_v15, %v661_v20 }
 0x1d7   :  { %v690_v28 = vmul.f32 0.70710677, %v576_v18  ;;  %v579_v30 = vadd.f32 %v1839_v8, %v578_v27  ;;  %v1312_v1 = vpop.f32.mrb[35].mxu1  ;;  %v665_v50 = vmul.f32 0.5, %v576_v18 }
 0x1d8   :  { %v762_v33 = vmul.f32 %v737_v24, %v662_v23 }
 0x1d9   :  { %1491 = verf.f32 %v690_v28  ;;  %v691_v22 = vmul.f32 0.70710677, %v579_v30  ;;  %v666_v16 = vmul.f32 0.5, %v579_v30 }
 0x1da   :  { %v786_v34 = vpack.c.bf16 %v762_v33, %v761_v31 }
 0x1db   :  { %v1488_v37 = vpop.eup %1487  ;;  %1493 = verf.f32 %v691_v22 }
 0x1dc   :  { %v738_v38 = vadd.f32 1.0, %v1488_v37  ;;  %v583_v11 = vpop.f32.mrb[36].mxu1  ;;  %1358 = vmatmul.mubr.msk.bf16.vlgmr.msra.gmra.mrb[28].mxu0 %vm822_vm3, %v786_v34 }
 0x1dd   :  { %v1490_v41 = vpop.eup %1489  ;;  %v584_v42 = vadd.f32 %v1839_v8, %v583_v11  ;;  %v1315_v13 = vpop.f32.mrb[37].mxu1  ;;  %1361 = vmatprep.mubr.msk.bf16.mxu0 %vm1534_vm0, %v1533_v0 }
 0x1de   :  { %v739_v45 = vadd.f32 1.0, %v1490_v41  ;;  %v586_v32 = vpop.f32.mrb[38].mxu1  ;;  %v763_v29 = vmul.f32 %v738_v38, %v663_v44 }
 0x1df   :  { %v692_v46 = vmul.f32 0.70710677, %v584_v42  ;;  %v587_v48 = vadd.f32 %v1839_v8, %v586_v32  ;;  %v1316_v47 = vpop.f32.mrb[39].mxu1  ;;  %v667_v9 = vmul.f32 0.5, %v584_v42 }
 0x1e0   :  { %v764_v53 = vmul.f32 %v739_v45, %v664_v21 }
 0x1e1   :  { %1495 = verf.f32 %v692_v46  ;;  %v693_v54 = vmul.f32 0.70710677, %v587_v48  ;;  %v668_v57 = vmul.f32 0.5, %v587_v48 }
 0x1e2   :  { %v787_v55 = vpack.c.bf16 %v764_v53, %v763_v29 }
 0x1e3   :  { %v1492_v56 = vpop.eup %1491  ;;  %1497 = verf.f32 %v693_v54 }
 0x1e4   :  { %v740_v58 = vadd.f32 1.0, %v1492_v56  ;;  %v591_v39 = vpop.f32.mrb[40].mxu1  ;;  %1362 = vmatmul.mubr.msk.bf16.gmra.mrb[32].mxu0 %vm822_vm3, %v787_v55 }
 0x1e5   :  { %v1494_v59 = vpop.eup %1493  ;;  %v592_v60 = vadd.f32 %v1839_v8, %v591_v39  ;;  %v1319_v40 = vpop.f32.mrb[41].mxu1  ;;  %1365 = vmatprep.mubr.msk.bf16.mxu0 %vm1534_vm0, %v1533_v0 }
 0x1e6   :  { %v741_v26 = vadd.f32 1.0, %v1494_v59  ;;  %v594_v35 = vpop.f32.mrb[42].mxu1  ;;  %v765_v36 = vmul.f32 %v740_v58, %v665_v50 }
 0x1e7   :  { %v694_v51 = vmul.f32 0.70710677, %v592_v60  ;;  %v595_v61 = vadd.f32 %v1839_v8, %v594_v35  ;;  %v1320_v25 = vpop.f32.mrb[43].mxu1  ;;  %v669_v1 = vmul.f32 0.5, %v592_v60 }
 0x1e8   :  { %v766_v43 = vmul.f32 %v741_v26, %v666_v16 }
 0x1e9   :  { %1499 = verf.f32 %v694_v51  ;;  %v695_v62 = vmul.f32 0.70710677, %v595_v61  ;;  %v670_v31 = vmul.f32 0.5, %v595_v61 }
 0x1ea   :  { %v788_v49 = vpack.c.bf16 %v766_v43, %v765_v36 }
 0x1eb   :  { %v1496_v63 = vpop.eup %1495  ;;  %1501 = verf.f32 %v695_v62 }
 0x1ec   :  { %v742_v2 = vadd.f32 1.0, %v1496_v63  ;;  %v599_v3 = vpop.f32.mrb[44].mxu1  ;;  %1366 = vmatmul.mubr.msk.bf16.gmra.mrb[36].mxu0 %vm822_vm3, %v788_v49 }
 0x1ed   :  { %v1498_v5 = vpop.eup %1497  ;;  %v600_v6 = vadd.f32 %v1839_v8, %v599_v3  ;;  %v1323_v7 = vpop.f32.mrb[45].mxu1  ;;  %1369 = vmatprep.mubr.msk.bf16.mxu0 %vm1534_vm0, %v1533_v0 }
 0x1ee   :  { %v743_v52 = vadd.f32 1.0, %v1498_v5  ;;  %v602_v10 = vpop.f32.mrb[46].mxu1  ;;  %v767_v17 = vmul.f32 %v742_v2, %v667_v9 }
 0x1ef   :  { %v696_v12 = vmul.f32 0.70710677, %v600_v6  ;;  %v603_v14 = vadd.f32 %v1839_v8, %v602_v10  ;;  %v1324_v15 = vpop.f32.mrb[47].mxu1  ;;  %v671_v47 = vmul.f32 0.5, %v600_v6 }
 0x1f0   :  { %v768_v4 = vmul.f32 %v743_v52, %v668_v57 }
 0x1f1   :  { %1503 = verf.f32 %v696_v12  ;;  %v697_v18 = vmul.f32 0.70710677, %v603_v14  ;;  %v672_v29 = vmul.f32 0.5, %v603_v14 }
 0x1f2   :  { %v789_v19 = vpack.c.bf16 %v768_v4, %v767_v17 }
 0x1f3   :  { %v1500_v20 = vpop.eup %1499  ;;  %1505 = verf.f32 %v697_v18 }
 0x1f4   :  { %v744_v23 = vadd.f32 1.0, %v1500_v20  ;;  %v607_v24 = vpop.f32.mrb[48].mxu1  ;;  %1370 = vmatmul.mubr.msk.bf16.gmra.mrb[40].mxu0 %vm822_vm3, %v789_v19 }
 0x1f5   :  { %v1502_v27 = vpop.eup %1501  ;;  %v608_v28 = vadd.f32 %v1839_v8, %v607_v24  ;;  %v1327_v30 = vpop.f32.mrb[49].mxu1  ;;  %1373 = vmatprep.mubr.msk.bf16.mxu0 %vm1534_vm0, %v1533_v0 }
 0x1f6   :  { %v745_v33 = vadd.f32 1.0, %v1502_v27  ;;  %v610_v22 = vpop.f32.mrb[50].mxu1  ;;  %v769_v11 = vmul.f32 %v744_v23, %v669_v1 }
 0x1f7   :  { %v698_v34 = vmul.f32 0.70710677, %v608_v28  ;;  %v611_v37 = vadd.f32 %v1839_v8, %v610_v22  ;;  %v1328_v38 = vpop.f32.mrb[51].mxu1  ;;  %v673_v25 = vmul.f32 0.5, %v608_v28 }
 0x1f8   :  { %v770_v41 = vmul.f32 %v745_v33, %v670_v31 }
 0x1f9   :  { %1507 = verf.f32 %v698_v34  ;;  %v699_v42 = vmul.f32 0.70710677, %v611_v37  ;;  %v674_v36 = vmul.f32 0.5, %v611_v37 }
 0x1fa   :  { %v790_v13 = vpack.c.bf16 %v770_v41, %v769_v11 }
 0x1fb   :  { %v1504_v44 = vpop.eup %1503  ;;  %1509 = verf.f32 %v699_v42 }
 0x1fc   :  { %v746_v21 = vadd.f32 1.0, %v1504_v44  ;;  %v615_v45 = vpop.f32.mrb[52].mxu1  ;;  %1374 = vmatmul.mubr.msk.bf16.gmra.mrb[44].mxu0 %vm822_vm3, %v790_v13 }
 0x1fd   :  { %v1506_v32 = vpop.eup %1505  ;;  %v616_v46 = vadd.f32 %v1839_v8, %v615_v45  ;;  %v1331_v48 = vpop.f32.mrb[53].mxu1  ;;  %1377 = vmatprep.mubr.msk.bf16.mxu0 %vm1534_vm0, %v1533_v0 }
 0x1fe   :  { %v747_v53 = vadd.f32 1.0, %v1506_v32  ;;  %v618_v54 = vpop.f32.mrb[54].mxu1  ;;  %v771_v39 = vmul.f32 %v746_v21, %v671_v47 }
 0x1ff   :  { %v700_v55 = vmul.f32 0.70710677, %v616_v46  ;;  %v619_v56 = vadd.f32 %v1839_v8, %v618_v54  ;;  %v1332_v58 = vpop.f32.mrb[55].mxu1  ;;  %v675_v15 = vmul.f32 0.5, %v616_v46 }
 0x200   :  { %v772_v59 = vmul.f32 %v747_v53, %v672_v29 }
 0x201   :  { %1511 = verf.f32 %v700_v55  ;;  %v701_v60 = vmul.f32 0.70710677, %v619_v56  ;;  %v676_v17 = vmul.f32 0.5, %v619_v56 }
 0x202   :  { %v791_v40 = vpack.c.bf16 %v772_v59, %v771_v39 }
 0x203   :  { %v1508_v50 = vpop.eup %1507  ;;  %1513 = verf.f32 %v701_v60 }
 0x204   :  { %v748_v16 = vadd.f32 1.0, %v1508_v50  ;;  %v623_v26 = vpop.f32.mrb[56].mxu1  ;;  %1378 = vmatmul.mubr.msk.bf16.gmra.mrb[48].mxu0 %vm822_vm3, %v791_v40 }
 0x205   :  { %v1510_v35 = vpop.eup %1509  ;;  %v624_v51 = vadd.f32 %v1839_v8, %v623_v26  ;;  %v1335_v61 = vpop.f32.mrb[57].mxu1  ;;  %1381 = vmatprep.mubr.msk.bf16.mxu0 %vm1534_vm0, %v1533_v0 }
 0x206   :  { %v749_v43 = vadd.f32 1.0, %v1510_v35  ;;  %v626_v62 = vpop.f32.mrb[58].mxu1  ;;  %v773_v3 = vmul.f32 %v748_v16, %v673_v25 }
 0x207   :  { %v702_v49 = vmul.f32 0.70710677, %v624_v51  ;;  %v627_v63 = vadd.f32 %v1839_v8, %v626_v62  ;;  %v1336_v2 = vpop.f32.mrb[59].mxu1  ;;  %v677_v38 = vmul.f32 0.5, %v624_v51 }
 0x208   :  { %v774_v5 = vmul.f32 %v749_v43, %v674_v36 }
 0x209   :  { %1515 = verf.f32 %v702_v49  ;;  %v703_v6 = vmul.f32 0.70710677, %v627_v63  ;;  %v678_v11 = vmul.f32 0.5, %v627_v63 }
 0x20a   :  { %v792_v7 = vpack.c.bf16 %v774_v5, %v773_v3 }
 0x20b   :  { %v1512_v9 = vpop.eup %1511  ;;  %1517 = verf.f32 %v703_v6 }
 0x20c   :  { %v750_v57 = vadd.f32 1.0, %v1512_v9  ;;  %v631_v52 = vpop.f32.mrb[60].mxu1  ;;  %1382 = vmatmul.mubr.msk.bf16.gmra.mrb[52].mxu0 %vm822_vm3, %v792_v7 }
 0x20d   :  { %v1514_v10 = vpop.eup %1513  ;;  %v632_v12 = vadd.f32 %v1839_v8, %v631_v52  ;;  %v1339_v14 = vpop.f32.mrb[61].mxu1  ;;  %1385 = vmatprep.mubr.msk.bf16.mxu0 %vm1534_vm0, %v1533_v0 }
 0x20e   :  { %v751_v4 = vadd.f32 1.0, %v1514_v10  ;;  %v634_v18 = vpop.f32.mrb[62].mxu1  ;;  %v775_v24 = vmul.f32 %v750_v57, %v675_v15 }
 0x20f   :  { %v704_v19 = vmul.f32 0.70710677, %v632_v12  ;;  %v635_v20 = vadd.f32 %v1839_v8, %v634_v18  ;;  %v1340_v23 = vpop.f32.mrb[63].mxu1  ;;  %v679_v58 = vmul.f32 0.5, %v632_v12 }
 0x210   :  { %v776_v27 = vmul.f32 %v751_v4, %v676_v17 }
 0x211   :  { %1519 = verf.f32 %v704_v19  ;;  %v705_v28 = vmul.f32 0.70710677, %v635_v20  ;;  %v680_v39 = vmul.f32 0.5, %v635_v20 }
 0x212   :  { %v793_v30 = vpack.c.bf16 %v776_v27, %v775_v24 }
 0x213   :  { %v1516_v1 = vpop.eup %1515  ;;  %1521 = verf.f32 %v705_v28 }
 0x214   :  { %v752_v31 = vadd.f32 1.0, %v1516_v1  ;;  %v639_v33 = vpop.f32.mrb[64].mxu1  ;;  %1386 = vmatmul.mubr.msk.bf16.gmra.mrb[56].mxu0 %vm822_vm3, %v793_v30  ;;  %v1906_v1 = vld [vmem:[%s1997_s6] ss:$0 sm:$0xff] }
 0x215   :  { %v1518_v22 = vpop.eup %1517  ;;  %v640_v34 = vadd.f32 %v1839_v8, %v639_v33  ;;  %v1343_v37 = vpop.f32.mrb[65].mxu1  ;;  %1389 = vmatprep.mubr.msk.bf16.mxu0 %vm1534_vm0, %v1533_v0 }
 0x216   :  { %v753_v41 = vadd.f32 1.0, %v1518_v22  ;;  %v642_v42 = vpop.f32.mrb[66].mxu1  ;;  %v777_v45 = vmul.f32 %v752_v31, %v677_v38 }
 0x217   :  { %v706_v13 = vmul.f32 0.70710677, %v640_v34  ;;  %v643_v44 = vadd.f32 %v1839_v8, %v642_v42  ;;  %v1344_v21 = vpop.f32.mrb[67].mxu1  ;;  %v681_v2 = vmul.f32 0.5, %v640_v34 }
 0x218   :  { %v778_v32 = vmul.f32 %v753_v41, %v678_v11 }
 0x219   :  { %1523 = verf.f32 %v706_v13  ;;  %v707_v46 = vmul.f32 0.70710677, %v643_v44  ;;  %v682_v3 = vmul.f32 0.5, %v643_v44 }
 0x21a   :  { %v794_v48 = vpack.c.bf16 %v778_v32, %v777_v45 }
 0x21b   :  { %v1520_v47 = vpop.eup %1519  ;;  %1525 = verf.f32 %v707_v46 }
 0x21c   :  { %v754_v29 = vadd.f32 1.0, %v1520_v47  ;;  %v647_v53 = vpop.f32.mrb[68].mxu1  ;;  %1390 = vmatmul.mubr.msk.bf16.gmra.mrb[60].mxu0 %vm822_vm3, %v794_v48 }
 0x21d   :  { %v1522_v54 = vpop.eup %1521  ;;  %v648_v55 = vadd.f32 %v1839_v8, %v647_v53  ;;  %v1347_v56 = vpop.f32.mrb[69].mxu1  ;;  %1393 = vmatprep.mubr.msk.bf16.mxu0 %vm1534_vm0, %v1533_v0 }
 0x21e   :  { %v755_v59 = vadd.f32 1.0, %v1522_v54  ;;  %v650_v60 = vpop.f32.mrb[70].mxu1  ;;  %v779_v26 = vmul.f32 %v754_v29, %v679_v58 }
 0x21f   :  { %v708_v40 = vmul.f32 0.70710677, %v648_v55  ;;  %v651_v50 = vadd.f32 %v1839_v8, %v650_v60  ;;  %v1348_v16 = vpop.f32.mrb[71].mxu1 }
 0x220   :  { %v780_v35 = vmul.f32 %v755_v59, %v680_v39 }
 0x221   :  { %1527 = verf.f32 %v708_v40  ;;  %v709_v51 = vmul.f32 0.70710677, %v651_v50  ;;  %v684_v17 = vmul.f32 0.5, %v651_v50 }
 0x222   :  { %v795_v61 = vpack.c.bf16 %v780_v35, %v779_v26 }
 0x223   :  { %v1524_v25 = vpop.eup %1523  ;;  %1529 = verf.f32 %v709_v51 }
 0x224   :  { %v756_v36 = vadd.f32 1.0, %v1524_v25  ;;  %v655_v43 = vpop.f32.mrb[72].mxu1  ;;  %1394 = vmatmul.mubr.msk.bf16.gmra.mrb[64].mxu0 %vm822_vm3, %v795_v61 }
 0x225   :  { %v1526_v62 = vpop.eup %1525  ;;  %v656_v49 = vadd.f32 %v1839_v8, %v655_v43  ;;  %v1351_v63 = vpop.f32.mrb[73].mxu1  ;;  %1397 = vmatprep.mubr.msk.bf16.mxu0 %vm1534_vm0, %v1533_v0  ;;  %v683_v8 = vmul.f32 0.5, %v648_v55 }
 0x226   :  { %v757_v5 = vadd.f32 1.0, %v1526_v62  ;;  %v658_v6 = vpop.f32.mrb[74].mxu1  ;;  %v781_v57 = vmul.f32 %v756_v36, %v681_v2 }
 0x227   :  { %v710_v7 = vmul.f32 0.70710677, %v656_v49  ;;  %v1352_v9 = vpop.f32.mrb[75].mxu1  ;;  %v685_v24 = vmul.f32 0.5, %v656_v49 }
 0x228   :  { %v782_v52 = vmul.f32 %v757_v5, %v682_v3 }
 0x229   :  { %1531 = verf.f32 %v710_v7 }
 0x22a   :  { %v796_v10 = vpack.c.bf16 %v782_v52, %v781_v57 }
 0x22b   :  { %v1528_v12 = vpop.eup %1527 }
 0x22c   :  { %v758_v14 = vadd.f32 1.0, %v1528_v12  ;;  %1398 = vmatmul.mubr.msk.bf16.gmra.mrb[68].mxu0 %vm822_vm3, %v796_v10 }
 0x22d   :  { %v1530_v15 = vpop.eup %1529  ;;  %1401 = vmatprep.mubr.msk.bf16.mxu0 %vm1534_vm0, %v1533_v0 }
 0x22e   :  { %v759_v4 = vadd.f32 1.0, %v1530_v15  ;;  %v783_v18 = vmul.f32 %v758_v14, %v683_v8 }
 0x230   :  { %v784_v19 = vmul.f32 %v759_v4, %v684_v17 }
 0x232   :  { %v797_v20 = vpack.c.bf16 %v784_v19, %v783_v18 }
 0x233   :  { %v1532_v23 = vpop.eup %1531 }
 0x234   :  { %v760_v27 = vadd.f32 1.0, %v1532_v23  ;;  %1402 = vmatmul.mubr.msk.bf16.gmra.mrb[72].mxu0 %vm822_vm3, %v797_v20 }
 0x235   :  { %1405 = vmatprep.mubr.msk.bf16.mxu0 %vm1534_vm0, %v1533_v0 }
 0x236   :  { %v785_v28 = vmul.f32 %v760_v27, %v685_v24 }
 0x238   :  { %v798_v30 = vpack.c.bf16 %v785_v28, %v785_v28 }
 0x23c   :  { %1406 = vmatmul.mubr.msk.bf16.gmra.mrb[76].mxu0 %vm822_vm3, %v798_v30 }
 0x2af   :  { %v896_v31 = vpop.f32.mrb[28].mxu0 }
 0x2b0   :  { %v897_v33 = vadd.f32 %v1906_v1, %v896_v31  ;;  %v1359_v22 = vpop.f32.mrb[29].mxu0 }
 0x2b1   :  { %v899_v34 = vpop.f32.mrb[30].mxu0 }
 0x2b2   :  { %v1048_v37 = vmul.f32 %v897_v33, %v897_v33  ;;  %v900_v38 = vadd.f32 %v1906_v1, %v899_v34  ;;  %v1360_v11 = vpop.f32.mrb[31].mxu0  ;;  %v998_v0 = vsel %vm485_vm2, %v897_v33, 0.0 }
 0x2b4   :  { %v999_v41 = vsel %vm485_vm2, %v900_v38, 0.0  ;;  %v1049_v42 = vmul.f32 %v900_v38, %v900_v38  ;;  %v1073_v44 = vsel %vm485_vm2, %v1048_v37, 0.0 }
 0x2b5   :  { %v1000_v13 = vadd.f32 %v999_v41, %v998_v0 }
 0x2b6   :  { %v1074_v21 = vsel %vm485_vm2, %v1049_v42, 0.0 }
 0x2b7   :  { %v1075_v45 = vadd.f32 %v1074_v21, %v1073_v44  ;;  %v904_v32 = vpop.f32.mrb[32].mxu0 }
 0x2b8   :  { %v905_v46 = vadd.f32 %v1906_v1, %v904_v32  ;;  %v1363_v48 = vpop.f32.mrb[33].mxu0 }
 0x2b9   :  { %v907_v47 = vpop.f32.mrb[34].mxu0 }
 0x2ba   :  { %v1001_v29 = vsel %vm485_vm2, %v905_v46, 0.0  ;;  %v1050_v53 = vmul.f32 %v905_v46, %v905_v46  ;;  %v908_v54 = vadd.f32 %v1906_v1, %v907_v47  ;;  %v1364_v55 = vpop.f32.mrb[35].mxu0 }
 0x2bb   :  { %v1002_v56 = vadd.f32 %v1001_v29, %v1000_v13 }
 0x2bc   :  { %v1076_v58 = vsel %vm485_vm2, %v1050_v53, 0.0  ;;  %v1003_v39 = vsel %vm485_vm2, %v908_v54, 0.0  ;;  %v1051_v59 = vmul.f32 %v908_v54, %v908_v54 }
 0x2bd   :  { %v1077_v60 = vadd.f32 %v1076_v58, %v1075_v45  ;;  %v1004_v40 = vadd.f32 %v1003_v39, %v1002_v56 }
 0x2be   :  { %v1078_v50 = vsel %vm485_vm2, %v1051_v59, 0.0 }
 0x2bf   :  { %v1079_v16 = vadd.f32 %v1078_v50, %v1077_v60  ;;  %v912_v26 = vpop.f32.mrb[36].mxu0 }
 0x2c0   :  { %v913_v35 = vadd.f32 %v1906_v1, %v912_v26  ;;  %v1367_v51 = vpop.f32.mrb[37].mxu0 }
 0x2c1   :  { %v915_v61 = vpop.f32.mrb[38].mxu0 }
 0x2c2   :  { %v1005_v25 = vsel %vm485_vm2, %v913_v35, 0.0  ;;  %v1052_v36 = vmul.f32 %v913_v35, %v913_v35  ;;  %v916_v43 = vadd.f32 %v1906_v1, %v915_v61  ;;  %v1368_v62 = vpop.f32.mrb[39].mxu0 }
 0x2c3   :  { %v1006_v49 = vadd.f32 %v1005_v25, %v1004_v40 }
 0x2c4   :  { %v1080_v63 = vsel %vm485_vm2, %v1052_v36, 0.0  ;;  %v1007_v2 = vsel %vm485_vm2, %v916_v43, 0.0  ;;  %v1053_v3 = vmul.f32 %v916_v43, %v916_v43 }
 0x2c5   :  { %v1081_v5 = vadd.f32 %v1080_v63, %v1079_v16  ;;  %v1008_v6 = vadd.f32 %v1007_v2, %v1006_v49 }
 0x2c6   :  { %v1082_v7 = vsel %vm485_vm2, %v1053_v3, 0.0 }
 0x2c7   :  { %v1083_v9 = vadd.f32 %v1082_v7, %v1081_v5  ;;  %v920_v57 = vpop.f32.mrb[40].mxu0 }
 0x2c8   :  { %v921_v52 = vadd.f32 %v1906_v1, %v920_v57  ;;  %v1371_v10 = vpop.f32.mrb[41].mxu0 }
 0x2c9   :  { %v923_v12 = vpop.f32.mrb[42].mxu0 }
 0x2ca   :  { %v1009_v14 = vsel %vm485_vm2, %v921_v52, 0.0  ;;  %v1054_v15 = vmul.f32 %v921_v52, %v921_v52  ;;  %v924_v8 = vadd.f32 %v1906_v1, %v923_v12  ;;  %v1372_v17 = vpop.f32.mrb[43].mxu0 }
 0x2cb   :  { %v1010_v4 = vadd.f32 %v1009_v14, %v1008_v6 }
 0x2cc   :  { %v1084_v18 = vsel %vm485_vm2, %v1054_v15, 0.0  ;;  %v1011_v19 = vsel %vm485_vm2, %v924_v8, 0.0  ;;  %v1055_v20 = vmul.f32 %v924_v8, %v924_v8 }
 0x2cd   :  { %v1085_v23 = vadd.f32 %v1084_v18, %v1083_v9  ;;  %v1012_v24 = vadd.f32 %v1011_v19, %v1010_v4 }
 0x2ce   :  { %v1086_v27 = vsel %vm485_vm2, %v1055_v20, 0.0 }
 0x2cf   :  { %v1087_v28 = vadd.f32 %v1086_v27, %v1085_v23  ;;  %v928_v30 = vpop.f32.mrb[44].mxu0 }
 0x2d0   :  { %v929_v31 = vadd.f32 %v1906_v1, %v928_v30  ;;  %v1375_v33 = vpop.f32.mrb[45].mxu0 }
 0x2d1   :  { %v931_v22 = vpop.f32.mrb[46].mxu0 }
 0x2d2   :  { %v1013_v34 = vsel %vm485_vm2, %v929_v31, 0.0  ;;  %v1056_v37 = vmul.f32 %v929_v31, %v929_v31  ;;  %v932_v38 = vadd.f32 %v1906_v1, %v931_v22  ;;  %v1376_v11 = vpop.f32.mrb[47].mxu0 }
 0x2d3   :  { %v1014_v0 = vadd.f32 %v1013_v34, %v1012_v24 }
 0x2d4   :  { %v1088_v41 = vsel %vm485_vm2, %v1056_v37, 0.0  ;;  %v1015_v42 = vsel %vm485_vm2, %v932_v38, 0.0  ;;  %v1057_v13 = vmul.f32 %v932_v38, %v932_v38 }
 0x2d5   :  { %v1089_v44 = vadd.f32 %v1088_v41, %v1087_v28  ;;  %v1016_v21 = vadd.f32 %v1015_v42, %v1014_v0 }
 0x2d6   :  { %v1090_v45 = vsel %vm485_vm2, %v1057_v13, 0.0 }
 0x2d7   :  { %v1091_v32 = vadd.f32 %v1090_v45, %v1089_v44  ;;  %v936_v46 = vpop.f32.mrb[48].mxu0 }
 0x2d8   :  { %v937_v48 = vadd.f32 %v1906_v1, %v936_v46  ;;  %v1379_v47 = vpop.f32.mrb[49].mxu0 }
 0x2d9   :  { %v939_v29 = vpop.f32.mrb[50].mxu0 }
 0x2da   :  { %v1017_v53 = vsel %vm485_vm2, %v937_v48, 0.0  ;;  %v1058_v54 = vmul.f32 %v937_v48, %v937_v48  ;;  %v940_v55 = vadd.f32 %v1906_v1, %v939_v29  ;;  %v1380_v56 = vpop.f32.mrb[51].mxu0 }
 0x2db   :  { %v1018_v58 = vadd.f32 %v1017_v53, %v1016_v21 }
 0x2dc   :  { %v1092_v39 = vsel %vm485_vm2, %v1058_v54, 0.0  ;;  %v1019_v59 = vsel %vm485_vm2, %v940_v55, 0.0  ;;  %v1059_v60 = vmul.f32 %v940_v55, %v940_v55 }
 0x2dd   :  { %v1093_v40 = vadd.f32 %v1092_v39, %v1091_v32  ;;  %v1020_v50 = vadd.f32 %v1019_v59, %v1018_v58 }
 0x2de   :  { %v1094_v16 = vsel %vm485_vm2, %v1059_v60, 0.0 }
 0x2df   :  { %v1095_v26 = vadd.f32 %v1094_v16, %v1093_v40  ;;  %v944_v35 = vpop.f32.mrb[52].mxu0 }
 0x2e0   :  { %v945_v51 = vadd.f32 %v1906_v1, %v944_v35  ;;  %v1383_v61 = vpop.f32.mrb[53].mxu0 }
 0x2e1   :  { %v947_v25 = vpop.f32.mrb[54].mxu0 }
 0x2e2   :  { %v1021_v36 = vsel %vm485_vm2, %v945_v51, 0.0  ;;  %v1060_v43 = vmul.f32 %v945_v51, %v945_v51  ;;  %v948_v62 = vadd.f32 %v1906_v1, %v947_v25  ;;  %v1384_v49 = vpop.f32.mrb[55].mxu0 }
 0x2e3   :  { %v1022_v63 = vadd.f32 %v1021_v36, %v1020_v50 }
 0x2e4   :  { %v1096_v2 = vsel %vm485_vm2, %v1060_v43, 0.0  ;;  %v1023_v3 = vsel %vm485_vm2, %v948_v62, 0.0  ;;  %v1061_v5 = vmul.f32 %v948_v62, %v948_v62 }
 0x2e5   :  { %v1097_v6 = vadd.f32 %v1096_v2, %v1095_v26  ;;  %v1024_v7 = vadd.f32 %v1023_v3, %v1022_v63 }
 0x2e6   :  { %v1098_v9 = vsel %vm485_vm2, %v1061_v5, 0.0 }
 0x2e7   :  { %v1099_v57 = vadd.f32 %v1098_v9, %v1097_v6  ;;  %v952_v52 = vpop.f32.mrb[56].mxu0 }
 0x2e8   :  { %v953_v10 = vadd.f32 %v1906_v1, %v952_v52  ;;  %v1387_v12 = vpop.f32.mrb[57].mxu0 }
 0x2e9   :  { %v955_v14 = vpop.f32.mrb[58].mxu0 }
 0x2ea   :  { %v1025_v15 = vsel %vm485_vm2, %v953_v10, 0.0  ;;  %v1062_v8 = vmul.f32 %v953_v10, %v953_v10  ;;  %v956_v17 = vadd.f32 %v1906_v1, %v955_v14  ;;  %v1388_v4 = vpop.f32.mrb[59].mxu0 }
 0x2eb   :  { %v1026_v18 = vadd.f32 %v1025_v15, %v1024_v7 }
 0x2ec   :  { %v1100_v19 = vsel %vm485_vm2, %v1062_v8, 0.0  ;;  %v1027_v20 = vsel %vm485_vm2, %v956_v17, 0.0  ;;  %v1063_v23 = vmul.f32 %v956_v17, %v956_v17 }
 0x2ed   :  { %v1101_v24 = vadd.f32 %v1100_v19, %v1099_v57  ;;  %v1028_v27 = vadd.f32 %v1027_v20, %v1026_v18 }
 0x2ee   :  { %v1102_v28 = vsel %vm485_vm2, %v1063_v23, 0.0 }
 0x2ef   :  { %v1103_v30 = vadd.f32 %v1102_v28, %v1101_v24  ;;  %v960_v31 = vpop.f32.mrb[60].mxu0 }
 0x2f0   :  { %v961_v33 = vadd.f32 %v1906_v1, %v960_v31  ;;  %v1391_v22 = vpop.f32.mrb[61].mxu0 }
 0x2f1   :  { %v963_v34 = vpop.f32.mrb[62].mxu0 }
 0x2f2   :  { %v1029_v37 = vsel %vm485_vm2, %v961_v33, 0.0  ;;  %v1064_v38 = vmul.f32 %v961_v33, %v961_v33  ;;  %v964_v11 = vadd.f32 %v1906_v1, %v963_v34  ;;  %v1392_v0 = vpop.f32.mrb[63].mxu0 }
 0x2f3   :  { %v1030_v41 = vadd.f32 %v1029_v37, %v1028_v27 }
 0x2f4   :  { %v1104_v42 = vsel %vm485_vm2, %v1064_v38, 0.0  ;;  %v1031_v13 = vsel %vm485_vm2, %v964_v11, 0.0  ;;  %v1065_v44 = vmul.f32 %v964_v11, %v964_v11 }
 0x2f5   :  { %v1105_v21 = vadd.f32 %v1104_v42, %v1103_v30  ;;  %v1032_v45 = vadd.f32 %v1031_v13, %v1030_v41 }
 0x2f6   :  { %v1106_v32 = vsel %vm485_vm2, %v1065_v44, 0.0 }
 0x2f7   :  { %v1107_v46 = vadd.f32 %v1106_v32, %v1105_v21  ;;  %v968_v48 = vpop.f32.mrb[64].mxu0 }
 0x2f8   :  { %v969_v47 = vadd.f32 %v1906_v1, %v968_v48  ;;  %v1395_v29 = vpop.f32.mrb[65].mxu0 }
 0x2f9   :  { %v971_v53 = vpop.f32.mrb[66].mxu0 }
 0x2fa   :  { %v1033_v54 = vsel %vm485_vm2, %v969_v47, 0.0  ;;  %v1066_v55 = vmul.f32 %v969_v47, %v969_v47  ;;  %v972_v56 = vadd.f32 %v1906_v1, %v971_v53  ;;  %v1396_v58 = vpop.f32.mrb[67].mxu0 }
 0x2fb   :  { %v1034_v39 = vadd.f32 %v1033_v54, %v1032_v45 }
 0x2fc   :  { %v1108_v59 = vsel %vm485_vm2, %v1066_v55, 0.0  ;;  %v1035_v60 = vsel %vm485_vm2, %v972_v56, 0.0  ;;  %v1067_v40 = vmul.f32 %v972_v56, %v972_v56 }
 0x2fd   :  { %v1109_v50 = vadd.f32 %v1108_v59, %v1107_v46  ;;  %v1036_v16 = vadd.f32 %v1035_v60, %v1034_v39 }
 0x2fe   :  { %v1110_v26 = vsel %vm485_vm2, %v1067_v40, 0.0 }
 0x2ff   :  { %v1111_v35 = vadd.f32 %v1110_v26, %v1109_v50  ;;  %v976_v51 = vpop.f32.mrb[68].mxu0 }
 0x300   :  { %v977_v61 = vadd.f32 %v1906_v1, %v976_v51  ;;  %v1399_v25 = vpop.f32.mrb[69].mxu0 }
 0x301   :  { %v979_v36 = vpop.f32.mrb[70].mxu0 }
 0x302   :  { %v1037_v43 = vsel %vm485_vm2, %v977_v61, 0.0  ;;  %v1068_v62 = vmul.f32 %v977_v61, %v977_v61  ;;  %v980_v49 = vadd.f32 %v1906_v1, %v979_v36  ;;  %v1400_v63 = vpop.f32.mrb[71].mxu0 }
 0x303   :  { %v1038_v2 = vadd.f32 %v1037_v43, %v1036_v16 }
 0x304   :  { %v1112_v3 = vsel %vm485_vm2, %v1068_v62, 0.0  ;;  %v1039_v5 = vsel %vm485_vm2, %v980_v49, 0.0  ;;  %v1069_v6 = vmul.f32 %v980_v49, %v980_v49 }
 0x305   :  { %v1113_v7 = vadd.f32 %v1112_v3, %v1111_v35  ;;  %v1040_v9 = vadd.f32 %v1039_v5, %v1038_v2 }
 0x306   :  { %v1114_v57 = vsel %vm485_vm2, %v1069_v6, 0.0 }
 0x307   :  { %v1115_v52 = vadd.f32 %v1114_v57, %v1113_v7  ;;  %v984_v10 = vpop.f32.mrb[72].mxu0 }
 0x308   :  { %v985_v12 = vadd.f32 %v1906_v1, %v984_v10  ;;  %v1403_v14 = vpop.f32.mrb[73].mxu0 }
 0x309   :  { %v987_v15 = vpop.f32.mrb[74].mxu0 }
 0x30a   :  { %v1041_v8 = vsel %vm485_vm2, %v985_v12, 0.0  ;;  %v1070_v17 = vmul.f32 %v985_v12, %v985_v12  ;;  %v988_v4 = vadd.f32 %v1906_v1, %v987_v15  ;;  %v1404_v18 = vpop.f32.mrb[75].mxu0 }
 0x30b   :  { %v1042_v19 = vadd.f32 %v1041_v8, %v1040_v9 }
 0x30c   :  { %v1116_v20 = vsel %vm485_vm2, %v1070_v17, 0.0  ;;  %v1043_v23 = vsel %vm485_vm2, %v988_v4, 0.0  ;;  %v1071_v24 = vmul.f32 %v988_v4, %v988_v4 }
 0x30d   :  { %v1117_v27 = vadd.f32 %v1116_v20, %v1115_v52  ;;  %v1044_v28 = vadd.f32 %v1043_v23, %v1042_v19 }
 0x30e   :  { %v1118_v30 = vsel %vm485_vm2, %v1071_v24, 0.0 }
 0x30f   :  { %v1119_v31 = vadd.f32 %v1118_v30, %v1117_v27  ;;  %v992_v33 = vpop.f32.mrb[76].mxu0 }
 0x310   :  { %v993_v22 = vadd.f32 %v1906_v1, %v992_v33  ;;  %v1407_v34 = vpop.f32.mrb[77].mxu0 }
 0x311   :  { %v995_v37 = vpop.f32.mrb[78].mxu0 }
 0x312   :  { %v1045_v38 = vsel %vm485_vm2, %v993_v22, 0.0  ;;  %v1072_v11 = vmul.f32 %v993_v22, %v993_v22  ;;  %v1408_v0 = vpop.f32.mrb[79].mxu0 }
 0x313   :  { %v1046_v41 = vadd.f32 %v1045_v38, %v1044_v28 }
 0x314   :  { %v1120_v42 = vsel %vm485_vm2, %v1072_v11, 0.0 }
 0x315   :  { %1047 = vst.msk [vmem:[%s1998_s7] sm:$0xff] %vm485_vm2, %v1046_v41  ;;  %v1121_v13 = vadd.f32 %v1120_v42, %v1119_v31 }
 0x317   :  { %1122 = vst.msk [vmem:[%s1999_s8] sm:$0xff] %vm485_vm2, %v1121_v13 }

// kernel: autoencoder_forward.5
= control target key start
LH: loop header
LB: loop body
LE: loop exit
PB: predicated region body
PF: predicated region fallthrough
CT: control target
= control target key end

     0   :  { %v2107_v0 = vmov 0.0   ;;  %vm2108_vm0 = vmmov 0   ;;  %vm136_vm1 = vcmask 130048   ;;  %vm489_vm2 = vcmask 523264   ;;  %s2618_s1 = inlined_call_operand.vmem [shape: bf16[16,64], index: 1, kind: input, shape index: {}]   ;;  %s2619_s0 = inlined_call_operand.vmem [shape: bf16[200,16], index: 0, kind: input, shape index: {}]   ;;  %s2620_s3 = inlined_call_operand.vmem [shape: bf16[64,32], index: 3, kind: input, shape index: {}]   ;;  %s2621_s5 = inlined_call_operand.vmem [shape: bf16[32,64], index: 5, kind: input, shape index: {}]   ;;  %s2622_s2 = inlined_call_operand.vmem [shape: f32[1,64], index: 2, kind: input, shape index: {}]   ;;  %s2623_s7 = inlined_call_operand.vmem [shape: bf16[64,16], index: 7, kind: input, shape index: {}]   ;;  %s2624_s4 = inlined_call_operand.vmem [shape: f32[1,32], index: 4, kind: input, shape index: {}]   ;;  %s2625_s6 = inlined_call_operand.vmem [shape: f32[1,64], index: 6, kind: input, shape index: {}]   ;;  %s2626_s8 = inlined_call_operand.vmem [shape: f32[1,16], index: 8, kind: input, shape index: {}]   ;;  %s2627_s9 = inlined_call_operand.vmem [shape: f32[200,16], index: 9, kind: output, shape index: {}]  }
   0x1   :  { %1651 = vmatprep.subr.bf16.mxu0 %v2107_v0  ;;  %v1883_v1 = vld [vmem:[%s2618_s1] sm:$0xff]   ;;  %1653 = vmatprep.mubr.msk.bf16.mxu0 %vm2108_vm0, %v2107_v0  ;;  %v1885_v3 = vld [vmem:[%s2619_s0 + $0x8] sm:$0xff]   ;;  %v1886_v4 = vld [vmem:[%s2619_s0 + $0x10] sm:$0xff]   ;;  %vm826_vm3 = vcmask 261120  }
   0x2   :  { %v1884_v2 = vld [vmem:[%s2619_s0] sm:$0xff]   ;;  %1705 = vmatprep.subr.bf16.mxu1 %v2107_v0  ;;  %1713 = vmatprep.mubr.msk.bf16.mxu1 %vm2108_vm0, %v2107_v0  ;;  %v1887_v5 = vld [vmem:[%s2619_s0 + $0x18] sm:$0xff]   ;;  %v1889_v7 = vld [vmem:[%s2619_s0 + $0x28] sm:$0xff]  }
   0x3   :  { %1652 = vmatpush3.bf16.msra.mxu0 %v1883_v1  ;;  %v1888_v6 = vld [vmem:[%s2619_s0 + $0x20] sm:$0xff]   ;;  %v1890_v8 = vld [vmem:[%s2619_s0 + $0x30] sm:$0xff]   ;;  %v1891_v9 = vld [vmem:[%s2619_s0 + $0x38] sm:$0xff]  }
   0x4   :  { %1765 = vmatprep.subr.bf16.mxu0 %v2107_v0  ;;  %v1892_v10 = vld [vmem:[%s2619_s0 + $0x40] sm:$0xff]   ;;  %v1893_v11 = vld [vmem:[%s2619_s0 + $0x48] sm:$0xff]   ;;  %v1894_v12 = vld [vmem:[%s2619_s0 + $0x50] sm:$0xff]  }
   0x5   :  { %v1895_v13 = vld [vmem:[%s2619_s0 + $0x58] sm:$0xff]   ;;  %v1896_v14 = vld [vmem:[%s2619_s0 + $0x60] ss:$0 sps:$4 sm:$0xff]   ;;  %v1898_v16 = vld [vmem:[%s2620_s3 + $0x8] sm:$0xff]  }
   0x6   :  { %1654 = vmatmul.mubr.msk.bf16.vlgmr.msra.gmra.mrb[0].mxu0 %vm136_vm1, %v1884_v2  ;;  %v1897_v15 = vld [vmem:[%s2620_s3] sm:$0xff]   ;;  %v1899_v17 = vld [vmem:[%s2620_s3 + $0x10] sm:$0xff]   ;;  %v1900_v18 = vld [vmem:[%s2620_s3 + $0x18] sm:$0xff]  }
   0x7   :  { %1657 = vmatprep.mubr.msk.bf16.mxu0 %vm2108_vm0, %v2107_v0  ;;  %1706 = vmatpush3.bf16.msra.mxu1 %v1897_v15  ;;  %v1901_v19 = vld [vmem:[%s2621_s5] sm:$0xff]   ;;  %v1902_v20 = vld [vmem:[%s2621_s5 + $0x8] sm:$0xff]  }
   0x8   :  { %1707 = vmatprep.subr.bf16.mxu1 %v2107_v0  ;;  %1766 = vmatpush3.bf16.msra.mxu0 %v1901_v19  ;;  %v2273_v21 = vld [vmem:[%s2622_s2] ss:$0 sm:$0xff] }
   0x9   :  { %1767 = vmatprep.subr.bf16.mxu0 %v2107_v0 }
   0xb   :  { %1708 = vmatpush3.bf16.msra.mxu1 %v1898_v16 }
   0xc   :  { %1709 = vmatprep.subr.bf16.mxu1 %v2107_v0  ;;  %1768 = vmatpush3.bf16.msra.mxu0 %v1902_v20 }
   0xe   :  { %1658 = vmatmul.mubr.msk.bf16.gmra.mrb[4].mxu0 %vm136_vm1, %v1885_v3 }
   0xf   :  { %1661 = vmatprep.mubr.msk.bf16.mxu0 %vm2108_vm0, %v2107_v0  ;;  %1710 = vmatpush3.bf16.msra.mxu1 %v1899_v17 }
  0x10   :  { %1711 = vmatprep.subr.bf16.mxu1 %v2107_v0 }
  0x13   :  { %1712 = vmatpush3.bf16.msra.mxu1 %v1900_v18 }
  0x14   :  { %1821 = vmatprep.subr.bf16.mxu1 %v2107_v0 }
  0x16   :  { %1662 = vmatmul.mubr.msk.bf16.gmra.mrb[8].mxu0 %vm136_vm1, %v1886_v4 }
  0x17   :  { %1665 = vmatprep.mubr.msk.bf16.mxu0 %vm2108_vm0, %v2107_v0 }
  0x1e   :  { %1666 = vmatmul.mubr.msk.bf16.gmra.mrb[12].mxu0 %vm136_vm1, %v1887_v5 }
  0x1f   :  { %1669 = vmatprep.mubr.msk.bf16.mxu0 %vm2108_vm0, %v2107_v0 }
  0x26   :  { %1670 = vmatmul.mubr.msk.bf16.gmra.mrb[16].mxu0 %vm136_vm1, %v1888_v6 }
  0x27   :  { %1673 = vmatprep.mubr.msk.bf16.mxu0 %vm2108_vm0, %v2107_v0 }
  0x2e   :  { %1674 = vmatmul.mubr.msk.bf16.gmra.mrb[20].mxu0 %vm136_vm1, %v1889_v7 }
  0x2f   :  { %1677 = vmatprep.mubr.msk.bf16.mxu0 %vm2108_vm0, %v2107_v0 }
  0x36   :  { %1678 = vmatmul.mubr.msk.bf16.gmra.mrb[24].mxu0 %vm136_vm1, %v1890_v8 }
  0x37   :  { %1681 = vmatprep.mubr.msk.bf16.mxu0 %vm2108_vm0, %v2107_v0 }
  0x3e   :  { %1682 = vmatmul.mubr.msk.bf16.gmra.mrb[28].mxu0 %vm136_vm1, %v1891_v9 }
  0x3f   :  { %1685 = vmatprep.mubr.msk.bf16.mxu0 %vm2108_vm0, %v2107_v0 }
  0x46   :  { %1686 = vmatmul.mubr.msk.bf16.gmra.mrb[32].mxu0 %vm136_vm1, %v1892_v10 }
  0x47   :  { %1689 = vmatprep.mubr.msk.bf16.mxu0 %vm2108_vm0, %v2107_v0 }
  0x4e   :  { %1690 = vmatmul.mubr.msk.bf16.gmra.mrb[36].mxu0 %vm136_vm1, %v1893_v11 }
  0x4f   :  { %1693 = vmatprep.mubr.msk.bf16.mxu0 %vm2108_vm0, %v2107_v0 }
  0x56   :  { %1694 = vmatmul.mubr.msk.bf16.gmra.mrb[40].mxu0 %vm136_vm1, %v1894_v12 }
  0x57   :  { %1697 = vmatprep.mubr.msk.bf16.mxu0 %vm2108_vm0, %v2107_v0 }
  0x5e   :  { %1698 = vmatmul.mubr.msk.bf16.gmra.mrb[44].mxu0 %vm136_vm1, %v1895_v13 }
  0x5f   :  { %1701 = vmatprep.mubr.msk.bf16.mxu0 %vm2108_vm0, %v2107_v0 }
  0x66   :  { %1702 = vmatmul.mubr.msk.bf16.gmra.mrb[48].mxu0 %vm136_vm1, %v1896_v14 }
  0x67   :  { %1769 = vmatprep.mubr.msk.bf16.mxu0 %vm2108_vm0, %v2107_v0 }
  0xd9   :  { %v210_v22 = vpop.f32.mrb[0].mxu0 }
  0xda   :  { %v211_v23 = vadd.f32 %v2273_v21, %v210_v22  ;;  %v1655_v24 = vpop.f32.mrb[1].mxu0 }
  0xdb   :  { %v213_v25 = vpop.f32.mrb[2].mxu0 }
  0xdc   :  { %v337_v26 = vmul.f32 0.70710677, %v211_v23  ;;  %v214_v27 = vadd.f32 %v2273_v21, %v213_v25  ;;  %v1656_v28 = vpop.f32.mrb[3].mxu0  ;;  %v312_v44 = vmul.f32 0.5, %v211_v23 }
  0xde   :  { %1907 = verf.f32 %v337_v26  ;;  %v338_v29 = vmul.f32 0.70710677, %v214_v27  ;;  %v313_v45 = vmul.f32 0.5, %v214_v27 }
  0xe0   :  { %1909 = verf.f32 %v338_v29 }
  0xe1   :  { %v218_v30 = vpop.f32.mrb[4].mxu0 }
  0xe2   :  { %v219_v31 = vadd.f32 %v2273_v21, %v218_v30  ;;  %v1659_v32 = vpop.f32.mrb[5].mxu0 }
  0xe3   :  { %v221_v33 = vpop.f32.mrb[6].mxu0 }
  0xe4   :  { %v339_v34 = vmul.f32 0.70710677, %v219_v31  ;;  %v222_v35 = vadd.f32 %v2273_v21, %v221_v33  ;;  %v1660_v36 = vpop.f32.mrb[7].mxu0  ;;  %v314_v61 = vmul.f32 0.5, %v219_v31 }
  0xe6   :  { %1911 = verf.f32 %v339_v34  ;;  %v340_v37 = vmul.f32 0.70710677, %v222_v35  ;;  %v315_v62 = vmul.f32 0.5, %v222_v35 }
  0xe8   :  { %v1908_v38 = vpop.eup %1907  ;;  %1913 = verf.f32 %v340_v37 }
  0xe9   :  { %v387_v39 = vadd.f32 1.0, %v1908_v38  ;;  %v226_v40 = vpop.f32.mrb[8].mxu0 }
  0xea   :  { %v1910_v41 = vpop.eup %1909  ;;  %v227_v42 = vadd.f32 %v2273_v21, %v226_v40  ;;  %v1663_v43 = vpop.f32.mrb[9].mxu0 }
  0xeb   :  { %v388_v46 = vadd.f32 1.0, %v1910_v41  ;;  %v229_v47 = vpop.f32.mrb[10].mxu0  ;;  %v412_v51 = vmul.f32 %v387_v39, %v312_v44 }
  0xec   :  { %v341_v48 = vmul.f32 0.70710677, %v227_v42  ;;  %v230_v49 = vadd.f32 %v2273_v21, %v229_v47  ;;  %v1664_v50 = vpop.f32.mrb[11].mxu0  ;;  %v316_v15 = vmul.f32 0.5, %v227_v42 }
  0xed   :  { %v413_v52 = vmul.f32 %v388_v46, %v313_v45 }
  0xee   :  { %1915 = verf.f32 %v341_v48  ;;  %v342_v53 = vmul.f32 0.70710677, %v230_v49  ;;  %v317_v16 = vmul.f32 0.5, %v230_v49 }
  0xef   :  { %v437_v54 = vpack.c.bf16 %v413_v52, %v412_v51 }
  0xf0   :  { %v1912_v55 = vpop.eup %1911  ;;  %1917 = verf.f32 %v342_v53 }
  0xf1   :  { %v389_v56 = vadd.f32 1.0, %v1912_v55  ;;  %v234_v57 = vpop.f32.mrb[12].mxu0  ;;  %1714 = vmatmul.mubr.msk.bf16.vlgmr.msra.gmra.mrb[0].mxu1 %vm489_vm2, %v437_v54 }
  0xf2   :  { %v1914_v58 = vpop.eup %1913  ;;  %v235_v59 = vadd.f32 %v2273_v21, %v234_v57  ;;  %v1667_v60 = vpop.f32.mrb[13].mxu0  ;;  %1717 = vmatprep.mubr.msk.bf16.mxu1 %vm2108_vm0, %v2107_v0 }
  0xf3   :  { %v390_v63 = vadd.f32 1.0, %v1914_v58  ;;  %v237_v1 = vpop.f32.mrb[14].mxu0  ;;  %v414_v5 = vmul.f32 %v389_v56, %v314_v61 }
  0xf4   :  { %v343_v2 = vmul.f32 0.70710677, %v235_v59  ;;  %v238_v3 = vadd.f32 %v2273_v21, %v237_v1  ;;  %v1668_v4 = vpop.f32.mrb[15].mxu0  ;;  %v318_v33 = vmul.f32 0.5, %v235_v59 }
  0xf5   :  { %v415_v6 = vmul.f32 %v390_v63, %v315_v62 }
  0xf6   :  { %1919 = verf.f32 %v343_v2  ;;  %v344_v7 = vmul.f32 0.70710677, %v238_v3  ;;  %v319_v34 = vmul.f32 0.5, %v238_v3 }
  0xf7   :  { %v438_v8 = vpack.c.bf16 %v415_v6, %v414_v5 }
  0xf8   :  { %v1916_v9 = vpop.eup %1915  ;;  %1921 = verf.f32 %v344_v7 }
  0xf9   :  { %v391_v10 = vadd.f32 1.0, %v1916_v9  ;;  %v242_v11 = vpop.f32.mrb[16].mxu0  ;;  %1718 = vmatmul.mubr.msk.bf16.gmra.mrb[4].mxu1 %vm489_vm2, %v438_v8 }
  0xfa   :  { %v1918_v12 = vpop.eup %1917  ;;  %v243_v13 = vadd.f32 %v2273_v21, %v242_v11  ;;  %v1671_v14 = vpop.f32.mrb[17].mxu0  ;;  %1721 = vmatprep.mubr.msk.bf16.mxu1 %vm2108_vm0, %v2107_v0 }
  0xfb   :  { %v392_v17 = vadd.f32 1.0, %v1918_v12  ;;  %v245_v18 = vpop.f32.mrb[18].mxu0  ;;  %v416_v23 = vmul.f32 %v391_v10, %v316_v15 }
  0xfc   :  { %v345_v19 = vmul.f32 0.70710677, %v243_v13  ;;  %v246_v20 = vadd.f32 %v2273_v21, %v245_v18  ;;  %v1672_v22 = vpop.f32.mrb[19].mxu0  ;;  %v320_v50 = vmul.f32 0.5, %v243_v13 }
  0xfd   :  { %v417_v24 = vmul.f32 %v392_v17, %v317_v16 }
  0xfe   :  { %1923 = verf.f32 %v345_v19  ;;  %v346_v25 = vmul.f32 0.70710677, %v246_v20  ;;  %v321_v51 = vmul.f32 0.5, %v246_v20 }
  0xff   :  { %v439_v26 = vpack.c.bf16 %v417_v24, %v416_v23 }
 0x100   :  { %v1920_v27 = vpop.eup %1919  ;;  %1925 = verf.f32 %v346_v25 }
 0x101   :  { %v393_v28 = vadd.f32 1.0, %v1920_v27  ;;  %v250_v29 = vpop.f32.mrb[20].mxu0  ;;  %1722 = vmatmul.mubr.msk.bf16.gmra.mrb[8].mxu1 %vm489_vm2, %v439_v26 }
 0x102   :  { %v1922_v30 = vpop.eup %1921  ;;  %v251_v31 = vadd.f32 %v2273_v21, %v250_v29  ;;  %v1675_v32 = vpop.f32.mrb[21].mxu0  ;;  %1725 = vmatprep.mubr.msk.bf16.mxu1 %vm2108_vm0, %v2107_v0 }
 0x103   :  { %v394_v35 = vadd.f32 1.0, %v1922_v30  ;;  %v253_v36 = vpop.f32.mrb[22].mxu0  ;;  %v418_v40 = vmul.f32 %v393_v28, %v318_v33 }
 0x104   :  { %v347_v37 = vmul.f32 0.70710677, %v251_v31  ;;  %v254_v38 = vadd.f32 %v2273_v21, %v253_v36  ;;  %v1676_v39 = vpop.f32.mrb[23].mxu0  ;;  %v322_v4 = vmul.f32 0.5, %v251_v31 }
 0x105   :  { %v419_v41 = vmul.f32 %v394_v35, %v319_v34 }
 0x106   :  { %1927 = verf.f32 %v347_v37  ;;  %v348_v42 = vmul.f32 0.70710677, %v254_v38  ;;  %v323_v5 = vmul.f32 0.5, %v254_v38 }
 0x107   :  { %v440_v43 = vpack.c.bf16 %v419_v41, %v418_v40 }
 0x108   :  { %v1924_v44 = vpop.eup %1923  ;;  %1929 = verf.f32 %v348_v42 }
 0x109   :  { %v395_v45 = vadd.f32 1.0, %v1924_v44  ;;  %v258_v46 = vpop.f32.mrb[24].mxu0  ;;  %1726 = vmatmul.mubr.msk.bf16.gmra.mrb[12].mxu1 %vm489_vm2, %v440_v43 }
 0x10a   :  { %v1926_v47 = vpop.eup %1925  ;;  %v259_v48 = vadd.f32 %v2273_v21, %v258_v46  ;;  %v1679_v49 = vpop.f32.mrb[25].mxu0  ;;  %1729 = vmatprep.mubr.msk.bf16.mxu1 %vm2108_vm0, %v2107_v0 }
 0x10b   :  { %v396_v52 = vadd.f32 1.0, %v1926_v47  ;;  %v261_v53 = vpop.f32.mrb[26].mxu0  ;;  %v420_v57 = vmul.f32 %v395_v45, %v320_v50 }
 0x10c   :  { %v349_v54 = vmul.f32 0.70710677, %v259_v48  ;;  %v262_v55 = vadd.f32 %v2273_v21, %v261_v53  ;;  %v1680_v56 = vpop.f32.mrb[27].mxu0  ;;  %v324_v22 = vmul.f32 0.5, %v259_v48 }
 0x10d   :  { %v421_v58 = vmul.f32 %v396_v52, %v321_v51 }
 0x10e   :  { %1931 = verf.f32 %v349_v54  ;;  %v350_v59 = vmul.f32 0.70710677, %v262_v55  ;;  %v325_v23 = vmul.f32 0.5, %v262_v55 }
 0x10f   :  { %v441_v60 = vpack.c.bf16 %v421_v58, %v420_v57 }
 0x110   :  { %v1928_v61 = vpop.eup %1927  ;;  %1933 = verf.f32 %v350_v59 }
 0x111   :  { %v397_v62 = vadd.f32 1.0, %v1928_v61  ;;  %v266_v63 = vpop.f32.mrb[28].mxu0  ;;  %1730 = vmatmul.mubr.msk.bf16.gmra.mrb[16].mxu1 %vm489_vm2, %v441_v60 }
 0x112   :  { %v1930_v1 = vpop.eup %1929  ;;  %v267_v2 = vadd.f32 %v2273_v21, %v266_v63  ;;  %v1683_v3 = vpop.f32.mrb[29].mxu0  ;;  %1733 = vmatprep.mubr.msk.bf16.mxu1 %vm2108_vm0, %v2107_v0 }
 0x113   :  { %v398_v6 = vadd.f32 1.0, %v1930_v1  ;;  %v269_v7 = vpop.f32.mrb[30].mxu0  ;;  %v422_v11 = vmul.f32 %v397_v62, %v322_v4 }
 0x114   :  { %v351_v8 = vmul.f32 0.70710677, %v267_v2  ;;  %v270_v9 = vadd.f32 %v2273_v21, %v269_v7  ;;  %v1684_v10 = vpop.f32.mrb[31].mxu0  ;;  %v326_v39 = vmul.f32 0.5, %v267_v2 }
 0x115   :  { %v423_v12 = vmul.f32 %v398_v6, %v323_v5 }
 0x116   :  { %1935 = verf.f32 %v351_v8  ;;  %v352_v13 = vmul.f32 0.70710677, %v270_v9  ;;  %v327_v40 = vmul.f32 0.5, %v270_v9 }
 0x117   :  { %v442_v14 = vpack.c.bf16 %v423_v12, %v422_v11 }
 0x118   :  { %v1932_v15 = vpop.eup %1931  ;;  %1937 = verf.f32 %v352_v13 }
 0x119   :  { %v399_v16 = vadd.f32 1.0, %v1932_v15  ;;  %v274_v17 = vpop.f32.mrb[32].mxu0  ;;  %1734 = vmatmul.mubr.msk.bf16.gmra.mrb[20].mxu1 %vm489_vm2, %v442_v14 }
 0x11a   :  { %v1934_v18 = vpop.eup %1933  ;;  %v275_v19 = vadd.f32 %v2273_v21, %v274_v17  ;;  %v1687_v20 = vpop.f32.mrb[33].mxu0  ;;  %1737 = vmatprep.mubr.msk.bf16.mxu1 %vm2108_vm0, %v2107_v0 }
 0x11b   :  { %v400_v24 = vadd.f32 1.0, %v1934_v18  ;;  %v277_v25 = vpop.f32.mrb[34].mxu0  ;;  %v424_v29 = vmul.f32 %v399_v16, %v324_v22 }
 0x11c   :  { %v353_v26 = vmul.f32 0.70710677, %v275_v19  ;;  %v278_v27 = vadd.f32 %v2273_v21, %v277_v25  ;;  %v1688_v28 = vpop.f32.mrb[35].mxu0  ;;  %v328_v56 = vmul.f32 0.5, %v275_v19 }
 0x11d   :  { %v425_v30 = vmul.f32 %v400_v24, %v325_v23 }
 0x11e   :  { %1939 = verf.f32 %v353_v26  ;;  %v354_v31 = vmul.f32 0.70710677, %v278_v27  ;;  %v329_v57 = vmul.f32 0.5, %v278_v27 }
 0x11f   :  { %v443_v32 = vpack.c.bf16 %v425_v30, %v424_v29 }
 0x120   :  { %v1936_v33 = vpop.eup %1935  ;;  %1941 = verf.f32 %v354_v31 }
 0x121   :  { %v401_v34 = vadd.f32 1.0, %v1936_v33  ;;  %v282_v35 = vpop.f32.mrb[36].mxu0  ;;  %1738 = vmatmul.mubr.msk.bf16.gmra.mrb[24].mxu1 %vm489_vm2, %v443_v32 }
 0x122   :  { %v1938_v36 = vpop.eup %1937  ;;  %v283_v37 = vadd.f32 %v2273_v21, %v282_v35  ;;  %v1691_v38 = vpop.f32.mrb[37].mxu0  ;;  %1741 = vmatprep.mubr.msk.bf16.mxu1 %vm2108_vm0, %v2107_v0 }
 0x123   :  { %v402_v41 = vadd.f32 1.0, %v1938_v36  ;;  %v285_v42 = vpop.f32.mrb[38].mxu0  ;;  %v426_v46 = vmul.f32 %v401_v34, %v326_v39 }
 0x124   :  { %v355_v43 = vmul.f32 0.70710677, %v283_v37  ;;  %v286_v44 = vadd.f32 %v2273_v21, %v285_v42  ;;  %v1692_v45 = vpop.f32.mrb[39].mxu0  ;;  %v330_v10 = vmul.f32 0.5, %v283_v37 }
 0x125   :  { %v427_v47 = vmul.f32 %v402_v41, %v327_v40 }
 0x126   :  { %1943 = verf.f32 %v355_v43  ;;  %v356_v48 = vmul.f32 0.70710677, %v286_v44  ;;  %v331_v11 = vmul.f32 0.5, %v286_v44 }
 0x127   :  { %v444_v49 = vpack.c.bf16 %v427_v47, %v426_v46 }
 0x128   :  { %v1940_v50 = vpop.eup %1939  ;;  %1945 = verf.f32 %v356_v48 }
 0x129   :  { %v403_v51 = vadd.f32 1.0, %v1940_v50  ;;  %v290_v52 = vpop.f32.mrb[40].mxu0  ;;  %1742 = vmatmul.mubr.msk.bf16.gmra.mrb[28].mxu1 %vm489_vm2, %v444_v49  ;;  %v1903_v50 = vld [vmem:[%s2623_s7] sm:$0xff]  }
 0x12a   :  { %v1942_v53 = vpop.eup %1941  ;;  %v291_v54 = vadd.f32 %v2273_v21, %v290_v52  ;;  %v1695_v55 = vpop.f32.mrb[41].mxu0  ;;  %1745 = vmatprep.mubr.msk.bf16.mxu1 %vm2108_vm0, %v2107_v0  ;;  %1822 = vmatpush3.bf16.msra.mxu1 %v1903_v50  ;;  %v2349_v52 = vld [vmem:[%s2624_s4] ss:$0 sm:$0xff] }
 0x12b   :  { %v404_v58 = vadd.f32 1.0, %v1942_v53  ;;  %v293_v59 = vpop.f32.mrb[42].mxu0  ;;  %v428_v63 = vmul.f32 %v403_v51, %v328_v56  ;;  %v1904_v51 = vld [vmem:[%s2623_s7 + $0x8] sm:$0xff]   ;;  %1823 = vmatprep.subr.bf16.mxu1 %v2107_v0  ;;  %v1905_v53 = vld [vmem:[%s2623_s7 + $0x10] sm:$0xff]  }
 0x12c   :  { %v357_v60 = vmul.f32 0.70710677, %v291_v54  ;;  %v294_v61 = vadd.f32 %v2273_v21, %v293_v59  ;;  %v1696_v62 = vpop.f32.mrb[43].mxu0  ;;  %v332_v28 = vmul.f32 0.5, %v291_v54 }
 0x12d   :  { %v429_v1 = vmul.f32 %v404_v58, %v329_v57 }
 0x12e   :  { %1947 = verf.f32 %v357_v60  ;;  %v358_v2 = vmul.f32 0.70710677, %v294_v61  ;;  %v333_v29 = vmul.f32 0.5, %v294_v61  ;;  %1824 = vmatpush3.bf16.msra.mxu1 %v1904_v51  ;;  %v1906_v61 = vld [vmem:[%s2623_s7 + $0x18] sm:$0xff]  }
 0x12f   :  { %v445_v3 = vpack.c.bf16 %v429_v1, %v428_v63  ;;  %1825 = vmatprep.subr.bf16.mxu1 %v2107_v0 }
 0x130   :  { %v1944_v4 = vpop.eup %1943  ;;  %1949 = verf.f32 %v358_v2 }
 0x131   :  { %v405_v5 = vadd.f32 1.0, %v1944_v4  ;;  %v298_v6 = vpop.f32.mrb[44].mxu0  ;;  %1746 = vmatmul.mubr.msk.bf16.gmra.mrb[32].mxu1 %vm489_vm2, %v445_v3 }
 0x132   :  { %v1946_v7 = vpop.eup %1945  ;;  %v299_v8 = vadd.f32 %v2273_v21, %v298_v6  ;;  %v1699_v9 = vpop.f32.mrb[45].mxu0  ;;  %1749 = vmatprep.mubr.msk.bf16.mxu1 %vm2108_vm0, %v2107_v0  ;;  %1826 = vmatpush3.bf16.msra.mxu1 %v1905_v53 }
 0x133   :  { %v406_v12 = vadd.f32 1.0, %v1946_v7  ;;  %v301_v13 = vpop.f32.mrb[46].mxu0  ;;  %v430_v17 = vmul.f32 %v405_v5, %v330_v10  ;;  %1827 = vmatprep.subr.bf16.mxu1 %v2107_v0 }
 0x134   :  { %v359_v14 = vmul.f32 0.70710677, %v299_v8  ;;  %v302_v15 = vadd.f32 %v2273_v21, %v301_v13  ;;  %v1700_v16 = vpop.f32.mrb[47].mxu0 }
 0x135   :  { %v431_v18 = vmul.f32 %v406_v12, %v331_v11 }
 0x136   :  { %1951 = verf.f32 %v359_v14  ;;  %v360_v19 = vmul.f32 0.70710677, %v302_v15  ;;  %v335_v40 = vmul.f32 0.5, %v302_v15  ;;  %1828 = vmatpush3.bf16.msra.mxu1 %v1906_v61 }
 0x137   :  { %v446_v20 = vpack.c.bf16 %v431_v18, %v430_v17 }
 0x138   :  { %v1948_v22 = vpop.eup %1947  ;;  %1953 = verf.f32 %v360_v19 }
 0x139   :  { %v407_v23 = vadd.f32 1.0, %v1948_v22  ;;  %v306_v24 = vpop.f32.mrb[48].mxu0  ;;  %1750 = vmatmul.mubr.msk.bf16.gmra.mrb[36].mxu1 %vm489_vm2, %v446_v20 }
 0x13a   :  { %v1950_v25 = vpop.eup %1949  ;;  %v307_v26 = vadd.f32 %v2273_v21, %v306_v24  ;;  %v1703_v27 = vpop.f32.mrb[49].mxu0  ;;  %1753 = vmatprep.mubr.msk.bf16.mxu1 %vm2108_vm0, %v2107_v0  ;;  %v334_v21 = vmul.f32 0.5, %v299_v8 }
 0x13b   :  { %v408_v30 = vadd.f32 1.0, %v1950_v25  ;;  %v309_v31 = vpop.f32.mrb[50].mxu0  ;;  %v432_v34 = vmul.f32 %v407_v23, %v332_v28 }
 0x13c   :  { %v361_v32 = vmul.f32 0.70710677, %v307_v26  ;;  %v1704_v33 = vpop.f32.mrb[51].mxu0  ;;  %v336_v46 = vmul.f32 0.5, %v307_v26 }
 0x13d   :  { %v433_v35 = vmul.f32 %v408_v30, %v333_v29 }
 0x13e   :  { %1955 = verf.f32 %v361_v32 }
 0x13f   :  { %v447_v36 = vpack.c.bf16 %v433_v35, %v432_v34 }
 0x140   :  { %v1952_v37 = vpop.eup %1951 }
 0x141   :  { %v409_v38 = vadd.f32 1.0, %v1952_v37  ;;  %1754 = vmatmul.mubr.msk.bf16.gmra.mrb[40].mxu1 %vm489_vm2, %v447_v36 }
 0x142   :  { %v1954_v39 = vpop.eup %1953  ;;  %1757 = vmatprep.mubr.msk.bf16.mxu1 %vm2108_vm0, %v2107_v0 }
 0x143   :  { %v410_v41 = vadd.f32 1.0, %v1954_v39  ;;  %v434_v42 = vmul.f32 %v409_v38, %v334_v21 }
 0x145   :  { %v435_v43 = vmul.f32 %v410_v41, %v335_v40 }
 0x147   :  { %v448_v44 = vpack.c.bf16 %v435_v43, %v434_v42 }
 0x148   :  { %v1956_v45 = vpop.eup %1955 }
 0x149   :  { %v411_v47 = vadd.f32 1.0, %v1956_v45  ;;  %1758 = vmatmul.mubr.msk.bf16.gmra.mrb[44].mxu1 %vm489_vm2, %v448_v44 }
 0x14a   :  { %1761 = vmatprep.mubr.msk.bf16.mxu1 %vm2108_vm0, %v2107_v0 }
 0x14b   :  { %v436_v48 = vmul.f32 %v411_v47, %v336_v46 }
 0x14d   :  { %v449_v49 = vpack.c.bf16 %v436_v48, %v436_v48 }
 0x151   :  { %1762 = vmatmul.mubr.msk.bf16.gmra.mrb[48].mxu1 %vm489_vm2, %v449_v49 }
 0x152   :  { %1829 = vmatprep.mubr.msk.bf16.mxu1 %vm2108_vm0, %v2107_v0 }
 0x1c4   :  { %v563_v54 = vpop.f32.mrb[0].mxu1 }
 0x1c5   :  { %v564_v55 = vadd.f32 %v2349_v52, %v563_v54  ;;  %v1715_v56 = vpop.f32.mrb[1].mxu1 }
 0x1c6   :  { %v566_v57 = vpop.f32.mrb[2].mxu1 }
 0x1c7   :  { %v690_v58 = vmul.f32 0.70710677, %v564_v55  ;;  %v567_v59 = vadd.f32 %v2349_v52, %v566_v57  ;;  %v1716_v60 = vpop.f32.mrb[3].mxu1  ;;  %v665_v14 = vmul.f32 0.5, %v564_v55 }
 0x1c9   :  { %1957 = verf.f32 %v690_v58  ;;  %v691_v62 = vmul.f32 0.70710677, %v567_v59  ;;  %v666_v15 = vmul.f32 0.5, %v567_v59 }
 0x1cb   :  { %1959 = verf.f32 %v691_v62 }
 0x1cc   :  { %v571_v63 = vpop.f32.mrb[4].mxu1 }
 0x1cd   :  { %v572_v1 = vadd.f32 %v2349_v52, %v571_v63  ;;  %v1719_v2 = vpop.f32.mrb[5].mxu1 }
 0x1ce   :  { %v574_v3 = vpop.f32.mrb[6].mxu1 }
 0x1cf   :  { %v692_v4 = vmul.f32 0.70710677, %v572_v1  ;;  %v575_v5 = vadd.f32 %v2349_v52, %v574_v3  ;;  %v1720_v6 = vpop.f32.mrb[7].mxu1  ;;  %v667_v32 = vmul.f32 0.5, %v572_v1 }
 0x1d1   :  { %1961 = verf.f32 %v692_v4  ;;  %v693_v7 = vmul.f32 0.70710677, %v575_v5  ;;  %v668_v33 = vmul.f32 0.5, %v575_v5 }
 0x1d3   :  { %v1958_v8 = vpop.eup %1957  ;;  %1963 = verf.f32 %v693_v7 }
 0x1d4   :  { %v740_v9 = vadd.f32 1.0, %v1958_v8  ;;  %v579_v10 = vpop.f32.mrb[8].mxu1 }
 0x1d5   :  { %v1960_v11 = vpop.eup %1959  ;;  %v580_v12 = vadd.f32 %v2349_v52, %v579_v10  ;;  %v1723_v13 = vpop.f32.mrb[9].mxu1 }
 0x1d6   :  { %v741_v16 = vadd.f32 1.0, %v1960_v11  ;;  %v582_v17 = vpop.f32.mrb[10].mxu1  ;;  %v765_v22 = vmul.f32 %v740_v9, %v665_v14 }
 0x1d7   :  { %v694_v18 = vmul.f32 0.70710677, %v580_v12  ;;  %v583_v19 = vadd.f32 %v2349_v52, %v582_v17  ;;  %v1724_v20 = vpop.f32.mrb[11].mxu1  ;;  %v669_v48 = vmul.f32 0.5, %v580_v12 }
 0x1d8   :  { %v766_v23 = vmul.f32 %v741_v16, %v666_v15 }
 0x1d9   :  { %1965 = verf.f32 %v694_v18  ;;  %v695_v24 = vmul.f32 0.70710677, %v583_v19  ;;  %v670_v49 = vmul.f32 0.5, %v583_v19 }
 0x1da   :  { %v790_v25 = vpack.c.bf16 %v766_v23, %v765_v22 }
 0x1db   :  { %v1962_v26 = vpop.eup %1961  ;;  %1967 = verf.f32 %v695_v24 }
 0x1dc   :  { %v742_v27 = vadd.f32 1.0, %v1962_v26  ;;  %v587_v28 = vpop.f32.mrb[12].mxu1  ;;  %1770 = vmatmul.mubr.msk.bf16.vlgmr.msra.gmra.mrb[52].mxu0 %vm826_vm3, %v790_v25 }
 0x1dd   :  { %v1964_v29 = vpop.eup %1963  ;;  %v588_v30 = vadd.f32 %v2349_v52, %v587_v28  ;;  %v1727_v31 = vpop.f32.mrb[13].mxu1  ;;  %1773 = vmatprep.mubr.msk.bf16.mxu0 %vm2108_vm0, %v2107_v0 }
 0x1de   :  { %v743_v34 = vadd.f32 1.0, %v1964_v29  ;;  %v590_v35 = vpop.f32.mrb[14].mxu1  ;;  %v767_v39 = vmul.f32 %v742_v27, %v667_v32 }
 0x1df   :  { %v696_v36 = vmul.f32 0.70710677, %v588_v30  ;;  %v591_v37 = vadd.f32 %v2349_v52, %v590_v35  ;;  %v1728_v38 = vpop.f32.mrb[15].mxu1  ;;  %v671_v3 = vmul.f32 0.5, %v588_v30 }
 0x1e0   :  { %v768_v21 = vmul.f32 %v743_v34, %v668_v33 }
 0x1e1   :  { %1969 = verf.f32 %v696_v36  ;;  %v697_v40 = vmul.f32 0.70710677, %v591_v37  ;;  %v672_v4 = vmul.f32 0.5, %v591_v37 }
 0x1e2   :  { %v791_v41 = vpack.c.bf16 %v768_v21, %v767_v39 }
 0x1e3   :  { %v1966_v42 = vpop.eup %1965  ;;  %1971 = verf.f32 %v697_v40 }
 0x1e4   :  { %v744_v43 = vadd.f32 1.0, %v1966_v42  ;;  %v595_v44 = vpop.f32.mrb[16].mxu1  ;;  %1774 = vmatmul.mubr.msk.bf16.gmra.mrb[56].mxu0 %vm826_vm3, %v791_v41 }
 0x1e5   :  { %v1968_v45 = vpop.eup %1967  ;;  %v596_v46 = vadd.f32 %v2349_v52, %v595_v44  ;;  %v1731_v47 = vpop.f32.mrb[17].mxu1  ;;  %1777 = vmatprep.mubr.msk.bf16.mxu0 %vm2108_vm0, %v2107_v0 }
 0x1e6   :  { %v745_v50 = vadd.f32 1.0, %v1968_v45  ;;  %v598_v51 = vpop.f32.mrb[18].mxu1  ;;  %v769_v56 = vmul.f32 %v744_v43, %v669_v48 }
 0x1e7   :  { %v698_v53 = vmul.f32 0.70710677, %v596_v46  ;;  %v599_v54 = vadd.f32 %v2349_v52, %v598_v51  ;;  %v1732_v55 = vpop.f32.mrb[19].mxu1  ;;  %v673_v20 = vmul.f32 0.5, %v596_v46 }
 0x1e8   :  { %v770_v57 = vmul.f32 %v745_v50, %v670_v49 }
 0x1e9   :  { %1973 = verf.f32 %v698_v53  ;;  %v699_v58 = vmul.f32 0.70710677, %v599_v54  ;;  %v674_v22 = vmul.f32 0.5, %v599_v54 }
 0x1ea   :  { %v792_v59 = vpack.c.bf16 %v770_v57, %v769_v56 }
 0x1eb   :  { %v1970_v60 = vpop.eup %1969  ;;  %1975 = verf.f32 %v699_v58 }
 0x1ec   :  { %v746_v61 = vadd.f32 1.0, %v1970_v60  ;;  %v603_v62 = vpop.f32.mrb[20].mxu1  ;;  %1778 = vmatmul.mubr.msk.bf16.gmra.mrb[60].mxu0 %vm826_vm3, %v792_v59 }
 0x1ed   :  { %v1972_v63 = vpop.eup %1971  ;;  %v604_v1 = vadd.f32 %v2349_v52, %v603_v62  ;;  %v1735_v2 = vpop.f32.mrb[21].mxu1  ;;  %1781 = vmatprep.mubr.msk.bf16.mxu0 %vm2108_vm0, %v2107_v0 }
 0x1ee   :  { %v747_v5 = vadd.f32 1.0, %v1972_v63  ;;  %v606_v6 = vpop.f32.mrb[22].mxu1  ;;  %v771_v10 = vmul.f32 %v746_v61, %v671_v3 }
 0x1ef   :  { %v700_v7 = vmul.f32 0.70710677, %v604_v1  ;;  %v607_v8 = vadd.f32 %v2349_v52, %v606_v6  ;;  %v1736_v9 = vpop.f32.mrb[23].mxu1  ;;  %v675_v38 = vmul.f32 0.5, %v604_v1 }
 0x1f0   :  { %v772_v11 = vmul.f32 %v747_v5, %v672_v4 }
 0x1f1   :  { %1977 = verf.f32 %v700_v7  ;;  %v701_v12 = vmul.f32 0.70710677, %v607_v8  ;;  %v676_v39 = vmul.f32 0.5, %v607_v8 }
 0x1f2   :  { %v793_v13 = vpack.c.bf16 %v772_v11, %v771_v10 }
 0x1f3   :  { %v1974_v14 = vpop.eup %1973  ;;  %1979 = verf.f32 %v701_v12 }
 0x1f4   :  { %v748_v15 = vadd.f32 1.0, %v1974_v14  ;;  %v611_v16 = vpop.f32.mrb[24].mxu1  ;;  %1782 = vmatmul.mubr.msk.bf16.gmra.mrb[64].mxu0 %vm826_vm3, %v793_v13 }
 0x1f5   :  { %v1976_v17 = vpop.eup %1975  ;;  %v612_v18 = vadd.f32 %v2349_v52, %v611_v16  ;;  %v1739_v19 = vpop.f32.mrb[25].mxu1  ;;  %1785 = vmatprep.mubr.msk.bf16.mxu0 %vm2108_vm0, %v2107_v0 }
 0x1f6   :  { %v749_v23 = vadd.f32 1.0, %v1976_v17  ;;  %v614_v24 = vpop.f32.mrb[26].mxu1  ;;  %v773_v28 = vmul.f32 %v748_v15, %v673_v20 }
 0x1f7   :  { %v702_v25 = vmul.f32 0.70710677, %v612_v18  ;;  %v615_v26 = vadd.f32 %v2349_v52, %v614_v24  ;;  %v1740_v27 = vpop.f32.mrb[27].mxu1  ;;  %v677_v55 = vmul.f32 0.5, %v612_v18 }
 0x1f8   :  { %v774_v29 = vmul.f32 %v749_v23, %v674_v22 }
 0x1f9   :  { %1981 = verf.f32 %v702_v25  ;;  %v703_v30 = vmul.f32 0.70710677, %v615_v26  ;;  %v678_v56 = vmul.f32 0.5, %v615_v26 }
 0x1fa   :  { %v794_v31 = vpack.c.bf16 %v774_v29, %v773_v28 }
 0x1fb   :  { %v1978_v32 = vpop.eup %1977  ;;  %1983 = verf.f32 %v703_v30 }
 0x1fc   :  { %v750_v33 = vadd.f32 1.0, %v1978_v32  ;;  %v619_v34 = vpop.f32.mrb[28].mxu1  ;;  %1786 = vmatmul.mubr.msk.bf16.gmra.mrb[68].mxu0 %vm826_vm3, %v794_v31 }
 0x1fd   :  { %v1980_v35 = vpop.eup %1979  ;;  %v620_v36 = vadd.f32 %v2349_v52, %v619_v34  ;;  %v1743_v37 = vpop.f32.mrb[29].mxu1  ;;  %1789 = vmatprep.mubr.msk.bf16.mxu0 %vm2108_vm0, %v2107_v0 }
 0x1fe   :  { %v751_v21 = vadd.f32 1.0, %v1980_v35  ;;  %v622_v40 = vpop.f32.mrb[30].mxu1  ;;  %v775_v44 = vmul.f32 %v750_v33, %v675_v38 }
 0x1ff   :  { %v704_v41 = vmul.f32 0.70710677, %v620_v36  ;;  %v623_v42 = vadd.f32 %v2349_v52, %v622_v40  ;;  %v1744_v43 = vpop.f32.mrb[31].mxu1  ;;  %v679_v9 = vmul.f32 0.5, %v620_v36 }
 0x200   :  { %v776_v45 = vmul.f32 %v751_v21, %v676_v39 }
 0x201   :  { %1985 = verf.f32 %v704_v41  ;;  %v705_v46 = vmul.f32 0.70710677, %v623_v42  ;;  %v680_v10 = vmul.f32 0.5, %v623_v42 }
 0x202   :  { %v795_v47 = vpack.c.bf16 %v776_v45, %v775_v44 }
 0x203   :  { %v1982_v48 = vpop.eup %1981  ;;  %1987 = verf.f32 %v705_v46 }
 0x204   :  { %v752_v49 = vadd.f32 1.0, %v1982_v48  ;;  %v627_v50 = vpop.f32.mrb[32].mxu1  ;;  %1790 = vmatmul.mubr.msk.bf16.gmra.mrb[72].mxu0 %vm826_vm3, %v795_v47 }
 0x205   :  { %v1984_v51 = vpop.eup %1983  ;;  %v628_v53 = vadd.f32 %v2349_v52, %v627_v50  ;;  %v1747_v54 = vpop.f32.mrb[33].mxu1  ;;  %1793 = vmatprep.mubr.msk.bf16.mxu0 %vm2108_vm0, %v2107_v0 }
 0x206   :  { %v753_v57 = vadd.f32 1.0, %v1984_v51  ;;  %v630_v58 = vpop.f32.mrb[34].mxu1  ;;  %v777_v62 = vmul.f32 %v752_v49, %v677_v55 }
 0x207   :  { %v706_v59 = vmul.f32 0.70710677, %v628_v53  ;;  %v631_v60 = vadd.f32 %v2349_v52, %v630_v58  ;;  %v1748_v61 = vpop.f32.mrb[35].mxu1  ;;  %v681_v27 = vmul.f32 0.5, %v628_v53 }
 0x208   :  { %v778_v63 = vmul.f32 %v753_v57, %v678_v56 }
 0x209   :  { %1989 = verf.f32 %v706_v59  ;;  %v707_v1 = vmul.f32 0.70710677, %v631_v60  ;;  %v682_v28 = vmul.f32 0.5, %v631_v60 }
 0x20a   :  { %v796_v2 = vpack.c.bf16 %v778_v63, %v777_v62 }
 0x20b   :  { %v1986_v3 = vpop.eup %1985  ;;  %1991 = verf.f32 %v707_v1 }
 0x20c   :  { %v754_v4 = vadd.f32 1.0, %v1986_v3  ;;  %v635_v5 = vpop.f32.mrb[36].mxu1  ;;  %1794 = vmatmul.mubr.msk.bf16.gmra.mrb[76].mxu0 %vm826_vm3, %v796_v2 }
 0x20d   :  { %v1988_v6 = vpop.eup %1987  ;;  %v636_v7 = vadd.f32 %v2349_v52, %v635_v5  ;;  %v1751_v8 = vpop.f32.mrb[37].mxu1  ;;  %1797 = vmatprep.mubr.msk.bf16.mxu0 %vm2108_vm0, %v2107_v0 }
 0x20e   :  { %v755_v11 = vadd.f32 1.0, %v1988_v6  ;;  %v638_v12 = vpop.f32.mrb[38].mxu1  ;;  %v779_v16 = vmul.f32 %v754_v4, %v679_v9 }
 0x20f   :  { %v708_v13 = vmul.f32 0.70710677, %v636_v7  ;;  %v639_v14 = vadd.f32 %v2349_v52, %v638_v12  ;;  %v1752_v15 = vpop.f32.mrb[39].mxu1  ;;  %v683_v43 = vmul.f32 0.5, %v636_v7 }
 0x210   :  { %v780_v17 = vmul.f32 %v755_v11, %v680_v10 }
 0x211   :  { %1993 = verf.f32 %v708_v13  ;;  %v709_v18 = vmul.f32 0.70710677, %v639_v14  ;;  %v684_v44 = vmul.f32 0.5, %v639_v14 }
 0x212   :  { %v797_v19 = vpack.c.bf16 %v780_v17, %v779_v16 }
 0x213   :  { %v1990_v20 = vpop.eup %1989  ;;  %1995 = verf.f32 %v709_v18 }
 0x214   :  { %v756_v22 = vadd.f32 1.0, %v1990_v20  ;;  %v643_v23 = vpop.f32.mrb[40].mxu1  ;;  %1798 = vmatmul.mubr.msk.bf16.gmra.mrb[80].mxu0 %vm826_vm3, %v797_v19  ;;  %v2424_v20 = vld [vmem:[%s2625_s6] ss:$0 sm:$0xff] }
 0x215   :  { %v1992_v24 = vpop.eup %1991  ;;  %v644_v25 = vadd.f32 %v2349_v52, %v643_v23  ;;  %v1755_v26 = vpop.f32.mrb[41].mxu1  ;;  %1801 = vmatprep.mubr.msk.bf16.mxu0 %vm2108_vm0, %v2107_v0 }
 0x216   :  { %v757_v29 = vadd.f32 1.0, %v1992_v24  ;;  %v646_v30 = vpop.f32.mrb[42].mxu1  ;;  %v781_v34 = vmul.f32 %v756_v22, %v681_v27 }
 0x217   :  { %v710_v31 = vmul.f32 0.70710677, %v644_v25  ;;  %v647_v32 = vadd.f32 %v2349_v52, %v646_v30  ;;  %v1756_v33 = vpop.f32.mrb[43].mxu1  ;;  %v685_v61 = vmul.f32 0.5, %v644_v25 }
 0x218   :  { %v782_v35 = vmul.f32 %v757_v29, %v682_v28 }
 0x219   :  { %1997 = verf.f32 %v710_v31  ;;  %v711_v36 = vmul.f32 0.70710677, %v647_v32  ;;  %v686_v62 = vmul.f32 0.5, %v647_v32 }
 0x21a   :  { %v798_v37 = vpack.c.bf16 %v782_v35, %v781_v34 }
 0x21b   :  { %v1994_v38 = vpop.eup %1993  ;;  %1999 = verf.f32 %v711_v36 }
 0x21c   :  { %v758_v39 = vadd.f32 1.0, %v1994_v38  ;;  %v651_v21 = vpop.f32.mrb[44].mxu1  ;;  %1802 = vmatmul.mubr.msk.bf16.gmra.mrb[84].mxu0 %vm826_vm3, %v798_v37 }
 0x21d   :  { %v1996_v40 = vpop.eup %1995  ;;  %v652_v41 = vadd.f32 %v2349_v52, %v651_v21  ;;  %v1759_v42 = vpop.f32.mrb[45].mxu1  ;;  %1805 = vmatprep.mubr.msk.bf16.mxu0 %vm2108_vm0, %v2107_v0 }
 0x21e   :  { %v759_v45 = vadd.f32 1.0, %v1996_v40  ;;  %v654_v46 = vpop.f32.mrb[46].mxu1  ;;  %v783_v50 = vmul.f32 %v758_v39, %v683_v43 }
 0x21f   :  { %v712_v47 = vmul.f32 0.70710677, %v652_v41  ;;  %v655_v48 = vadd.f32 %v2349_v52, %v654_v46  ;;  %v1760_v49 = vpop.f32.mrb[47].mxu1 }
 0x220   :  { %v784_v51 = vmul.f32 %v759_v45, %v684_v44 }
 0x221   :  { %2001 = verf.f32 %v712_v47  ;;  %v713_v53 = vmul.f32 0.70710677, %v655_v48  ;;  %v688_v10 = vmul.f32 0.5, %v655_v48 }
 0x222   :  { %v799_v54 = vpack.c.bf16 %v784_v51, %v783_v50 }
 0x223   :  { %v1998_v55 = vpop.eup %1997  ;;  %2003 = verf.f32 %v713_v53 }
 0x224   :  { %v760_v56 = vadd.f32 1.0, %v1998_v55  ;;  %v659_v57 = vpop.f32.mrb[48].mxu1  ;;  %1806 = vmatmul.mubr.msk.bf16.gmra.mrb[88].mxu0 %vm826_vm3, %v799_v54 }
 0x225   :  { %v2000_v58 = vpop.eup %1999  ;;  %v660_v59 = vadd.f32 %v2349_v52, %v659_v57  ;;  %v1763_v60 = vpop.f32.mrb[49].mxu1  ;;  %1809 = vmatprep.mubr.msk.bf16.mxu0 %vm2108_vm0, %v2107_v0  ;;  %v687_v52 = vmul.f32 0.5, %v652_v41 }
 0x226   :  { %v761_v63 = vadd.f32 1.0, %v2000_v58  ;;  %v662_v1 = vpop.f32.mrb[50].mxu1  ;;  %v785_v4 = vmul.f32 %v760_v56, %v685_v61 }
 0x227   :  { %v714_v2 = vmul.f32 0.70710677, %v660_v59  ;;  %v1764_v3 = vpop.f32.mrb[51].mxu1  ;;  %v689_v16 = vmul.f32 0.5, %v660_v59 }
 0x228   :  { %v786_v5 = vmul.f32 %v761_v63, %v686_v62 }
 0x229   :  { %2005 = verf.f32 %v714_v2 }
 0x22a   :  { %v800_v6 = vpack.c.bf16 %v786_v5, %v785_v4 }
 0x22b   :  { %v2002_v7 = vpop.eup %2001 }
 0x22c   :  { %v762_v8 = vadd.f32 1.0, %v2002_v7  ;;  %1810 = vmatmul.mubr.msk.bf16.gmra.mrb[92].mxu0 %vm826_vm3, %v800_v6 }
 0x22d   :  { %v2004_v9 = vpop.eup %2003  ;;  %1813 = vmatprep.mubr.msk.bf16.mxu0 %vm2108_vm0, %v2107_v0 }
 0x22e   :  { %v763_v11 = vadd.f32 1.0, %v2004_v9  ;;  %v787_v12 = vmul.f32 %v762_v8, %v687_v52 }
 0x230   :  { %v788_v13 = vmul.f32 %v763_v11, %v688_v10 }
 0x232   :  { %v801_v14 = vpack.c.bf16 %v788_v13, %v787_v12 }
 0x233   :  { %v2006_v15 = vpop.eup %2005 }
 0x234   :  { %v764_v17 = vadd.f32 1.0, %v2006_v15  ;;  %1814 = vmatmul.mubr.msk.bf16.gmra.mrb[96].mxu0 %vm826_vm3, %v801_v14 }
 0x235   :  { %1817 = vmatprep.mubr.msk.bf16.mxu0 %vm2108_vm0, %v2107_v0 }
 0x236   :  { %v789_v18 = vmul.f32 %v764_v17, %v689_v16 }
 0x238   :  { %v802_v19 = vpack.c.bf16 %v789_v18, %v789_v18 }
 0x23c   :  { %1818 = vmatmul.mubr.msk.bf16.gmra.mrb[100].mxu0 %vm826_vm3, %v802_v19 }
 0x2af   :  { %v900_v22 = vpop.f32.mrb[52].mxu0 }
 0x2b0   :  { %v901_v23 = vadd.f32 %v2424_v20, %v900_v22  ;;  %v1771_v24 = vpop.f32.mrb[53].mxu0 }
 0x2b1   :  { %v903_v25 = vpop.f32.mrb[54].mxu0 }
 0x2b2   :  { %v1027_v26 = vmul.f32 0.70710677, %v901_v23  ;;  %v904_v27 = vadd.f32 %v2424_v20, %v903_v25  ;;  %v1772_v28 = vpop.f32.mrb[55].mxu0  ;;  %v1002_v43 = vmul.f32 0.5, %v901_v23 }
 0x2b4   :  { %2007 = verf.f32 %v1027_v26  ;;  %v1028_v29 = vmul.f32 0.70710677, %v904_v27  ;;  %v1003_v44 = vmul.f32 0.5, %v904_v27 }
 0x2b6   :  { %2009 = verf.f32 %v1028_v29 }
 0x2b7   :  { %v908_v30 = vpop.f32.mrb[56].mxu0 }
 0x2b8   :  { %v909_v31 = vadd.f32 %v2424_v20, %v908_v30  ;;  %v1775_v32 = vpop.f32.mrb[57].mxu0 }
 0x2b9   :  { %v911_v33 = vpop.f32.mrb[58].mxu0 }
 0x2ba   :  { %v1029_v34 = vmul.f32 0.70710677, %v909_v31  ;;  %v912_v35 = vadd.f32 %v2424_v20, %v911_v33  ;;  %v1776_v36 = vpop.f32.mrb[59].mxu0  ;;  %v1004_v61 = vmul.f32 0.5, %v909_v31 }
 0x2bc   :  { %2011 = verf.f32 %v1029_v34  ;;  %v1030_v37 = vmul.f32 0.70710677, %v912_v35  ;;  %v1005_v62 = vmul.f32 0.5, %v912_v35 }
 0x2be   :  { %v2008_v38 = vpop.eup %2007  ;;  %2013 = verf.f32 %v1030_v37 }
 0x2bf   :  { %v1077_v39 = vadd.f32 1.0, %v2008_v38  ;;  %v916_v21 = vpop.f32.mrb[60].mxu0 }
 0x2c0   :  { %v2010_v40 = vpop.eup %2009  ;;  %v917_v41 = vadd.f32 %v2424_v20, %v916_v21  ;;  %v1779_v42 = vpop.f32.mrb[61].mxu0 }
 0x2c1   :  { %v1078_v45 = vadd.f32 1.0, %v2010_v40  ;;  %v919_v46 = vpop.f32.mrb[62].mxu0  ;;  %v1102_v50 = vmul.f32 %v1077_v39, %v1002_v43 }
 0x2c2   :  { %v1031_v47 = vmul.f32 0.70710677, %v917_v41  ;;  %v920_v48 = vadd.f32 %v2424_v20, %v919_v46  ;;  %v1780_v49 = vpop.f32.mrb[63].mxu0  ;;  %v1006_v14 = vmul.f32 0.5, %v917_v41 }
 0x2c3   :  { %v1103_v51 = vmul.f32 %v1078_v45, %v1003_v44 }
 0x2c4   :  { %2015 = verf.f32 %v1031_v47  ;;  %v1032_v53 = vmul.f32 0.70710677, %v920_v48  ;;  %v1007_v15 = vmul.f32 0.5, %v920_v48 }
 0x2c5   :  { %v1127_v54 = vpack.c.bf16 %v1103_v51, %v1102_v50 }
 0x2c6   :  { %v2012_v55 = vpop.eup %2011  ;;  %2017 = verf.f32 %v1032_v53 }
 0x2c7   :  { %v1079_v56 = vadd.f32 1.0, %v2012_v55  ;;  %v924_v57 = vpop.f32.mrb[64].mxu0  ;;  %1830 = vmatmul.mubr.msk.bf16.vlgmr.msra.gmra.mrb[52].mxu1 %vm489_vm2, %v1127_v54 }
 0x2c8   :  { %v2014_v58 = vpop.eup %2013  ;;  %v925_v59 = vadd.f32 %v2424_v20, %v924_v57  ;;  %v1783_v60 = vpop.f32.mrb[65].mxu0  ;;  %1833 = vmatprep.mubr.msk.bf16.mxu1 %vm2108_vm0, %v2107_v0 }
 0x2c9   :  { %v1080_v63 = vadd.f32 1.0, %v2014_v58  ;;  %v927_v1 = vpop.f32.mrb[66].mxu0  ;;  %v1104_v5 = vmul.f32 %v1079_v56, %v1004_v61 }
 0x2ca   :  { %v1033_v2 = vmul.f32 0.70710677, %v925_v59  ;;  %v928_v3 = vadd.f32 %v2424_v20, %v927_v1  ;;  %v1784_v4 = vpop.f32.mrb[67].mxu0  ;;  %v1008_v33 = vmul.f32 0.5, %v925_v59 }
 0x2cb   :  { %v1105_v6 = vmul.f32 %v1080_v63, %v1005_v62 }
 0x2cc   :  { %2019 = verf.f32 %v1033_v2  ;;  %v1034_v7 = vmul.f32 0.70710677, %v928_v3  ;;  %v1009_v34 = vmul.f32 0.5, %v928_v3 }
 0x2cd   :  { %v1128_v8 = vpack.c.bf16 %v1105_v6, %v1104_v5 }
 0x2ce   :  { %v2016_v9 = vpop.eup %2015  ;;  %2021 = verf.f32 %v1034_v7 }
 0x2cf   :  { %v1081_v52 = vadd.f32 1.0, %v2016_v9  ;;  %v932_v10 = vpop.f32.mrb[68].mxu0  ;;  %1834 = vmatmul.mubr.msk.bf16.gmra.mrb[56].mxu1 %vm489_vm2, %v1128_v8 }
 0x2d0   :  { %v2018_v11 = vpop.eup %2017  ;;  %v933_v12 = vadd.f32 %v2424_v20, %v932_v10  ;;  %v1787_v13 = vpop.f32.mrb[69].mxu0  ;;  %1837 = vmatprep.mubr.msk.bf16.mxu1 %vm2108_vm0, %v2107_v0 }
 0x2d1   :  { %v1082_v16 = vadd.f32 1.0, %v2018_v11  ;;  %v935_v17 = vpop.f32.mrb[70].mxu0  ;;  %v1106_v23 = vmul.f32 %v1081_v52, %v1006_v14 }
 0x2d2   :  { %v1035_v18 = vmul.f32 0.70710677, %v933_v12  ;;  %v936_v19 = vadd.f32 %v2424_v20, %v935_v17  ;;  %v1788_v22 = vpop.f32.mrb[71].mxu0  ;;  %v1010_v49 = vmul.f32 0.5, %v933_v12 }
 0x2d3   :  { %v1107_v24 = vmul.f32 %v1082_v16, %v1007_v15 }
 0x2d4   :  { %2023 = verf.f32 %v1035_v18  ;;  %v1036_v25 = vmul.f32 0.70710677, %v936_v19  ;;  %v1011_v50 = vmul.f32 0.5, %v936_v19 }
 0x2d5   :  { %v1129_v26 = vpack.c.bf16 %v1107_v24, %v1106_v23 }
 0x2d6   :  { %v2020_v27 = vpop.eup %2019  ;;  %2025 = verf.f32 %v1036_v25 }
 0x2d7   :  { %v1083_v28 = vadd.f32 1.0, %v2020_v27  ;;  %v940_v29 = vpop.f32.mrb[72].mxu0  ;;  %1838 = vmatmul.mubr.msk.bf16.gmra.mrb[60].mxu1 %vm489_vm2, %v1129_v26 }
 0x2d8   :  { %v2022_v30 = vpop.eup %2021  ;;  %v941_v31 = vadd.f32 %v2424_v20, %v940_v29  ;;  %v1791_v32 = vpop.f32.mrb[73].mxu0  ;;  %1841 = vmatprep.mubr.msk.bf16.mxu1 %vm2108_vm0, %v2107_v0 }
 0x2d9   :  { %v1084_v35 = vadd.f32 1.0, %v2022_v30  ;;  %v943_v36 = vpop.f32.mrb[74].mxu0  ;;  %v1108_v21 = vmul.f32 %v1083_v28, %v1008_v33 }
 0x2da   :  { %v1037_v37 = vmul.f32 0.70710677, %v941_v31  ;;  %v944_v38 = vadd.f32 %v2424_v20, %v943_v36  ;;  %v1792_v39 = vpop.f32.mrb[75].mxu0  ;;  %v1012_v4 = vmul.f32 0.5, %v941_v31 }
 0x2db   :  { %v1109_v40 = vmul.f32 %v1084_v35, %v1009_v34 }
 0x2dc   :  { %2027 = verf.f32 %v1037_v37  ;;  %v1038_v41 = vmul.f32 0.70710677, %v944_v38  ;;  %v1013_v5 = vmul.f32 0.5, %v944_v38 }
 0x2dd   :  { %v1130_v42 = vpack.c.bf16 %v1109_v40, %v1108_v21 }
 0x2de   :  { %v2024_v43 = vpop.eup %2023  ;;  %2029 = verf.f32 %v1038_v41 }
 0x2df   :  { %v1085_v44 = vadd.f32 1.0, %v2024_v43  ;;  %v948_v45 = vpop.f32.mrb[76].mxu0  ;;  %1842 = vmatmul.mubr.msk.bf16.gmra.mrb[64].mxu1 %vm489_vm2, %v1130_v42 }
 0x2e0   :  { %v2026_v46 = vpop.eup %2025  ;;  %v949_v47 = vadd.f32 %v2424_v20, %v948_v45  ;;  %v1795_v48 = vpop.f32.mrb[77].mxu0  ;;  %1845 = vmatprep.mubr.msk.bf16.mxu1 %vm2108_vm0, %v2107_v0 }
 0x2e1   :  { %v1086_v51 = vadd.f32 1.0, %v2026_v46  ;;  %v951_v53 = vpop.f32.mrb[78].mxu0  ;;  %v1110_v57 = vmul.f32 %v1085_v44, %v1010_v49 }
 0x2e2   :  { %v1039_v54 = vmul.f32 0.70710677, %v949_v47  ;;  %v952_v55 = vadd.f32 %v2424_v20, %v951_v53  ;;  %v1796_v56 = vpop.f32.mrb[79].mxu0  ;;  %v1014_v22 = vmul.f32 0.5, %v949_v47 }
 0x2e3   :  { %v1111_v58 = vmul.f32 %v1086_v51, %v1011_v50 }
 0x2e4   :  { %2031 = verf.f32 %v1039_v54  ;;  %v1040_v59 = vmul.f32 0.70710677, %v952_v55  ;;  %v1015_v23 = vmul.f32 0.5, %v952_v55 }
 0x2e5   :  { %v1131_v60 = vpack.c.bf16 %v1111_v58, %v1110_v57 }
 0x2e6   :  { %v2028_v61 = vpop.eup %2027  ;;  %2033 = verf.f32 %v1040_v59 }
 0x2e7   :  { %v1087_v62 = vadd.f32 1.0, %v2028_v61  ;;  %v956_v63 = vpop.f32.mrb[80].mxu0  ;;  %1846 = vmatmul.mubr.msk.bf16.gmra.mrb[68].mxu1 %vm489_vm2, %v1131_v60 }
 0x2e8   :  { %v2030_v1 = vpop.eup %2029  ;;  %v957_v2 = vadd.f32 %v2424_v20, %v956_v63  ;;  %v1799_v3 = vpop.f32.mrb[81].mxu0  ;;  %1849 = vmatprep.mubr.msk.bf16.mxu1 %vm2108_vm0, %v2107_v0 }
 0x2e9   :  { %v1088_v6 = vadd.f32 1.0, %v2030_v1  ;;  %v959_v7 = vpop.f32.mrb[82].mxu0  ;;  %v1112_v10 = vmul.f32 %v1087_v62, %v1012_v4 }
 0x2ea   :  { %v1041_v8 = vmul.f32 0.70710677, %v957_v2  ;;  %v960_v9 = vadd.f32 %v2424_v20, %v959_v7  ;;  %v1800_v52 = vpop.f32.mrb[83].mxu0  ;;  %v1016_v39 = vmul.f32 0.5, %v957_v2 }
 0x2eb   :  { %v1113_v11 = vmul.f32 %v1088_v6, %v1013_v5 }
 0x2ec   :  { %2035 = verf.f32 %v1041_v8  ;;  %v1042_v12 = vmul.f32 0.70710677, %v960_v9  ;;  %v1017_v21 = vmul.f32 0.5, %v960_v9 }
 0x2ed   :  { %v1132_v13 = vpack.c.bf16 %v1113_v11, %v1112_v10 }
 0x2ee   :  { %v2032_v14 = vpop.eup %2031  ;;  %2037 = verf.f32 %v1042_v12 }
 0x2ef   :  { %v1089_v15 = vadd.f32 1.0, %v2032_v14  ;;  %v964_v16 = vpop.f32.mrb[84].mxu0  ;;  %1850 = vmatmul.mubr.msk.bf16.gmra.mrb[72].mxu1 %vm489_vm2, %v1132_v13 }
 0x2f0   :  { %v2034_v17 = vpop.eup %2033  ;;  %v965_v18 = vadd.f32 %v2424_v20, %v964_v16  ;;  %v1803_v19 = vpop.f32.mrb[85].mxu0  ;;  %1853 = vmatprep.mubr.msk.bf16.mxu1 %vm2108_vm0, %v2107_v0 }
 0x2f1   :  { %v1090_v24 = vadd.f32 1.0, %v2034_v17  ;;  %v967_v25 = vpop.f32.mrb[86].mxu0  ;;  %v1114_v29 = vmul.f32 %v1089_v15, %v1014_v22 }
 0x2f2   :  { %v1043_v26 = vmul.f32 0.70710677, %v965_v18  ;;  %v968_v27 = vadd.f32 %v2424_v20, %v967_v25  ;;  %v1804_v28 = vpop.f32.mrb[87].mxu0  ;;  %v1018_v56 = vmul.f32 0.5, %v965_v18 }
 0x2f3   :  { %v1115_v30 = vmul.f32 %v1090_v24, %v1015_v23 }
 0x2f4   :  { %2039 = verf.f32 %v1043_v26  ;;  %v1044_v31 = vmul.f32 0.70710677, %v968_v27  ;;  %v1019_v57 = vmul.f32 0.5, %v968_v27 }
 0x2f5   :  { %v1133_v32 = vpack.c.bf16 %v1115_v30, %v1114_v29 }
 0x2f6   :  { %v2036_v33 = vpop.eup %2035  ;;  %2041 = verf.f32 %v1044_v31 }
 0x2f7   :  { %v1091_v34 = vadd.f32 1.0, %v2036_v33  ;;  %v972_v35 = vpop.f32.mrb[88].mxu0  ;;  %1854 = vmatmul.mubr.msk.bf16.gmra.mrb[76].mxu1 %vm489_vm2, %v1133_v32 }
 0x2f8   :  { %v2038_v36 = vpop.eup %2037  ;;  %v973_v37 = vadd.f32 %v2424_v20, %v972_v35  ;;  %v1807_v38 = vpop.f32.mrb[89].mxu0  ;;  %1857 = vmatprep.mubr.msk.bf16.mxu1 %vm2108_vm0, %v2107_v0 }
 0x2f9   :  { %v1092_v40 = vadd.f32 1.0, %v2038_v36  ;;  %v975_v41 = vpop.f32.mrb[90].mxu0  ;;  %v1116_v45 = vmul.f32 %v1091_v34, %v1016_v39 }
 0x2fa   :  { %v1045_v42 = vmul.f32 0.70710677, %v973_v37  ;;  %v976_v43 = vadd.f32 %v2424_v20, %v975_v41  ;;  %v1808_v44 = vpop.f32.mrb[91].mxu0  ;;  %v1020_v52 = vmul.f32 0.5, %v973_v37 }
 0x2fb   :  { %v1117_v46 = vmul.f32 %v1092_v40, %v1017_v21 }
 0x2fc   :  { %2043 = verf.f32 %v1045_v42  ;;  %v1046_v47 = vmul.f32 0.70710677, %v976_v43  ;;  %v1021_v10 = vmul.f32 0.5, %v976_v43 }
 0x2fd   :  { %v1134_v48 = vpack.c.bf16 %v1117_v46, %v1116_v45 }
 0x2fe   :  { %v2040_v49 = vpop.eup %2039  ;;  %2045 = verf.f32 %v1046_v47 }
 0x2ff   :  { %v1093_v50 = vadd.f32 1.0, %v2040_v49  ;;  %v980_v51 = vpop.f32.mrb[92].mxu0  ;;  %1858 = vmatmul.mubr.msk.bf16.gmra.mrb[80].mxu1 %vm489_vm2, %v1134_v48  ;;  %v2491_v49 = vld [vmem:[%s2626_s8] ss:$0 sm:$0xff] }
 0x300   :  { %v2042_v53 = vpop.eup %2041  ;;  %v981_v54 = vadd.f32 %v2424_v20, %v980_v51  ;;  %v1811_v55 = vpop.f32.mrb[93].mxu0  ;;  %1861 = vmatprep.mubr.msk.bf16.mxu1 %vm2108_vm0, %v2107_v0 }
 0x301   :  { %v1094_v58 = vadd.f32 1.0, %v2042_v53  ;;  %v983_v59 = vpop.f32.mrb[94].mxu0  ;;  %v1118_v63 = vmul.f32 %v1093_v50, %v1018_v56 }
 0x302   :  { %v1047_v60 = vmul.f32 0.70710677, %v981_v54  ;;  %v984_v61 = vadd.f32 %v2424_v20, %v983_v59  ;;  %v1812_v62 = vpop.f32.mrb[95].mxu0  ;;  %v1022_v28 = vmul.f32 0.5, %v981_v54 }
 0x303   :  { %v1119_v1 = vmul.f32 %v1094_v58, %v1019_v57 }
 0x304   :  { %2047 = verf.f32 %v1047_v60  ;;  %v1048_v2 = vmul.f32 0.70710677, %v984_v61  ;;  %v1023_v29 = vmul.f32 0.5, %v984_v61 }
 0x305   :  { %v1135_v3 = vpack.c.bf16 %v1119_v1, %v1118_v63 }
 0x306   :  { %v2044_v4 = vpop.eup %2043  ;;  %2049 = verf.f32 %v1048_v2 }
 0x307   :  { %v1095_v5 = vadd.f32 1.0, %v2044_v4  ;;  %v988_v6 = vpop.f32.mrb[96].mxu0  ;;  %1862 = vmatmul.mubr.msk.bf16.gmra.mrb[84].mxu1 %vm489_vm2, %v1135_v3 }
 0x308   :  { %v2046_v7 = vpop.eup %2045  ;;  %v989_v8 = vadd.f32 %v2424_v20, %v988_v6  ;;  %v1815_v9 = vpop.f32.mrb[97].mxu0  ;;  %1865 = vmatprep.mubr.msk.bf16.mxu1 %vm2108_vm0, %v2107_v0 }
 0x309   :  { %v1096_v11 = vadd.f32 1.0, %v2046_v7  ;;  %v991_v12 = vpop.f32.mrb[98].mxu0  ;;  %v1120_v16 = vmul.f32 %v1095_v5, %v1020_v52 }
 0x30a   :  { %v1049_v13 = vmul.f32 0.70710677, %v989_v8  ;;  %v992_v14 = vadd.f32 %v2424_v20, %v991_v12  ;;  %v1816_v15 = vpop.f32.mrb[99].mxu0 }
 0x30b   :  { %v1121_v17 = vmul.f32 %v1096_v11, %v1021_v10 }
 0x30c   :  { %2051 = verf.f32 %v1049_v13  ;;  %v1050_v18 = vmul.f32 0.70710677, %v992_v14  ;;  %v1025_v21 = vmul.f32 0.5, %v992_v14 }
 0x30d   :  { %v1136_v19 = vpack.c.bf16 %v1121_v17, %v1120_v16 }
 0x30e   :  { %v2048_v22 = vpop.eup %2047  ;;  %2053 = verf.f32 %v1050_v18 }
 0x30f   :  { %v1097_v23 = vadd.f32 1.0, %v2048_v22  ;;  %v996_v24 = vpop.f32.mrb[100].mxu0  ;;  %1866 = vmatmul.mubr.msk.bf16.gmra.mrb[88].mxu1 %vm489_vm2, %v1136_v19 }
 0x310   :  { %v2050_v25 = vpop.eup %2049  ;;  %v997_v26 = vadd.f32 %v2424_v20, %v996_v24  ;;  %v1819_v27 = vpop.f32.mrb[101].mxu0  ;;  %1869 = vmatprep.mubr.msk.bf16.mxu1 %vm2108_vm0, %v2107_v0  ;;  %v1024_v20 = vmul.f32 0.5, %v989_v8 }
 0x311   :  { %v1098_v30 = vadd.f32 1.0, %v2050_v25  ;;  %v999_v31 = vpop.f32.mrb[102].mxu0  ;;  %v1122_v34 = vmul.f32 %v1097_v23, %v1022_v28 }
 0x312   :  { %v1051_v32 = vmul.f32 0.70710677, %v997_v26  ;;  %v1820_v33 = vpop.f32.mrb[103].mxu0  ;;  %v1026_v45 = vmul.f32 0.5, %v997_v26 }
 0x313   :  { %v1123_v35 = vmul.f32 %v1098_v30, %v1023_v29 }
 0x314   :  { %2055 = verf.f32 %v1051_v32 }
 0x315   :  { %v1137_v36 = vpack.c.bf16 %v1123_v35, %v1122_v34 }
 0x316   :  { %v2052_v37 = vpop.eup %2051 }
 0x317   :  { %v1099_v38 = vadd.f32 1.0, %v2052_v37  ;;  %1870 = vmatmul.mubr.msk.bf16.gmra.mrb[92].mxu1 %vm489_vm2, %v1137_v36 }
 0x318   :  { %v2054_v39 = vpop.eup %2053  ;;  %1873 = vmatprep.mubr.msk.bf16.mxu1 %vm2108_vm0, %v2107_v0 }
 0x319   :  { %v1100_v40 = vadd.f32 1.0, %v2054_v39  ;;  %v1124_v41 = vmul.f32 %v1099_v38, %v1024_v20 }
 0x31b   :  { %v1125_v42 = vmul.f32 %v1100_v40, %v1025_v21 }
 0x31d   :  { %v1138_v43 = vpack.c.bf16 %v1125_v42, %v1124_v41 }
 0x31e   :  { %v2056_v44 = vpop.eup %2055 }
 0x31f   :  { %v1101_v46 = vadd.f32 1.0, %v2056_v44  ;;  %1874 = vmatmul.mubr.msk.bf16.gmra.mrb[96].mxu1 %vm489_vm2, %v1138_v43 }
 0x320   :  { %1877 = vmatprep.mubr.msk.bf16.mxu1 %vm2108_vm0, %v2107_v0 }
 0x321   :  { %v1126_v47 = vmul.f32 %v1101_v46, %v1026_v45 }
 0x323   :  { %v1139_v48 = vpack.c.bf16 %v1126_v47, %v1126_v47 }
 0x327   :  { %1878 = vmatmul.mubr.msk.bf16.gmra.mrb[100].mxu1 %vm489_vm2, %v1139_v48 }
 0x39a   :  { %v1252_v50 = vpop.f32.mrb[52].mxu1 }
 0x39b   :  { %v1253_v51 = vadd.f32 %v2491_v49, %v1252_v50  ;;  %v1831_v53 = vpop.f32.mrb[53].mxu1 }
 0x39c   :  { %v1255_v54 = vpop.f32.mrb[54].mxu1 }
 0x39d   :  { %v1379_v55 = vmul.f32 0.70710677, %v1253_v51  ;;  %v1256_v56 = vadd.f32 %v2491_v49, %v1255_v54  ;;  %v1832_v57 = vpop.f32.mrb[55].mxu1  ;;  %v1354_v4 = vmul.f32 0.5, %v1253_v51 }
 0x39f   :  { %2057 = verf.f32 %v1379_v55  ;;  %v1380_v0 = vmul.f32 0.70710677, %v1256_v56  ;;  %v1355_v10 = vmul.f32 0.5, %v1256_v56 }
 0x3a1   :  { %2059 = verf.f32 %v1380_v0 }
 0x3a2   :  { %v1260_v58 = vpop.f32.mrb[56].mxu1 }
 0x3a3   :  { %v1261_v59 = vadd.f32 %v2491_v49, %v1260_v58  ;;  %v1835_v60 = vpop.f32.mrb[57].mxu1 }
 0x3a4   :  { %v1263_v61 = vpop.f32.mrb[58].mxu1 }
 0x3a5   :  { %v1381_v62 = vmul.f32 0.70710677, %v1261_v59  ;;  %v1264_v63 = vadd.f32 %v2491_v49, %v1263_v61  ;;  %v1836_v1 = vpop.f32.mrb[59].mxu1  ;;  %v1356_v19 = vmul.f32 0.5, %v1261_v59 }
 0x3a7   :  { %2061 = verf.f32 %v1381_v62  ;;  %v1382_v2 = vmul.f32 0.70710677, %v1264_v63  ;;  %v1357_v28 = vmul.f32 0.5, %v1264_v63 }
 0x3a9   :  { %v2058_v3 = vpop.eup %2057  ;;  %2063 = verf.f32 %v1382_v2 }
 0x3aa   :  { %v1429_v5 = vadd.f32 1.0, %v2058_v3  ;;  %v1268_v6 = vpop.f32.mrb[60].mxu1 }
 0x3ab   :  { %v2060_v7 = vpop.eup %2059  ;;  %v1269_v8 = vadd.f32 %v2491_v49, %v1268_v6  ;;  %v1839_v9 = vpop.f32.mrb[61].mxu1 }
 0x3ac   :  { %v1454_v52 = vmul.f32 %v1429_v5, %v1354_v4  ;;  %v1430_v11 = vadd.f32 1.0, %v2060_v7  ;;  %v1271_v12 = vpop.f32.mrb[62].mxu1 }
 0x3ad   :  { %v1383_v13 = vmul.f32 0.70710677, %v1269_v8  ;;  %v1272_v14 = vadd.f32 %v2491_v49, %v1271_v12  ;;  %v1840_v15 = vpop.f32.mrb[63].mxu1  ;;  %v1358_v37 = vmul.f32 0.5, %v1269_v8 }
 0x3ae   :  { %1479 = vst.msk [vmem:[%s2627_s9] sm:$0xff] %vm136_vm1, %v1454_v52  ;;  %v1455_v16 = vmul.f32 %v1430_v11, %v1355_v10 }
 0x3af   :  { %2065 = verf.f32 %v1383_v13  ;;  %v1384_v17 = vmul.f32 0.70710677, %v1272_v14  ;;  %v1359_v42 = vmul.f32 0.5, %v1272_v14 }
 0x3b0   :  { %1480 = vst.msk [vmem:[%s2627_s9 + $0x8] sm:$0xff] %vm136_vm1, %v1455_v16 }
 0x3b1   :  { %v2062_v18 = vpop.eup %2061  ;;  %2067 = verf.f32 %v1384_v17 }
 0x3b2   :  { %v1431_v22 = vadd.f32 1.0, %v2062_v18  ;;  %v1276_v23 = vpop.f32.mrb[64].mxu1 }
 0x3b3   :  { %v2064_v24 = vpop.eup %2063  ;;  %v1277_v25 = vadd.f32 %v2491_v49, %v1276_v23  ;;  %v1843_v26 = vpop.f32.mrb[65].mxu1 }
 0x3b4   :  { %v1456_v27 = vmul.f32 %v1431_v22, %v1356_v19  ;;  %v1432_v29 = vadd.f32 1.0, %v2064_v24  ;;  %v1279_v30 = vpop.f32.mrb[66].mxu1 }
 0x3b5   :  { %v1385_v31 = vmul.f32 0.70710677, %v1277_v25  ;;  %v1280_v32 = vadd.f32 %v2491_v49, %v1279_v30  ;;  %v1844_v33 = vpop.f32.mrb[67].mxu1  ;;  %v1360_v53 = vmul.f32 0.5, %v1277_v25 }
 0x3b6   :  { %1481 = vst.msk [vmem:[%s2627_s9 + $0x10] sm:$0xff] %vm136_vm1, %v1456_v27  ;;  %v1457_v34 = vmul.f32 %v1432_v29, %v1357_v28 }
 0x3b7   :  { %2069 = verf.f32 %v1385_v31  ;;  %v1386_v35 = vmul.f32 0.70710677, %v1280_v32  ;;  %v1361_v59 = vmul.f32 0.5, %v1280_v32 }
 0x3b8   :  { %1482 = vst.msk [vmem:[%s2627_s9 + $0x18] sm:$0xff] %vm136_vm1, %v1457_v34 }
 0x3b9   :  { %v2066_v36 = vpop.eup %2065  ;;  %2071 = verf.f32 %v1386_v35 }
 0x3ba   :  { %v1433_v38 = vadd.f32 1.0, %v2066_v36  ;;  %v1284_v39 = vpop.f32.mrb[68].mxu1 }
 0x3bb   :  { %v2068_v20 = vpop.eup %2067  ;;  %v1285_v21 = vadd.f32 %v2491_v49, %v1284_v39  ;;  %v1847_v40 = vpop.f32.mrb[69].mxu1 }
 0x3bc   :  { %v1458_v41 = vmul.f32 %v1433_v38, %v1358_v37  ;;  %v1434_v43 = vadd.f32 1.0, %v2068_v20  ;;  %v1287_v44 = vpop.f32.mrb[70].mxu1 }
 0x3bd   :  { %v1387_v45 = vmul.f32 0.70710677, %v1285_v21  ;;  %v1288_v46 = vadd.f32 %v2491_v49, %v1287_v44  ;;  %v1848_v47 = vpop.f32.mrb[71].mxu1  ;;  %v1362_v5 = vmul.f32 0.5, %v1285_v21 }
 0x3be   :  { %1483 = vst.msk [vmem:[%s2627_s9 + $0x20] sm:$0xff] %vm136_vm1, %v1458_v41  ;;  %v1459_v48 = vmul.f32 %v1434_v43, %v1359_v42 }
 0x3bf   :  { %2073 = verf.f32 %v1387_v45  ;;  %v1388_v50 = vmul.f32 0.70710677, %v1288_v46  ;;  %v1363_v11 = vmul.f32 0.5, %v1288_v46 }
 0x3c0   :  { %1484 = vst.msk [vmem:[%s2627_s9 + $0x28] sm:$0xff] %vm136_vm1, %v1459_v48 }
 0x3c1   :  { %v2070_v51 = vpop.eup %2069  ;;  %2075 = verf.f32 %v1388_v50 }
 0x3c2   :  { %v1435_v54 = vadd.f32 1.0, %v2070_v51  ;;  %v1292_v55 = vpop.f32.mrb[72].mxu1 }
 0x3c3   :  { %v2072_v56 = vpop.eup %2071  ;;  %v1293_v57 = vadd.f32 %v2491_v49, %v1292_v55  ;;  %v1851_v0 = vpop.f32.mrb[73].mxu1 }
 0x3c4   :  { %v1460_v58 = vmul.f32 %v1435_v54, %v1360_v53  ;;  %v1436_v60 = vadd.f32 1.0, %v2072_v56  ;;  %v1295_v61 = vpop.f32.mrb[74].mxu1 }
 0x3c5   :  { %v1389_v62 = vmul.f32 0.70710677, %v1293_v57  ;;  %v1296_v63 = vadd.f32 %v2491_v49, %v1295_v61  ;;  %v1852_v1 = vpop.f32.mrb[75].mxu1  ;;  %v1364_v22 = vmul.f32 0.5, %v1293_v57 }
 0x3c6   :  { %1485 = vst.msk [vmem:[%s2627_s9 + $0x30] sm:$0xff] %vm136_vm1, %v1460_v58  ;;  %v1461_v2 = vmul.f32 %v1436_v60, %v1361_v59 }
 0x3c7   :  { %2077 = verf.f32 %v1389_v62  ;;  %v1390_v3 = vmul.f32 0.70710677, %v1296_v63  ;;  %v1365_v29 = vmul.f32 0.5, %v1296_v63 }
 0x3c8   :  { %1486 = vst.msk [vmem:[%s2627_s9 + $0x38] sm:$0xff] %vm136_vm1, %v1461_v2 }
 0x3c9   :  { %v2074_v4 = vpop.eup %2073  ;;  %2079 = verf.f32 %v1390_v3 }
 0x3ca   :  { %v1437_v6 = vadd.f32 1.0, %v2074_v4  ;;  %v1300_v7 = vpop.f32.mrb[76].mxu1 }
 0x3cb   :  { %v2076_v8 = vpop.eup %2075  ;;  %v1301_v9 = vadd.f32 %v2491_v49, %v1300_v7  ;;  %v1855_v52 = vpop.f32.mrb[77].mxu1 }
 0x3cc   :  { %v1462_v10 = vmul.f32 %v1437_v6, %v1362_v5  ;;  %v1438_v12 = vadd.f32 1.0, %v2076_v8  ;;  %v1303_v13 = vpop.f32.mrb[78].mxu1 }
 0x3cd   :  { %v1391_v14 = vmul.f32 0.70710677, %v1301_v9  ;;  %v1304_v15 = vadd.f32 %v2491_v49, %v1303_v13  ;;  %v1856_v16 = vpop.f32.mrb[79].mxu1  ;;  %v1366_v38 = vmul.f32 0.5, %v1301_v9 }
 0x3ce   :  { %1487 = vst.msk [vmem:[%s2627_s9 + $0x40] sm:$0xff] %vm136_vm1, %v1462_v10  ;;  %v1463_v17 = vmul.f32 %v1438_v12, %v1363_v11 }
 0x3cf   :  { %2081 = verf.f32 %v1391_v14  ;;  %v1392_v18 = vmul.f32 0.70710677, %v1304_v15  ;;  %v1367_v43 = vmul.f32 0.5, %v1304_v15 }
 0x3d0   :  { %1488 = vst.msk [vmem:[%s2627_s9 + $0x48] sm:$0xff] %vm136_vm1, %v1463_v17 }
 0x3d1   :  { %v2078_v19 = vpop.eup %2077  ;;  %2083 = verf.f32 %v1392_v18 }
 0x3d2   :  { %v1439_v23 = vadd.f32 1.0, %v2078_v19  ;;  %v1308_v24 = vpop.f32.mrb[80].mxu1 }
 0x3d3   :  { %v2080_v25 = vpop.eup %2079  ;;  %v1309_v26 = vadd.f32 %v2491_v49, %v1308_v24  ;;  %v1859_v27 = vpop.f32.mrb[81].mxu1 }
 0x3d4   :  { %v1464_v28 = vmul.f32 %v1439_v23, %v1364_v22  ;;  %v1440_v30 = vadd.f32 1.0, %v2080_v25  ;;  %v1311_v31 = vpop.f32.mrb[82].mxu1 }
 0x3d5   :  { %v1393_v32 = vmul.f32 0.70710677, %v1309_v26  ;;  %v1312_v33 = vadd.f32 %v2491_v49, %v1311_v31  ;;  %v1860_v34 = vpop.f32.mrb[83].mxu1  ;;  %v1368_v54 = vmul.f32 0.5, %v1309_v26 }
 0x3d6   :  { %1489 = vst.msk [vmem:[%s2627_s9 + $0x50] sm:$0xff] %vm136_vm1, %v1464_v28  ;;  %v1465_v35 = vmul.f32 %v1440_v30, %v1365_v29 }
 0x3d7   :  { %2085 = verf.f32 %v1393_v32  ;;  %v1394_v36 = vmul.f32 0.70710677, %v1312_v33  ;;  %v1369_v60 = vmul.f32 0.5, %v1312_v33 }
 0x3d8   :  { %1490 = vst.msk [vmem:[%s2627_s9 + $0x58] sm:$0xff] %vm136_vm1, %v1465_v35 }
 0x3d9   :  { %v2082_v37 = vpop.eup %2081  ;;  %2087 = verf.f32 %v1394_v36 }
 0x3da   :  { %v1441_v39 = vadd.f32 1.0, %v2082_v37  ;;  %v1316_v20 = vpop.f32.mrb[84].mxu1 }
 0x3db   :  { %v2084_v21 = vpop.eup %2083  ;;  %v1317_v40 = vadd.f32 %v2491_v49, %v1316_v20  ;;  %v1863_v41 = vpop.f32.mrb[85].mxu1 }
 0x3dc   :  { %v1466_v42 = vmul.f32 %v1441_v39, %v1366_v38  ;;  %v1442_v44 = vadd.f32 1.0, %v2084_v21  ;;  %v1319_v45 = vpop.f32.mrb[86].mxu1 }
 0x3dd   :  { %v1395_v46 = vmul.f32 0.70710677, %v1317_v40  ;;  %v1320_v47 = vadd.f32 %v2491_v49, %v1319_v45  ;;  %v1864_v48 = vpop.f32.mrb[87].mxu1  ;;  %v1370_v6 = vmul.f32 0.5, %v1317_v40 }
 0x3de   :  { %1491 = vst.msk [vmem:[%s2627_s9 + $0x60] sm:$0xff] %vm136_vm1, %v1466_v42  ;;  %v1467_v50 = vmul.f32 %v1442_v44, %v1367_v43 }
 0x3df   :  { %2089 = verf.f32 %v1395_v46  ;;  %v1396_v51 = vmul.f32 0.70710677, %v1320_v47  ;;  %v1371_v12 = vmul.f32 0.5, %v1320_v47 }
 0x3e0   :  { %1492 = vst.msk [vmem:[%s2627_s9 + $0x68] sm:$0xff] %vm136_vm1, %v1467_v50 }
 0x3e1   :  { %v2086_v53 = vpop.eup %2085  ;;  %2091 = verf.f32 %v1396_v51 }
 0x3e2   :  { %v1443_v55 = vadd.f32 1.0, %v2086_v53  ;;  %v1324_v56 = vpop.f32.mrb[88].mxu1 }
 0x3e3   :  { %v2088_v57 = vpop.eup %2087  ;;  %v1325_v0 = vadd.f32 %v2491_v49, %v1324_v56  ;;  %v1867_v58 = vpop.f32.mrb[89].mxu1 }
 0x3e4   :  { %v1468_v59 = vmul.f32 %v1443_v55, %v1368_v54  ;;  %v1444_v61 = vadd.f32 1.0, %v2088_v57  ;;  %v1327_v62 = vpop.f32.mrb[90].mxu1 }
 0x3e5   :  { %v1397_v63 = vmul.f32 0.70710677, %v1325_v0  ;;  %v1328_v1 = vadd.f32 %v2491_v49, %v1327_v62  ;;  %v1868_v2 = vpop.f32.mrb[91].mxu1  ;;  %v1372_v23 = vmul.f32 0.5, %v1325_v0 }
 0x3e6   :  { %1493 = vst.msk [vmem:[%s2627_s9 + $0x70] sm:$0xff] %vm136_vm1, %v1468_v59  ;;  %v1469_v3 = vmul.f32 %v1444_v61, %v1369_v60 }
 0x3e7   :  { %2093 = verf.f32 %v1397_v63  ;;  %v1398_v4 = vmul.f32 0.70710677, %v1328_v1  ;;  %v1373_v30 = vmul.f32 0.5, %v1328_v1 }
 0x3e8   :  { %1494 = vst.msk [vmem:[%s2627_s9 + $0x78] sm:$0xff] %vm136_vm1, %v1469_v3 }
 0x3e9   :  { %v2090_v5 = vpop.eup %2089  ;;  %2095 = verf.f32 %v1398_v4 }
 0x3ea   :  { %v1445_v7 = vadd.f32 1.0, %v2090_v5  ;;  %v1332_v8 = vpop.f32.mrb[92].mxu1 }
 0x3eb   :  { %v2092_v9 = vpop.eup %2091  ;;  %v1333_v52 = vadd.f32 %v2491_v49, %v1332_v8  ;;  %v1871_v10 = vpop.f32.mrb[93].mxu1 }
 0x3ec   :  { %v1470_v11 = vmul.f32 %v1445_v7, %v1370_v6  ;;  %v1446_v13 = vadd.f32 1.0, %v2092_v9  ;;  %v1335_v14 = vpop.f32.mrb[94].mxu1 }
 0x3ed   :  { %v1399_v15 = vmul.f32 0.70710677, %v1333_v52  ;;  %v1336_v16 = vadd.f32 %v2491_v49, %v1335_v14  ;;  %v1872_v17 = vpop.f32.mrb[95].mxu1  ;;  %v1374_v39 = vmul.f32 0.5, %v1333_v52 }
 0x3ee   :  { %1495 = vst.msk [vmem:[%s2627_s9 + $0x80] sm:$0xff] %vm136_vm1, %v1470_v11  ;;  %v1471_v18 = vmul.f32 %v1446_v13, %v1371_v12 }
 0x3ef   :  { %2097 = verf.f32 %v1399_v15  ;;  %v1400_v19 = vmul.f32 0.70710677, %v1336_v16  ;;  %v1375_v44 = vmul.f32 0.5, %v1336_v16 }
 0x3f0   :  { %1496 = vst.msk [vmem:[%s2627_s9 + $0x88] sm:$0xff] %vm136_vm1, %v1471_v18 }
 0x3f1   :  { %v2094_v22 = vpop.eup %2093  ;;  %2099 = verf.f32 %v1400_v19 }
 0x3f2   :  { %v1447_v24 = vadd.f32 1.0, %v2094_v22  ;;  %v1340_v25 = vpop.f32.mrb[96].mxu1 }
 0x3f3   :  { %v2096_v26 = vpop.eup %2095  ;;  %v1341_v27 = vadd.f32 %v2491_v49, %v1340_v25  ;;  %v1875_v28 = vpop.f32.mrb[97].mxu1 }
 0x3f4   :  { %v1472_v29 = vmul.f32 %v1447_v24, %v1372_v23  ;;  %v1448_v31 = vadd.f32 1.0, %v2096_v26  ;;  %v1343_v32 = vpop.f32.mrb[98].mxu1 }
 0x3f5   :  { %v1401_v33 = vmul.f32 0.70710677, %v1341_v27  ;;  %v1344_v34 = vadd.f32 %v2491_v49, %v1343_v32  ;;  %v1876_v35 = vpop.f32.mrb[99].mxu1  ;;  %v1376_v51 = vmul.f32 0.5, %v1341_v27 }
 0x3f6   :  { %1497 = vst.msk [vmem:[%s2627_s9 + $0x90] sm:$0xff] %vm136_vm1, %v1472_v29  ;;  %v1473_v36 = vmul.f32 %v1448_v31, %v1373_v30 }
 0x3f7   :  { %2101 = verf.f32 %v1401_v33  ;;  %v1402_v37 = vmul.f32 0.70710677, %v1344_v34  ;;  %v1377_v56 = vmul.f32 0.5, %v1344_v34 }
 0x3f8   :  { %1498 = vst.msk [vmem:[%s2627_s9 + $0x98] sm:$0xff] %vm136_vm1, %v1473_v36 }
 0x3f9   :  { %v2098_v38 = vpop.eup %2097  ;;  %2103 = verf.f32 %v1402_v37 }
 0x3fa   :  { %v1449_v20 = vadd.f32 1.0, %v2098_v38  ;;  %v1348_v21 = vpop.f32.mrb[100].mxu1 }
 0x3fb   :  { %v2100_v40 = vpop.eup %2099  ;;  %v1349_v41 = vadd.f32 %v2491_v49, %v1348_v21  ;;  %v1879_v42 = vpop.f32.mrb[101].mxu1 }
 0x3fc   :  { %v1474_v43 = vmul.f32 %v1449_v20, %v1374_v39  ;;  %v1450_v45 = vadd.f32 1.0, %v2100_v40  ;;  %v1351_v46 = vpop.f32.mrb[102].mxu1 }
 0x3fd   :  { %v1403_v47 = vmul.f32 0.70710677, %v1349_v41  ;;  %v1880_v48 = vpop.f32.mrb[103].mxu1  ;;  %v1378_v59 = vmul.f32 0.5, %v1349_v41 }
 0x3fe   :  { %1499 = vst.msk [vmem:[%s2627_s9 + $0xa0] sm:$0xff] %vm136_vm1, %v1474_v43  ;;  %v1475_v50 = vmul.f32 %v1450_v45, %v1375_v44 }
 0x3ff   :  { %2105 = verf.f32 %v1403_v47 }
 0x400   :  { %1500 = vst.msk [vmem:[%s2627_s9 + $0xa8] sm:$0xff] %vm136_vm1, %v1475_v50 }
 0x401   :  { %v2102_v49 = vpop.eup %2101 }
 0x402   :  { %v1451_v53 = vadd.f32 1.0, %v2102_v49 }
 0x403   :  { %v2104_v54 = vpop.eup %2103 }
 0x404   :  { %v1476_v55 = vmul.f32 %v1451_v53, %v1376_v51  ;;  %v1452_v57 = vadd.f32 1.0, %v2104_v54 }
 0x406   :  { %1501 = vst.msk [vmem:[%s2627_s9 + $0xb0] sm:$0xff] %vm136_vm1, %v1476_v55  ;;  %v1477_v0 = vmul.f32 %v1452_v57, %v1377_v56 }
 0x408   :  { %1502 = vst.msk [vmem:[%s2627_s9 + $0xb8] sm:$0xff] %vm136_vm1, %v1477_v0 }
 0x409   :  { %v2106_v58 = vpop.eup %2105 }
 0x40a   :  { %v1453_v60 = vadd.f32 1.0, %v2106_v58 }
 0x40c   :  { %v1478_v61 = vmul.f32 %v1453_v60, %v1378_v59 }
 0x40e   :  { %1503 = vst.msk [vmem:[%s2627_s9 + $0xc0] sm:$0xff] %vm136_vm1, %v1478_v61 }

</bundles_post_ra>
